<compile_context>
chip_gen: v7x
topology: tpu7x:2x2x1
jax: 0.10.0
libtpu: 0.0.40
codegen_flags: <defaults>
</compile_context>

<pallas_src>
import functools
import math

import jax
import jax.numpy as jnp
from jax.experimental import pallas as pl
from jax.experimental.pallas import tpu as pltpu  # noqa: F401  (kept for TPU-specific knobs)

# ---------------- model config (small, consistent with Linear(64, 1)) -------------
B = 2          # batch
S = 8          # sequence length
H = 32         # hidden size
NH = 4         # attention heads
DH = H // NH   # head dim
FF = 64        # intermediate (FFN) size
NL = 2         # number of encoder layers
LN_EPS = 1e-12
NB = 2 * B     # (q1,q2) stacked * batch  -> number of sequences in the fused tile
NR = NB * S    # total activation rows


# ================================ in-kernel helpers ================================
def _layernorm(x, g, b):
    mu = jnp.mean(x, axis=-1, keepdims=True)
    xc = x - mu
    var = jnp.mean(xc * xc, axis=-1, keepdims=True)
    return xc * jax.lax.rsqrt(var + LN_EPS) * g + b


def _gelu(x):
    # TODO(synk): HF BERT uses exact erf-GELU; tanh approximation kept for guaranteed
    # Mosaic lowering (numerically very close at these magnitudes).
    return 0.5 * x * (1.0 + jnp.tanh(0.7978845608028654 * (x + 0.044715 * x * x * x)))


# ================================ fused BERT kernel ================================
def _bert_kernel(
    x_ref,                                   # (2*B*S, H)  q1 rows then q2 rows
    pos_tok_ref,                             # (2*B*S, H)  pre-tiled pos + token-type emb
    embg_ref, embb_ref,                      # embedding LayerNorm
    wqkv_ref, bqkv_ref,                      # (NL,H,3H), (NL,1,3H) fused QKV (scale folded)
    wo_ref, bo_ref, ln1g_ref, ln1b_ref,      # attention out proj + LN1
    wi_ref, bi_ref, wo2_ref, bo2_ref,        # FFN
    ln2g_ref, ln2b_ref,                      # LN2
    poolw_ref, poolb_ref,                    # pooler
    clsw1_ref, clsw2_ref, clsb_ref,          # fused classifier Linear(2H, 1)
    logits_ref,                              # out: (B, 1)
):
    # --- embeddings: inputs_embeds + (pos + tok) + LayerNorm (dropout = identity) ---
    h = _layernorm(x_ref[...] + pos_tok_ref[...], embg_ref[...], embb_ref[...])

    for li in range(NL):                     # static unroll; all weights stay in VMEM
        # fused QKV projection: one lane-dense (H -> 3H) MXU pass.
        # 1/sqrt(DH) is pre-folded into the q columns of wqkv/bqkv.
        qkv = jnp.dot(h, wqkv_ref[li], preferred_element_type=jnp.float32) + bqkv_ref[li]
        q = qkv[:, 0:H]
        k = qkv[:, H:2 * H]
        v = qkv[:, 2 * H:3 * H]

        # --- attention: batched over (enc-copy, batch); one 3-D einsum pair per head ---
        ctx_heads = []
        for hh in range(NH):
            c0 = hh * DH
            q3 = q[:, c0:c0 + DH].reshape(NB, S, DH)
            k3 = k[:, c0:c0 + DH].reshape(NB, S, DH)
            v3 = v[:, c0:c0 + DH].reshape(NB, S, DH)
            s = jnp.einsum('bqd,bkd->bqk', q3, k3, preferred_element_type=jnp.float32)
            m = jnp.max(s, axis=-1, keepdims=True)
            p = jnp.exp(s - m)
            p = p / jnp.sum(p, axis=-1, keepdims=True)          # exact softmax denom
            c3 = jnp.einsum('bqk,bkd->bqd', p, v3, preferred_element_type=jnp.float32)
            ctx_heads.append(c3.reshape(NR, DH))
        ctx = jnp.concatenate(ctx_heads, axis=1)                # (NR, H) heads merged on lanes

        # --- attention output projection + residual + LN ------------------------------
        attn_out = jnp.dot(ctx, wo_ref[li], preferred_element_type=jnp.float32) + bo_ref[li]
        h = _layernorm(attn_out + h, ln1g_ref[li], ln1b_ref[li])

        # --- FFN (GELU) + residual + LN ------------------------------------------------
        inter = _gelu(jnp.dot(h, wi_ref[li], preferred_element_type=jnp.float32) + bi_ref[li])
        ffn = jnp.dot(inter, wo2_ref[li], preferred_element_type=jnp.float32) + bo2_ref[li]
        h = _layernorm(ffn + h, ln2g_ref[li], ln2b_ref[li])

    # --- pooler: tanh(dense(CLS token)) --------------------------------------------
    cls = h.reshape(NB, S, H)[:, 0, :]                          # (NB, H) CLS rows
    pooled = jnp.tanh(
        jnp.dot(cls, poolw_ref[...], preferred_element_type=jnp.float32) + poolb_ref[...]
    )

    # --- fused classifier: cat(pooled1, pooled2) @ cls_w + cls_b (dropout = identity) ---
    p1 = pooled[0:B, :]                                         # pooled for q1
    p2 = pooled[B:2 * B, :]                                     # pooled for q2
    logits_ref[...] = (
        jnp.sum(p1 * clsw1_ref[...], axis=-1, keepdims=True)
        + jnp.sum(p2 * clsw2_ref[...], axis=-1, keepdims=True)
        + clsb_ref[...]
    )


# ================================ wrapper ==========================================
_WEIGHT_NAMES = [
    "pos_tok", "emb_ln_g", "emb_ln_b",
    "wqkv", "bqkv", "wo", "bo", "ln1_g", "ln1_b",
    "wi", "bi", "wo2", "bo2", "ln2_g", "ln2_b",
    "pool_w", "pool_b", "cls_w1", "cls_w2", "cls_b",
]


def bert_pair_forward(params, q1, q2):
    # Stack q1 and q2 on rows -> a single (2*B*S, H) tile, one pallas_call, no grid.
    x_all = jnp.concatenate([q1.reshape(B * S, H), q2.reshape(B * S, H)], axis=0)
    weights = [params[nm] for nm in _WEIGHT_NAMES]

    logits = pl.pallas_call(
        _bert_kernel,
        out_shape=jax.ShapeDtypeStruct((B, 1), jnp.float32),
    )(x_all, *weights)

    return logits[:, 0]                                         # .squeeze(1) -> (B,)


# ================================ parameter init ===================================
def init_params(key):
    keys = jax.random.split(key, 9)

    def n(k, shape):
        return 0.02 * jax.random.normal(k, shape, jnp.float32)

    # fold the 1/sqrt(DH) attention scale into the q-columns of the fused QKV weights
    scale = 1.0 / math.sqrt(DH)
    qscale = jnp.concatenate(
        [jnp.full((H,), scale, jnp.float32), jnp.ones((2 * H,), jnp.float32)]
    )

    pos = n(keys[0], (S, H))                 # position embeddings
    tok = n(keys[1], (1, H))                 # token_type embedding (ids all 0)

    return {
        # pre-tiled (pos + tok) for all 2*B stacked sequences
        "pos_tok": jnp.tile(pos, (NB, 1)) + tok,
        "emb_ln_g": jnp.ones((1, H), jnp.float32),
        "emb_ln_b": jnp.zeros((1, H), jnp.float32),
        "wqkv": n(keys[2], (NL, H, 3 * H)) * qscale,     # wq|wk|wv fused on lanes, scale folded
        "bqkv": jnp.zeros((NL, 1, 3 * H), jnp.float32) * qscale,
        "wo": n(keys[3], (NL, H, H)),
        "bo": jnp.zeros((NL, 1, H), jnp.float32),
        "ln1_g": jnp.ones((NL, 1, H), jnp.float32),
        "ln1_b": jnp.zeros((NL, 1, H), jnp.float32),
        "wi": n(keys[4], (NL, H, FF)),
        "bi": jnp.zeros((NL, 1, FF), jnp.float32),
        "wo2": n(keys[5], (NL, FF, H)),
        "bo2": jnp.zeros((NL, 1, H), jnp.float32),
        "ln2_g": jnp.ones((NL, 1, H), jnp.float32),
        "ln2_b": jnp.zeros((NL, 1, H), jnp.float32),
        "pool_w": n(keys[6], (H, H)),
        "pool_b": jnp.zeros((1, H), jnp.float32),
        "cls_w1": n(keys[7], (1, H)),        # cls_w[:H]  (applied to pooled1)
        "cls_w2": n(keys[8], (1, H)),        # cls_w[H:]  (applied to pooled2)
        "cls_b": jnp.zeros((1, 1), jnp.float32),
    }


# ===================================== main ========================================
if __name__ == "__main__":
    key = jax.random.PRNGKey(0)
    k_param, k_q1, k_q2 = jax.random.split(key, 3)
    params = init_params(k_param)

    q1 = jax.random.normal(k_q1, (B, S, H), jnp.float32)     # inputs_embeds 1
    q2 = jax.random.normal(k_q2, (B, S, H), jnp.float32)     # inputs_embeds 2

    fwd = jax.jit(functools.partial(bert_pair_forward, params))
    out = fwd(q1, q2)
    jax.block_until_ready(out)
    assert out.shape == (B,) and out.dtype == jnp.float32
    print("KERNEL_OK")
</pallas_src>

<mosaic_0001>
module attributes {stable_mosaic.version = 11 : i64} {
  func.func @_bert_kernel(%arg0: memref<32x32xf32, #tpu.memory_space<vmem>>, %arg1: memref<32x32xf32, #tpu.memory_space<vmem>>, %arg2: memref<1x32xf32, #tpu.memory_space<vmem>>, %arg3: memref<1x32xf32, #tpu.memory_space<vmem>>, %arg4: memref<2x32x96xf32, #tpu.memory_space<vmem>>, %arg5: memref<2x1x96xf32, #tpu.memory_space<vmem>>, %arg6: memref<2x32x32xf32, #tpu.memory_space<vmem>>, %arg7: memref<2x1x32xf32, #tpu.memory_space<vmem>>, %arg8: memref<2x1x32xf32, #tpu.memory_space<vmem>>, %arg9: memref<2x1x32xf32, #tpu.memory_space<vmem>>, %arg10: memref<2x32x64xf32, #tpu.memory_space<vmem>>, %arg11: memref<2x1x64xf32, #tpu.memory_space<vmem>>, %arg12: memref<2x64x32xf32, #tpu.memory_space<vmem>>, %arg13: memref<2x1x32xf32, #tpu.memory_space<vmem>>, %arg14: memref<2x1x32xf32, #tpu.memory_space<vmem>>, %arg15: memref<2x1x32xf32, #tpu.memory_space<vmem>>, %arg16: memref<32x32xf32, #tpu.memory_space<vmem>>, %arg17: memref<1x32xf32, #tpu.memory_space<vmem>>, %arg18: memref<1x32xf32, #tpu.memory_space<vmem>>, %arg19: memref<1x32xf32, #tpu.memory_space<vmem>>, %arg20: memref<1x1xf32, #tpu.memory_space<vmem>>, %arg21: memref<2x1xf32, #tpu.memory_space<vmem>>) attributes {dimension_semantics = [], scalar_prefetch = 0 : i64, scratch_operands = 0 : i64, tpu.core_type = #tpu.core_type<tc>} {
    %c0 = arith.constant 0 : index
    %c0_0 = arith.constant 0 : index
    %0 = vector.load %arg0[%c0, %c0_0] : memref<32x32xf32, #tpu.memory_space<vmem>>, vector<32x32xf32>
    %c0_1 = arith.constant 0 : index
    %c0_2 = arith.constant 0 : index
    %1 = vector.load %arg1[%c0_1, %c0_2] : memref<32x32xf32, #tpu.memory_space<vmem>>, vector<32x32xf32>
    %2 = arith.addf %0, %1 : vector<32x32xf32>
    %c0_3 = arith.constant 0 : index
    %c0_4 = arith.constant 0 : index
    %3 = vector.load %arg2[%c0_3, %c0_4] : memref<1x32xf32, #tpu.memory_space<vmem>>, vector<1x32xf32>
    %c0_5 = arith.constant 0 : index
    %c0_6 = arith.constant 0 : index
    %4 = vector.load %arg3[%c0_5, %c0_6] : memref<1x32xf32, #tpu.memory_space<vmem>>, vector<1x32xf32>
    %cst = arith.constant dense<0.000000e+00> : vector<32xf32>
    %5 = vector.multi_reduction <add>, %2, %cst [1] : vector<32x32xf32> to vector<32xf32>
    %6 = vector.shape_cast %5 : vector<32xf32> to vector<32x1xf32>
    %cst_7 = arith.constant 3.200000e+01 : f32
    %7 = vector.broadcast %cst_7 : f32 to vector<32x1xf32>
    %8 = arith.divf %6, %7 : vector<32x1xf32>
    %9 = vector.broadcast %8 : vector<32x1xf32> to vector<32x32xf32>
    %10 = arith.subf %2, %9 : vector<32x32xf32>
    %11 = arith.mulf %10, %10 : vector<32x32xf32>
    %cst_8 = arith.constant dense<0.000000e+00> : vector<32xf32>
    %12 = vector.multi_reduction <add>, %11, %cst_8 [1] : vector<32x32xf32> to vector<32xf32>
    %13 = vector.shape_cast %12 : vector<32xf32> to vector<32x1xf32>
    %cst_9 = arith.constant 3.200000e+01 : f32
    %14 = vector.broadcast %cst_9 : f32 to vector<32x1xf32>
    %15 = arith.divf %13, %14 : vector<32x1xf32>
    %cst_10 = arith.constant 9.99999996E-13 : f32
    %16 = vector.broadcast %cst_10 : f32 to vector<32x1xf32>
    %17 = arith.addf %15, %16 : vector<32x1xf32>
    %18 = math.rsqrt %17 : vector<32x1xf32>
    %19 = vector.broadcast %18 : vector<32x1xf32> to vector<32x32xf32>
    %20 = arith.mulf %10, %19 : vector<32x32xf32>
    %21 = vector.broadcast %3 : vector<1x32xf32> to vector<32x32xf32>
    %22 = arith.mulf %20, %21 : vector<32x32xf32>
    %23 = vector.broadcast %4 : vector<1x32xf32> to vector<32x32xf32>
    %24 = arith.addf %22, %23 : vector<32x32xf32>
    %c0_11 = arith.constant 0 : index
    %c0_12 = arith.constant 0 : index
    %c0_13 = arith.constant 0 : index
    %25 = vector.load %arg4[%c0_11, %c0_12, %c0_13] : memref<2x32x96xf32, #tpu.memory_space<vmem>>, vector<1x32x96xf32>
    %26 = vector.shape_cast %25 : vector<1x32x96xf32> to vector<32x96xf32>
    %cst_14 = arith.constant dense<0.000000e+00> : vector<32x96xf32>
    %27 = tpu.matmul %24, %26, %cst_14 {dimension_numbers = #tpu.dot_dimension_numbers<[1], [0], [0], [1], [0, 0, 1, 1], [], []>} : vector<32x32xf32>, vector<32x96xf32>, vector<32x96xf32> -> vector<32x96xf32>
    %c0_15 = arith.constant 0 : index
    %c0_16 = arith.constant 0 : index
    %c0_17 = arith.constant 0 : index
    %28 = vector.load %arg5[%c0_15, %c0_16, %c0_17] : memref<2x1x96xf32, #tpu.memory_space<vmem>>, vector<1x1x96xf32>
    %29 = vector.shape_cast %28 : vector<1x1x96xf32> to vector<1x96xf32>
    %30 = vector.broadcast %29 : vector<1x96xf32> to vector<32x96xf32>
    %31 = arith.addf %27, %30 : vector<32x96xf32>
    %32 = vector.extract_strided_slice %31 {offsets = [0, 0], sizes = [32, 32], strides = [1, 1]} : vector<32x96xf32> to vector<32x32xf32>
    %33 = vector.extract_strided_slice %31 {offsets = [0, 32], sizes = [32, 32], strides = [1, 1]} : vector<32x96xf32> to vector<32x32xf32>
    %34 = vector.extract_strided_slice %31 {offsets = [0, 64], sizes = [32, 32], strides = [1, 1]} : vector<32x96xf32> to vector<32x32xf32>
    %35 = vector.extract_strided_slice %32 {offsets = [0, 0], sizes = [32, 8], strides = [1, 1]} : vector<32x32xf32> to vector<32x8xf32>
    %36 = vector.shape_cast %35 : vector<32x8xf32> to vector<4x8x8xf32>
    %37 = vector.extract_strided_slice %33 {offsets = [0, 0], sizes = [32, 8], strides = [1, 1]} : vector<32x32xf32> to vector<32x8xf32>
    %38 = vector.shape_cast %37 : vector<32x8xf32> to vector<4x8x8xf32>
    %39 = vector.extract_strided_slice %34 {offsets = [0, 0], sizes = [32, 8], strides = [1, 1]} : vector<32x32xf32> to vector<32x8xf32>
    %40 = vector.shape_cast %39 : vector<32x8xf32> to vector<4x8x8xf32>
    "tpu.trace_start"() <{level = 10 : i32, message = "bqd,bkd->bqk"}> : () -> ()
    %cst_18 = arith.constant dense<0.000000e+00> : vector<4x8x8xf32>
    %41 = tpu.matmul %36, %38, %cst_18 {dimension_numbers = #tpu.dot_dimension_numbers<[2], [2], [1], [1], [0, 0, 0, 1, 1, 1], [0], [0]>} : vector<4x8x8xf32>, vector<4x8x8xf32>, vector<4x8x8xf32> -> vector<4x8x8xf32>
    "tpu.trace_stop"() : () -> ()
    %cst_19 = arith.constant dense<0xFF800000> : vector<4x8xf32>
    %42 = vector.multi_reduction <maximumf>, %41, %cst_19 [2] : vector<4x8x8xf32> to vector<4x8xf32>
    %43 = vector.shape_cast %42 : vector<4x8xf32> to vector<4x8x1xf32>
    %44 = vector.broadcast %43 : vector<4x8x1xf32> to vector<4x8x8xf32>
    %45 = arith.subf %41, %44 : vector<4x8x8xf32>
    %46 = math.exp %45 : vector<4x8x8xf32>
    %cst_20 = arith.constant dense<0.000000e+00> : vector<4x8xf32>
    %47 = vector.multi_reduction <add>, %46, %cst_20 [2] : vector<4x8x8xf32> to vector<4x8xf32>
    %48 = vector.shape_cast %47 : vector<4x8xf32> to vector<4x8x1xf32>
    %49 = vector.broadcast %48 : vector<4x8x1xf32> to vector<4x8x8xf32>
    %50 = arith.divf %46, %49 : vector<4x8x8xf32>
    "tpu.trace_start"() <{level = 10 : i32, message = "bqk,bkd->bqd"}> : () -> ()
    %cst_21 = arith.constant dense<0.000000e+00> : vector<4x8x8xf32>
    %51 = tpu.matmul %50, %40, %cst_21 {dimension_numbers = #tpu.dot_dimension_numbers<[2], [1], [1], [2], [0, 0, 0, 1, 1, 2], [0], [0]>} : vector<4x8x8xf32>, vector<4x8x8xf32>, vector<4x8x8xf32> -> vector<4x8x8xf32>
    "tpu.trace_stop"() : () -> ()
    %52 = vector.shape_cast %51 : vector<4x8x8xf32> to vector<32x8xf32>
    %53 = vector.extract_strided_slice %32 {offsets = [0, 8], sizes = [32, 8], strides = [1, 1]} : vector<32x32xf32> to vector<32x8xf32>
    %54 = vector.shape_cast %53 : vector<32x8xf32> to vector<4x8x8xf32>
    %55 = vector.extract_strided_slice %33 {offsets = [0, 8], sizes = [32, 8], strides = [1, 1]} : vector<32x32xf32> to vector<32x8xf32>
    %56 = vector.shape_cast %55 : vector<32x8xf32> to vector<4x8x8xf32>
    %57 = vector.extract_strided_slice %34 {offsets = [0, 8], sizes = [32, 8], strides = [1, 1]} : vector<32x32xf32> to vector<32x8xf32>
    %58 = vector.shape_cast %57 : vector<32x8xf32> to vector<4x8x8xf32>
    "tpu.trace_start"() <{level = 10 : i32, message = "bqd,bkd->bqk"}> : () -> ()
    %cst_22 = arith.constant dense<0.000000e+00> : vector<4x8x8xf32>
    %59 = tpu.matmul %54, %56, %cst_22 {dimension_numbers = #tpu.dot_dimension_numbers<[2], [2], [1], [1], [0, 0, 0, 1, 1, 1], [0], [0]>} : vector<4x8x8xf32>, vector<4x8x8xf32>, vector<4x8x8xf32> -> vector<4x8x8xf32>
    "tpu.trace_stop"() : () -> ()
    %cst_23 = arith.constant dense<0xFF800000> : vector<4x8xf32>
    %60 = vector.multi_reduction <maximumf>, %59, %cst_23 [2] : vector<4x8x8xf32> to vector<4x8xf32>
    %61 = vector.shape_cast %60 : vector<4x8xf32> to vector<4x8x1xf32>
    %62 = vector.broadcast %61 : vector<4x8x1xf32> to vector<4x8x8xf32>
    %63 = arith.subf %59, %62 : vector<4x8x8xf32>
    %64 = math.exp %63 : vector<4x8x8xf32>
    %cst_24 = arith.constant dense<0.000000e+00> : vector<4x8xf32>
    %65 = vector.multi_reduction <add>, %64, %cst_24 [2] : vector<4x8x8xf32> to vector<4x8xf32>
    %66 = vector.shape_cast %65 : vector<4x8xf32> to vector<4x8x1xf32>
    %67 = vector.broadcast %66 : vector<4x8x1xf32> to vector<4x8x8xf32>
    %68 = arith.divf %64, %67 : vector<4x8x8xf32>
    "tpu.trace_start"() <{level = 10 : i32, message = "bqk,bkd->bqd"}> : () -> ()
    %cst_25 = arith.constant dense<0.000000e+00> : vector<4x8x8xf32>
    %69 = tpu.matmul %68, %58, %cst_25 {dimension_numbers = #tpu.dot_dimension_numbers<[2], [1], [1], [2], [0, 0, 0, 1, 1, 2], [0], [0]>} : vector<4x8x8xf32>, vector<4x8x8xf32>, vector<4x8x8xf32> -> vector<4x8x8xf32>
    "tpu.trace_stop"() : () -> ()
    %70 = vector.shape_cast %69 : vector<4x8x8xf32> to vector<32x8xf32>
    %71 = vector.extract_strided_slice %32 {offsets = [0, 16], sizes = [32, 8], strides = [1, 1]} : vector<32x32xf32> to vector<32x8xf32>
    %72 = vector.shape_cast %71 : vector<32x8xf32> to vector<4x8x8xf32>
    %73 = vector.extract_strided_slice %33 {offsets = [0, 16], sizes = [32, 8], strides = [1, 1]} : vector<32x32xf32> to vector<32x8xf32>
    %74 = vector.shape_cast %73 : vector<32x8xf32> to vector<4x8x8xf32>
    %75 = vector.extract_strided_slice %34 {offsets = [0, 16], sizes = [32, 8], strides = [1, 1]} : vector<32x32xf32> to vector<32x8xf32>
    %76 = vector.shape_cast %75 : vector<32x8xf32> to vector<4x8x8xf32>
    "tpu.trace_start"() <{level = 10 : i32, message = "bqd,bkd->bqk"}> : () -> ()
    %cst_26 = arith.constant dense<0.000000e+00> : vector<4x8x8xf32>
    %77 = tpu.matmul %72, %74, %cst_26 {dimension_numbers = #tpu.dot_dimension_numbers<[2], [2], [1], [1], [0, 0, 0, 1, 1, 1], [0], [0]>} : vector<4x8x8xf32>, vector<4x8x8xf32>, vector<4x8x8xf32> -> vector<4x8x8xf32>
    "tpu.trace_stop"() : () -> ()
    %cst_27 = arith.constant dense<0xFF800000> : vector<4x8xf32>
    %78 = vector.multi_reduction <maximumf>, %77, %cst_27 [2] : vector<4x8x8xf32> to vector<4x8xf32>
    %79 = vector.shape_cast %78 : vector<4x8xf32> to vector<4x8x1xf32>
    %80 = vector.broadcast %79 : vector<4x8x1xf32> to vector<4x8x8xf32>
    %81 = arith.subf %77, %80 : vector<4x8x8xf32>
    %82 = math.exp %81 : vector<4x8x8xf32>
    %cst_28 = arith.constant dense<0.000000e+00> : vector<4x8xf32>
    %83 = vector.multi_reduction <add>, %82, %cst_28 [2] : vector<4x8x8xf32> to vector<4x8xf32>
    %84 = vector.shape_cast %83 : vector<4x8xf32> to vector<4x8x1xf32>
    %85 = vector.broadcast %84 : vector<4x8x1xf32> to vector<4x8x8xf32>
    %86 = arith.divf %82, %85 : vector<4x8x8xf32>
    "tpu.trace_start"() <{level = 10 : i32, message = "bqk,bkd->bqd"}> : () -> ()
    %cst_29 = arith.constant dense<0.000000e+00> : vector<4x8x8xf32>
    %87 = tpu.matmul %86, %76, %cst_29 {dimension_numbers = #tpu.dot_dimension_numbers<[2], [1], [1], [2], [0, 0, 0, 1, 1, 2], [0], [0]>} : vector<4x8x8xf32>, vector<4x8x8xf32>, vector<4x8x8xf32> -> vector<4x8x8xf32>
    "tpu.trace_stop"() : () -> ()
    %88 = vector.shape_cast %87 : vector<4x8x8xf32> to vector<32x8xf32>
    %89 = vector.extract_strided_slice %32 {offsets = [0, 24], sizes = [32, 8], strides = [1, 1]} : vector<32x32xf32> to vector<32x8xf32>
    %90 = vector.shape_cast %89 : vector<32x8xf32> to vector<4x8x8xf32>
    %91 = vector.extract_strided_slice %33 {offsets = [0, 24], sizes = [32, 8], strides = [1, 1]} : vector<32x32xf32> to vector<32x8xf32>
    %92 = vector.shape_cast %91 : vector<32x8xf32> to vector<4x8x8xf32>
    %93 = vector.extract_strided_slice %34 {offsets = [0, 24], sizes = [32, 8], strides = [1, 1]} : vector<32x32xf32> to vector<32x8xf32>
    %94 = vector.shape_cast %93 : vector<32x8xf32> to vector<4x8x8xf32>
    "tpu.trace_start"() <{level = 10 : i32, message = "bqd,bkd->bqk"}> : () -> ()
    %cst_30 = arith.constant dense<0.000000e+00> : vector<4x8x8xf32>
    %95 = tpu.matmul %90, %92, %cst_30 {dimension_numbers = #tpu.dot_dimension_numbers<[2], [2], [1], [1], [0, 0, 0, 1, 1, 1], [0], [0]>} : vector<4x8x8xf32>, vector<4x8x8xf32>, vector<4x8x8xf32> -> vector<4x8x8xf32>
    "tpu.trace_stop"() : () -> ()
    %cst_31 = arith.constant dense<0xFF800000> : vector<4x8xf32>
    %96 = vector.multi_reduction <maximumf>, %95, %cst_31 [2] : vector<4x8x8xf32> to vector<4x8xf32>
    %97 = vector.shape_cast %96 : vector<4x8xf32> to vector<4x8x1xf32>
    %98 = vector.broadcast %97 : vector<4x8x1xf32> to vector<4x8x8xf32>
    %99 = arith.subf %95, %98 : vector<4x8x8xf32>
    %100 = math.exp %99 : vector<4x8x8xf32>
    %cst_32 = arith.constant dense<0.000000e+00> : vector<4x8xf32>
    %101 = vector.multi_reduction <add>, %100, %cst_32 [2] : vector<4x8x8xf32> to vector<4x8xf32>
    %102 = vector.shape_cast %101 : vector<4x8xf32> to vector<4x8x1xf32>
    %103 = vector.broadcast %102 : vector<4x8x1xf32> to vector<4x8x8xf32>
    %104 = arith.divf %100, %103 : vector<4x8x8xf32>
    "tpu.trace_start"() <{level = 10 : i32, message = "bqk,bkd->bqd"}> : () -> ()
    %cst_33 = arith.constant dense<0.000000e+00> : vector<4x8x8xf32>
    %105 = tpu.matmul %104, %94, %cst_33 {dimension_numbers = #tpu.dot_dimension_numbers<[2], [1], [1], [2], [0, 0, 0, 1, 1, 2], [0], [0]>} : vector<4x8x8xf32>, vector<4x8x8xf32>, vector<4x8x8xf32> -> vector<4x8x8xf32>
    "tpu.trace_stop"() : () -> ()
    %106 = vector.shape_cast %105 : vector<4x8x8xf32> to vector<32x8xf32>
    %107 = tpu.concatenate %52, %70, %88, %106 in 1 : vector<32x8xf32>, vector<32x8xf32>, vector<32x8xf32>, vector<32x8xf32> -> vector<32x32xf32>
    %c0_34 = arith.constant 0 : index
    %c0_35 = arith.constant 0 : index
    %c0_36 = arith.constant 0 : index
    %108 = vector.load %arg6[%c0_34, %c0_35, %c0_36] : memref<2x32x32xf32, #tpu.memory_space<vmem>>, vector<1x32x32xf32>
    %109 = vector.shape_cast %108 : vector<1x32x32xf32> to vector<32x32xf32>
    %cst_37 = arith.constant dense<0.000000e+00> : vector<32x32xf32>
    %110 = tpu.matmul %107, %109, %cst_37 {dimension_numbers = #tpu.dot_dimension_numbers<[1], [0], [0], [1], [0, 0, 1, 1], [], []>} : vector<32x32xf32>, vector<32x32xf32>, vector<32x32xf32> -> vector<32x32xf32>
    %c0_38 = arith.constant 0 : index
    %c0_39 = arith.constant 0 : index
    %c0_40 = arith.constant 0 : index
    %111 = vector.load %arg7[%c0_38, %c0_39, %c0_40] : memref<2x1x32xf32, #tpu.memory_space<vmem>>, vector<1x1x32xf32>
    %112 = vector.shape_cast %111 : vector<1x1x32xf32> to vector<1x32xf32>
    %113 = vector.broadcast %112 : vector<1x32xf32> to vector<32x32xf32>
    %114 = arith.addf %110, %113 : vector<32x32xf32>
    %115 = arith.addf %114, %24 : vector<32x32xf32>
    %c0_41 = arith.constant 0 : index
    %c0_42 = arith.constant 0 : index
    %c0_43 = arith.constant 0 : index
    %116 = vector.load %arg8[%c0_41, %c0_42, %c0_43] : memref<2x1x32xf32, #tpu.memory_space<vmem>>, vector<1x1x32xf32>
    %117 = vector.shape_cast %116 : vector<1x1x32xf32> to vector<1x32xf32>
    %c0_44 = arith.constant 0 : index
    %c0_45 = arith.constant 0 : index
    %c0_46 = arith.constant 0 : index
    %118 = vector.load %arg9[%c0_44, %c0_45, %c0_46] : memref<2x1x32xf32, #tpu.memory_space<vmem>>, vector<1x1x32xf32>
    %119 = vector.shape_cast %118 : vector<1x1x32xf32> to vector<1x32xf32>
    %cst_47 = arith.constant dense<0.000000e+00> : vector<32xf32>
    %120 = vector.multi_reduction <add>, %115, %cst_47 [1] : vector<32x32xf32> to vector<32xf32>
    %121 = vector.shape_cast %120 : vector<32xf32> to vector<32x1xf32>
    %cst_48 = arith.constant 3.200000e+01 : f32
    %122 = vector.broadcast %cst_48 : f32 to vector<32x1xf32>
    %123 = arith.divf %121, %122 : vector<32x1xf32>
    %124 = vector.broadcast %123 : vector<32x1xf32> to vector<32x32xf32>
    %125 = arith.subf %115, %124 : vector<32x32xf32>
    %126 = arith.mulf %125, %125 : vector<32x32xf32>
    %cst_49 = arith.constant dense<0.000000e+00> : vector<32xf32>
    %127 = vector.multi_reduction <add>, %126, %cst_49 [1] : vector<32x32xf32> to vector<32xf32>
    %128 = vector.shape_cast %127 : vector<32xf32> to vector<32x1xf32>
    %cst_50 = arith.constant 3.200000e+01 : f32
    %129 = vector.broadcast %cst_50 : f32 to vector<32x1xf32>
    %130 = arith.divf %128, %129 : vector<32x1xf32>
    %cst_51 = arith.constant 9.99999996E-13 : f32
    %131 = vector.broadcast %cst_51 : f32 to vector<32x1xf32>
    %132 = arith.addf %130, %131 : vector<32x1xf32>
    %133 = math.rsqrt %132 : vector<32x1xf32>
    %134 = vector.broadcast %133 : vector<32x1xf32> to vector<32x32xf32>
    %135 = arith.mulf %125, %134 : vector<32x32xf32>
    %136 = vector.broadcast %117 : vector<1x32xf32> to vector<32x32xf32>
    %137 = arith.mulf %135, %136 : vector<32x32xf32>
    %138 = vector.broadcast %119 : vector<1x32xf32> to vector<32x32xf32>
    %139 = arith.addf %137, %138 : vector<32x32xf32>
    %c0_52 = arith.constant 0 : index
    %c0_53 = arith.constant 0 : index
    %c0_54 = arith.constant 0 : index
    %140 = vector.load %arg10[%c0_52, %c0_53, %c0_54] : memref<2x32x64xf32, #tpu.memory_space<vmem>>, vector<1x32x64xf32>
    %141 = vector.shape_cast %140 : vector<1x32x64xf32> to vector<32x64xf32>
    %cst_55 = arith.constant dense<0.000000e+00> : vector<32x64xf32>
    %142 = tpu.matmul %139, %141, %cst_55 {dimension_numbers = #tpu.dot_dimension_numbers<[1], [0], [0], [1], [0, 0, 1, 1], [], []>} : vector<32x32xf32>, vector<32x64xf32>, vector<32x64xf32> -> vector<32x64xf32>
    %c0_56 = arith.constant 0 : index
    %c0_57 = arith.constant 0 : index
    %c0_58 = arith.constant 0 : index
    %143 = vector.load %arg11[%c0_56, %c0_57, %c0_58] : memref<2x1x64xf32, #tpu.memory_space<vmem>>, vector<1x1x64xf32>
    %144 = vector.shape_cast %143 : vector<1x1x64xf32> to vector<1x64xf32>
    %145 = vector.broadcast %144 : vector<1x64xf32> to vector<32x64xf32>
    %146 = arith.addf %142, %145 : vector<32x64xf32>
    %cst_59 = arith.constant 5.000000e-01 : f32
    %147 = vector.broadcast %cst_59 : f32 to vector<32x64xf32>
    %148 = arith.mulf %147, %146 : vector<32x64xf32>
    %cst_60 = arith.constant 4.471500e-02 : f32
    %149 = vector.broadcast %cst_60 : f32 to vector<32x64xf32>
    %150 = arith.mulf %149, %146 : vector<32x64xf32>
    %151 = arith.mulf %150, %146 : vector<32x64xf32>
    %152 = arith.mulf %151, %146 : vector<32x64xf32>
    %153 = arith.addf %146, %152 : vector<32x64xf32>
    %cst_61 = arith.constant 0.797884583 : f32
    %154 = vector.broadcast %cst_61 : f32 to vector<32x64xf32>
    %155 = arith.mulf %154, %153 : vector<32x64xf32>
    %156 = math.tanh %155 : vector<32x64xf32>
    %cst_62 = arith.constant 1.000000e+00 : f32
    %157 = vector.broadcast %cst_62 : f32 to vector<32x64xf32>
    %158 = arith.addf %157, %156 : vector<32x64xf32>
    %159 = arith.mulf %148, %158 : vector<32x64xf32>
    %c0_63 = arith.constant 0 : index
    %c0_64 = arith.constant 0 : index
    %c0_65 = arith.constant 0 : index
    %160 = vector.load %arg12[%c0_63, %c0_64, %c0_65] : memref<2x64x32xf32, #tpu.memory_space<vmem>>, vector<1x64x32xf32>
    %161 = vector.shape_cast %160 : vector<1x64x32xf32> to vector<64x32xf32>
    %cst_66 = arith.constant dense<0.000000e+00> : vector<32x32xf32>
    %162 = tpu.matmul %159, %161, %cst_66 {dimension_numbers = #tpu.dot_dimension_numbers<[1], [0], [0], [1], [0, 0, 1, 1], [], []>} : vector<32x64xf32>, vector<64x32xf32>, vector<32x32xf32> -> vector<32x32xf32>
    %c0_67 = arith.constant 0 : index
    %c0_68 = arith.constant 0 : index
    %c0_69 = arith.constant 0 : index
    %163 = vector.load %arg13[%c0_67, %c0_68, %c0_69] : memref<2x1x32xf32, #tpu.memory_space<vmem>>, vector<1x1x32xf32>
    %164 = vector.shape_cast %163 : vector<1x1x32xf32> to vector<1x32xf32>
    %165 = vector.broadcast %164 : vector<1x32xf32> to vector<32x32xf32>
    %166 = arith.addf %162, %165 : vector<32x32xf32>
    %167 = arith.addf %166, %139 : vector<32x32xf32>
    %c0_70 = arith.constant 0 : index
    %c0_71 = arith.constant 0 : index
    %c0_72 = arith.constant 0 : index
    %168 = vector.load %arg14[%c0_70, %c0_71, %c0_72] : memref<2x1x32xf32, #tpu.memory_space<vmem>>, vector<1x1x32xf32>
    %169 = vector.shape_cast %168 : vector<1x1x32xf32> to vector<1x32xf32>
    %c0_73 = arith.constant 0 : index
    %c0_74 = arith.constant 0 : index
    %c0_75 = arith.constant 0 : index
    %170 = vector.load %arg15[%c0_73, %c0_74, %c0_75] : memref<2x1x32xf32, #tpu.memory_space<vmem>>, vector<1x1x32xf32>
    %171 = vector.shape_cast %170 : vector<1x1x32xf32> to vector<1x32xf32>
    %cst_76 = arith.constant dense<0.000000e+00> : vector<32xf32>
    %172 = vector.multi_reduction <add>, %167, %cst_76 [1] : vector<32x32xf32> to vector<32xf32>
    %173 = vector.shape_cast %172 : vector<32xf32> to vector<32x1xf32>
    %cst_77 = arith.constant 3.200000e+01 : f32
    %174 = vector.broadcast %cst_77 : f32 to vector<32x1xf32>
    %175 = arith.divf %173, %174 : vector<32x1xf32>
    %176 = vector.broadcast %175 : vector<32x1xf32> to vector<32x32xf32>
    %177 = arith.subf %167, %176 : vector<32x32xf32>
    %178 = arith.mulf %177, %177 : vector<32x32xf32>
    %cst_78 = arith.constant dense<0.000000e+00> : vector<32xf32>
    %179 = vector.multi_reduction <add>, %178, %cst_78 [1] : vector<32x32xf32> to vector<32xf32>
    %180 = vector.shape_cast %179 : vector<32xf32> to vector<32x1xf32>
    %cst_79 = arith.constant 3.200000e+01 : f32
    %181 = vector.broadcast %cst_79 : f32 to vector<32x1xf32>
    %182 = arith.divf %180, %181 : vector<32x1xf32>
    %cst_80 = arith.constant 9.99999996E-13 : f32
    %183 = vector.broadcast %cst_80 : f32 to vector<32x1xf32>
    %184 = arith.addf %182, %183 : vector<32x1xf32>
    %185 = math.rsqrt %184 : vector<32x1xf32>
    %186 = vector.broadcast %185 : vector<32x1xf32> to vector<32x32xf32>
    %187 = arith.mulf %177, %186 : vector<32x32xf32>
    %188 = vector.broadcast %169 : vector<1x32xf32> to vector<32x32xf32>
    %189 = arith.mulf %187, %188 : vector<32x32xf32>
    %190 = vector.broadcast %171 : vector<1x32xf32> to vector<32x32xf32>
    %191 = arith.addf %189, %190 : vector<32x32xf32>
    %c1 = arith.constant 1 : index
    %c0_81 = arith.constant 0 : index
    %c0_82 = arith.constant 0 : index
    %192 = vector.load %arg4[%c1, %c0_81, %c0_82] : memref<2x32x96xf32, #tpu.memory_space<vmem>>, vector<1x32x96xf32>
    %193 = vector.shape_cast %192 : vector<1x32x96xf32> to vector<32x96xf32>
    %cst_83 = arith.constant dense<0.000000e+00> : vector<32x96xf32>
    %194 = tpu.matmul %191, %193, %cst_83 {dimension_numbers = #tpu.dot_dimension_numbers<[1], [0], [0], [1], [0, 0, 1, 1], [], []>} : vector<32x32xf32>, vector<32x96xf32>, vector<32x96xf32> -> vector<32x96xf32>
    %c1_84 = arith.constant 1 : index
    %c0_85 = arith.constant 0 : index
    %c0_86 = arith.constant 0 : index
    %195 = vector.load %arg5[%c1_84, %c0_85, %c0_86] : memref<2x1x96xf32, #tpu.memory_space<vmem>>, vector<1x1x96xf32>
    %196 = vector.shape_cast %195 : vector<1x1x96xf32> to vector<1x96xf32>
    %197 = vector.broadcast %196 : vector<1x96xf32> to vector<32x96xf32>
    %198 = arith.addf %194, %197 : vector<32x96xf32>
    %199 = vector.extract_strided_slice %198 {offsets = [0, 0], sizes = [32, 32], strides = [1, 1]} : vector<32x96xf32> to vector<32x32xf32>
    %200 = vector.extract_strided_slice %198 {offsets = [0, 32], sizes = [32, 32], strides = [1, 1]} : vector<32x96xf32> to vector<32x32xf32>
    %201 = vector.extract_strided_slice %198 {offsets = [0, 64], sizes = [32, 32], strides = [1, 1]} : vector<32x96xf32> to vector<32x32xf32>
    %202 = vector.extract_strided_slice %199 {offsets = [0, 0], sizes = [32, 8], strides = [1, 1]} : vector<32x32xf32> to vector<32x8xf32>
    %203 = vector.shape_cast %202 : vector<32x8xf32> to vector<4x8x8xf32>
    %204 = vector.extract_strided_slice %200 {offsets = [0, 0], sizes = [32, 8], strides = [1, 1]} : vector<32x32xf32> to vector<32x8xf32>
    %205 = vector.shape_cast %204 : vector<32x8xf32> to vector<4x8x8xf32>
    %206 = vector.extract_strided_slice %201 {offsets = [0, 0], sizes = [32, 8], strides = [1, 1]} : vector<32x32xf32> to vector<32x8xf32>
    %207 = vector.shape_cast %206 : vector<32x8xf32> to vector<4x8x8xf32>
    "tpu.trace_start"() <{level = 10 : i32, message = "bqd,bkd->bqk"}> : () -> ()
    %cst_87 = arith.constant dense<0.000000e+00> : vector<4x8x8xf32>
    %208 = tpu.matmul %203, %205, %cst_87 {dimension_numbers = #tpu.dot_dimension_numbers<[2], [2], [1], [1], [0, 0, 0, 1, 1, 1], [0], [0]>} : vector<4x8x8xf32>, vector<4x8x8xf32>, vector<4x8x8xf32> -> vector<4x8x8xf32>
    "tpu.trace_stop"() : () -> ()
    %cst_88 = arith.constant dense<0xFF800000> : vector<4x8xf32>
    %209 = vector.multi_reduction <maximumf>, %208, %cst_88 [2] : vector<4x8x8xf32> to vector<4x8xf32>
    %210 = vector.shape_cast %209 : vector<4x8xf32> to vector<4x8x1xf32>
    %211 = vector.broadcast %210 : vector<4x8x1xf32> to vector<4x8x8xf32>
    %212 = arith.subf %208, %211 : vector<4x8x8xf32>
    %213 = math.exp %212 : vector<4x8x8xf32>
    %cst_89 = arith.constant dense<0.000000e+00> : vector<4x8xf32>
    %214 = vector.multi_reduction <add>, %213, %cst_89 [2] : vector<4x8x8xf32> to vector<4x8xf32>
    %215 = vector.shape_cast %214 : vector<4x8xf32> to vector<4x8x1xf32>
    %216 = vector.broadcast %215 : vector<4x8x1xf32> to vector<4x8x8xf32>
    %217 = arith.divf %213, %216 : vector<4x8x8xf32>
    "tpu.trace_start"() <{level = 10 : i32, message = "bqk,bkd->bqd"}> : () -> ()
    %cst_90 = arith.constant dense<0.000000e+00> : vector<4x8x8xf32>
    %218 = tpu.matmul %217, %207, %cst_90 {dimension_numbers = #tpu.dot_dimension_numbers<[2], [1], [1], [2], [0, 0, 0, 1, 1, 2], [0], [0]>} : vector<4x8x8xf32>, vector<4x8x8xf32>, vector<4x8x8xf32> -> vector<4x8x8xf32>
    "tpu.trace_stop"() : () -> ()
    %219 = vector.shape_cast %218 : vector<4x8x8xf32> to vector<32x8xf32>
    %220 = vector.extract_strided_slice %199 {offsets = [0, 8], sizes = [32, 8], strides = [1, 1]} : vector<32x32xf32> to vector<32x8xf32>
    %221 = vector.shape_cast %220 : vector<32x8xf32> to vector<4x8x8xf32>
    %222 = vector.extract_strided_slice %200 {offsets = [0, 8], sizes = [32, 8], strides = [1, 1]} : vector<32x32xf32> to vector<32x8xf32>
    %223 = vector.shape_cast %222 : vector<32x8xf32> to vector<4x8x8xf32>
    %224 = vector.extract_strided_slice %201 {offsets = [0, 8], sizes = [32, 8], strides = [1, 1]} : vector<32x32xf32> to vector<32x8xf32>
    %225 = vector.shape_cast %224 : vector<32x8xf32> to vector<4x8x8xf32>
    "tpu.trace_start"() <{level = 10 : i32, message = "bqd,bkd->bqk"}> : () -> ()
    %cst_91 = arith.constant dense<0.000000e+00> : vector<4x8x8xf32>
    %226 = tpu.matmul %221, %223, %cst_91 {dimension_numbers = #tpu.dot_dimension_numbers<[2], [2], [1], [1], [0, 0, 0, 1, 1, 1], [0], [0]>} : vector<4x8x8xf32>, vector<4x8x8xf32>, vector<4x8x8xf32> -> vector<4x8x8xf32>
    "tpu.trace_stop"() : () -> ()
    %cst_92 = arith.constant dense<0xFF800000> : vector<4x8xf32>
    %227 = vector.multi_reduction <maximumf>, %226, %cst_92 [2] : vector<4x8x8xf32> to vector<4x8xf32>
    %228 = vector.shape_cast %227 : vector<4x8xf32> to vector<4x8x1xf32>
    %229 = vector.broadcast %228 : vector<4x8x1xf32> to vector<4x8x8xf32>
    %230 = arith.subf %226, %229 : vector<4x8x8xf32>
    %231 = math.exp %230 : vector<4x8x8xf32>
    %cst_93 = arith.constant dense<0.000000e+00> : vector<4x8xf32>
    %232 = vector.multi_reduction <add>, %231, %cst_93 [2] : vector<4x8x8xf32> to vector<4x8xf32>
    %233 = vector.shape_cast %232 : vector<4x8xf32> to vector<4x8x1xf32>
    %234 = vector.broadcast %233 : vector<4x8x1xf32> to vector<4x8x8xf32>
    %235 = arith.divf %231, %234 : vector<4x8x8xf32>
    "tpu.trace_start"() <{level = 10 : i32, message = "bqk,bkd->bqd"}> : () -> ()
    %cst_94 = arith.constant dense<0.000000e+00> : vector<4x8x8xf32>
    %236 = tpu.matmul %235, %225, %cst_94 {dimension_numbers = #tpu.dot_dimension_numbers<[2], [1], [1], [2], [0, 0, 0, 1, 1, 2], [0], [0]>} : vector<4x8x8xf32>, vector<4x8x8xf32>, vector<4x8x8xf32> -> vector<4x8x8xf32>
    "tpu.trace_stop"() : () -> ()
    %237 = vector.shape_cast %236 : vector<4x8x8xf32> to vector<32x8xf32>
    %238 = vector.extract_strided_slice %199 {offsets = [0, 16], sizes = [32, 8], strides = [1, 1]} : vector<32x32xf32> to vector<32x8xf32>
    %239 = vector.shape_cast %238 : vector<32x8xf32> to vector<4x8x8xf32>
    %240 = vector.extract_strided_slice %200 {offsets = [0, 16], sizes = [32, 8], strides = [1, 1]} : vector<32x32xf32> to vector<32x8xf32>
    %241 = vector.shape_cast %240 : vector<32x8xf32> to vector<4x8x8xf32>
    %242 = vector.extract_strided_slice %201 {offsets = [0, 16], sizes = [32, 8], strides = [1, 1]} : vector<32x32xf32> to vector<32x8xf32>
    %243 = vector.shape_cast %242 : vector<32x8xf32> to vector<4x8x8xf32>
    "tpu.trace_start"() <{level = 10 : i32, message = "bqd,bkd->bqk"}> : () -> ()
    %cst_95 = arith.constant dense<0.000000e+00> : vector<4x8x8xf32>
    %244 = tpu.matmul %239, %241, %cst_95 {dimension_numbers = #tpu.dot_dimension_numbers<[2], [2], [1], [1], [0, 0, 0, 1, 1, 1], [0], [0]>} : vector<4x8x8xf32>, vector<4x8x8xf32>, vector<4x8x8xf32> -> vector<4x8x8xf32>
    "tpu.trace_stop"() : () -> ()
    %cst_96 = arith.constant dense<0xFF800000> : vector<4x8xf32>
    %245 = vector.multi_reduction <maximumf>, %244, %cst_96 [2] : vector<4x8x8xf32> to vector<4x8xf32>
    %246 = vector.shape_cast %245 : vector<4x8xf32> to vector<4x8x1xf32>
    %247 = vector.broadcast %246 : vector<4x8x1xf32> to vector<4x8x8xf32>
    %248 = arith.subf %244, %247 : vector<4x8x8xf32>
    %249 = math.exp %248 : vector<4x8x8xf32>
    %cst_97 = arith.constant dense<0.000000e+00> : vector<4x8xf32>
    %250 = vector.multi_reduction <add>, %249, %cst_97 [2] : vector<4x8x8xf32> to vector<4x8xf32>
    %251 = vector.shape_cast %250 : vector<4x8xf32> to vector<4x8x1xf32>
    %252 = vector.broadcast %251 : vector<4x8x1xf32> to vector<4x8x8xf32>
    %253 = arith.divf %249, %252 : vector<4x8x8xf32>
    "tpu.trace_start"() <{level = 10 : i32, message = "bqk,bkd->bqd"}> : () -> ()
    %cst_98 = arith.constant dense<0.000000e+00> : vector<4x8x8xf32>
    %254 = tpu.matmul %253, %243, %cst_98 {dimension_numbers = #tpu.dot_dimension_numbers<[2], [1], [1], [2], [0, 0, 0, 1, 1, 2], [0], [0]>} : vector<4x8x8xf32>, vector<4x8x8xf32>, vector<4x8x8xf32> -> vector<4x8x8xf32>
    "tpu.trace_stop"() : () -> ()
    %255 = vector.shape_cast %254 : vector<4x8x8xf32> to vector<32x8xf32>
    %256 = vector.extract_strided_slice %199 {offsets = [0, 24], sizes = [32, 8], strides = [1, 1]} : vector<32x32xf32> to vector<32x8xf32>
    %257 = vector.shape_cast %256 : vector<32x8xf32> to vector<4x8x8xf32>
    %258 = vector.extract_strided_slice %200 {offsets = [0, 24], sizes = [32, 8], strides = [1, 1]} : vector<32x32xf32> to vector<32x8xf32>
    %259 = vector.shape_cast %258 : vector<32x8xf32> to vector<4x8x8xf32>
    %260 = vector.extract_strided_slice %201 {offsets = [0, 24], sizes = [32, 8], strides = [1, 1]} : vector<32x32xf32> to vector<32x8xf32>
    %261 = vector.shape_cast %260 : vector<32x8xf32> to vector<4x8x8xf32>
    "tpu.trace_start"() <{level = 10 : i32, message = "bqd,bkd->bqk"}> : () -> ()
    %cst_99 = arith.constant dense<0.000000e+00> : vector<4x8x8xf32>
    %262 = tpu.matmul %257, %259, %cst_99 {dimension_numbers = #tpu.dot_dimension_numbers<[2], [2], [1], [1], [0, 0, 0, 1, 1, 1], [0], [0]>} : vector<4x8x8xf32>, vector<4x8x8xf32>, vector<4x8x8xf32> -> vector<4x8x8xf32>
    "tpu.trace_stop"() : () -> ()
    %cst_100 = arith.constant dense<0xFF800000> : vector<4x8xf32>
    %263 = vector.multi_reduction <maximumf>, %262, %cst_100 [2] : vector<4x8x8xf32> to vector<4x8xf32>
    %264 = vector.shape_cast %263 : vector<4x8xf32> to vector<4x8x1xf32>
    %265 = vector.broadcast %264 : vector<4x8x1xf32> to vector<4x8x8xf32>
    %266 = arith.subf %262, %265 : vector<4x8x8xf32>
    %267 = math.exp %266 : vector<4x8x8xf32>
    %cst_101 = arith.constant dense<0.000000e+00> : vector<4x8xf32>
    %268 = vector.multi_reduction <add>, %267, %cst_101 [2] : vector<4x8x8xf32> to vector<4x8xf32>
    %269 = vector.shape_cast %268 : vector<4x8xf32> to vector<4x8x1xf32>
    %270 = vector.broadcast %269 : vector<4x8x1xf32> to vector<4x8x8xf32>
    %271 = arith.divf %267, %270 : vector<4x8x8xf32>
    "tpu.trace_start"() <{level = 10 : i32, message = "bqk,bkd->bqd"}> : () -> ()
    %cst_102 = arith.constant dense<0.000000e+00> : vector<4x8x8xf32>
    %272 = tpu.matmul %271, %261, %cst_102 {dimension_numbers = #tpu.dot_dimension_numbers<[2], [1], [1], [2], [0, 0, 0, 1, 1, 2], [0], [0]>} : vector<4x8x8xf32>, vector<4x8x8xf32>, vector<4x8x8xf32> -> vector<4x8x8xf32>
    "tpu.trace_stop"() : () -> ()
    %273 = vector.shape_cast %272 : vector<4x8x8xf32> to vector<32x8xf32>
    %274 = tpu.concatenate %219, %237, %255, %273 in 1 : vector<32x8xf32>, vector<32x8xf32>, vector<32x8xf32>, vector<32x8xf32> -> vector<32x32xf32>
    %c1_103 = arith.constant 1 : index
    %c0_104 = arith.constant 0 : index
    %c0_105 = arith.constant 0 : index
    %275 = vector.load %arg6[%c1_103, %c0_104, %c0_105] : memref<2x32x32xf32, #tpu.memory_space<vmem>>, vector<1x32x32xf32>
    %276 = vector.shape_cast %275 : vector<1x32x32xf32> to vector<32x32xf32>
    %cst_106 = arith.constant dense<0.000000e+00> : vector<32x32xf32>
    %277 = tpu.matmul %274, %276, %cst_106 {dimension_numbers = #tpu.dot_dimension_numbers<[1], [0], [0], [1], [0, 0, 1, 1], [], []>} : vector<32x32xf32>, vector<32x32xf32>, vector<32x32xf32> -> vector<32x32xf32>
    %c1_107 = arith.constant 1 : index
    %c0_108 = arith.constant 0 : index
    %c0_109 = arith.constant 0 : index
    %278 = vector.load %arg7[%c1_107, %c0_108, %c0_109] : memref<2x1x32xf32, #tpu.memory_space<vmem>>, vector<1x1x32xf32>
    %279 = vector.shape_cast %278 : vector<1x1x32xf32> to vector<1x32xf32>
    %280 = vector.broadcast %279 : vector<1x32xf32> to vector<32x32xf32>
    %281 = arith.addf %277, %280 : vector<32x32xf32>
    %282 = arith.addf %281, %191 : vector<32x32xf32>
    %c1_110 = arith.constant 1 : index
    %c0_111 = arith.constant 0 : index
    %c0_112 = arith.constant 0 : index
    %283 = vector.load %arg8[%c1_110, %c0_111, %c0_112] : memref<2x1x32xf32, #tpu.memory_space<vmem>>, vector<1x1x32xf32>
    %284 = vector.shape_cast %283 : vector<1x1x32xf32> to vector<1x32xf32>
    %c1_113 = arith.constant 1 : index
    %c0_114 = arith.constant 0 : index
    %c0_115 = arith.constant 0 : index
    %285 = vector.load %arg9[%c1_113, %c0_114, %c0_115] : memref<2x1x32xf32, #tpu.memory_space<vmem>>, vector<1x1x32xf32>
    %286 = vector.shape_cast %285 : vector<1x1x32xf32> to vector<1x32xf32>
    %cst_116 = arith.constant dense<0.000000e+00> : vector<32xf32>
    %287 = vector.multi_reduction <add>, %282, %cst_116 [1] : vector<32x32xf32> to vector<32xf32>
    %288 = vector.shape_cast %287 : vector<32xf32> to vector<32x1xf32>
    %cst_117 = arith.constant 3.200000e+01 : f32
    %289 = vector.broadcast %cst_117 : f32 to vector<32x1xf32>
    %290 = arith.divf %288, %289 : vector<32x1xf32>
    %291 = vector.broadcast %290 : vector<32x1xf32> to vector<32x32xf32>
    %292 = arith.subf %282, %291 : vector<32x32xf32>
    %293 = arith.mulf %292, %292 : vector<32x32xf32>
    %cst_118 = arith.constant dense<0.000000e+00> : vector<32xf32>
    %294 = vector.multi_reduction <add>, %293, %cst_118 [1] : vector<32x32xf32> to vector<32xf32>
    %295 = vector.shape_cast %294 : vector<32xf32> to vector<32x1xf32>
    %cst_119 = arith.constant 3.200000e+01 : f32
    %296 = vector.broadcast %cst_119 : f32 to vector<32x1xf32>
    %297 = arith.divf %295, %296 : vector<32x1xf32>
    %cst_120 = arith.constant 9.99999996E-13 : f32
    %298 = vector.broadcast %cst_120 : f32 to vector<32x1xf32>
    %299 = arith.addf %297, %298 : vector<32x1xf32>
    %300 = math.rsqrt %299 : vector<32x1xf32>
    %301 = vector.broadcast %300 : vector<32x1xf32> to vector<32x32xf32>
    %302 = arith.mulf %292, %301 : vector<32x32xf32>
    %303 = vector.broadcast %284 : vector<1x32xf32> to vector<32x32xf32>
    %304 = arith.mulf %302, %303 : vector<32x32xf32>
    %305 = vector.broadcast %286 : vector<1x32xf32> to vector<32x32xf32>
    %306 = arith.addf %304, %305 : vector<32x32xf32>
    %c1_121 = arith.constant 1 : index
    %c0_122 = arith.constant 0 : index
    %c0_123 = arith.constant 0 : index
    %307 = vector.load %arg10[%c1_121, %c0_122, %c0_123] : memref<2x32x64xf32, #tpu.memory_space<vmem>>, vector<1x32x64xf32>
    %308 = vector.shape_cast %307 : vector<1x32x64xf32> to vector<32x64xf32>
    %cst_124 = arith.constant dense<0.000000e+00> : vector<32x64xf32>
    %309 = tpu.matmul %306, %308, %cst_124 {dimension_numbers = #tpu.dot_dimension_numbers<[1], [0], [0], [1], [0, 0, 1, 1], [], []>} : vector<32x32xf32>, vector<32x64xf32>, vector<32x64xf32> -> vector<32x64xf32>
    %c1_125 = arith.constant 1 : index
    %c0_126 = arith.constant 0 : index
    %c0_127 = arith.constant 0 : index
    %310 = vector.load %arg11[%c1_125, %c0_126, %c0_127] : memref<2x1x64xf32, #tpu.memory_space<vmem>>, vector<1x1x64xf32>
    %311 = vector.shape_cast %310 : vector<1x1x64xf32> to vector<1x64xf32>
    %312 = vector.broadcast %311 : vector<1x64xf32> to vector<32x64xf32>
    %313 = arith.addf %309, %312 : vector<32x64xf32>
    %cst_128 = arith.constant 5.000000e-01 : f32
    %314 = vector.broadcast %cst_128 : f32 to vector<32x64xf32>
    %315 = arith.mulf %314, %313 : vector<32x64xf32>
    %cst_129 = arith.constant 4.471500e-02 : f32
    %316 = vector.broadcast %cst_129 : f32 to vector<32x64xf32>
    %317 = arith.mulf %316, %313 : vector<32x64xf32>
    %318 = arith.mulf %317, %313 : vector<32x64xf32>
    %319 = arith.mulf %318, %313 : vector<32x64xf32>
    %320 = arith.addf %313, %319 : vector<32x64xf32>
    %cst_130 = arith.constant 0.797884583 : f32
    %321 = vector.broadcast %cst_130 : f32 to vector<32x64xf32>
    %322 = arith.mulf %321, %320 : vector<32x64xf32>
    %323 = math.tanh %322 : vector<32x64xf32>
    %cst_131 = arith.constant 1.000000e+00 : f32
    %324 = vector.broadcast %cst_131 : f32 to vector<32x64xf32>
    %325 = arith.addf %324, %323 : vector<32x64xf32>
    %326 = arith.mulf %315, %325 : vector<32x64xf32>
    %c1_132 = arith.constant 1 : index
    %c0_133 = arith.constant 0 : index
    %c0_134 = arith.constant 0 : index
    %327 = vector.load %arg12[%c1_132, %c0_133, %c0_134] : memref<2x64x32xf32, #tpu.memory_space<vmem>>, vector<1x64x32xf32>
    %328 = vector.shape_cast %327 : vector<1x64x32xf32> to vector<64x32xf32>
    %cst_135 = arith.constant dense<0.000000e+00> : vector<32x32xf32>
    %329 = tpu.matmul %326, %328, %cst_135 {dimension_numbers = #tpu.dot_dimension_numbers<[1], [0], [0], [1], [0, 0, 1, 1], [], []>} : vector<32x64xf32>, vector<64x32xf32>, vector<32x32xf32> -> vector<32x32xf32>
    %c1_136 = arith.constant 1 : index
    %c0_137 = arith.constant 0 : index
    %c0_138 = arith.constant 0 : index
    %330 = vector.load %arg13[%c1_136, %c0_137, %c0_138] : memref<2x1x32xf32, #tpu.memory_space<vmem>>, vector<1x1x32xf32>
    %331 = vector.shape_cast %330 : vector<1x1x32xf32> to vector<1x32xf32>
    %332 = vector.broadcast %331 : vector<1x32xf32> to vector<32x32xf32>
    %333 = arith.addf %329, %332 : vector<32x32xf32>
    %334 = arith.addf %333, %306 : vector<32x32xf32>
    %c1_139 = arith.constant 1 : index
    %c0_140 = arith.constant 0 : index
    %c0_141 = arith.constant 0 : index
    %335 = vector.load %arg14[%c1_139, %c0_140, %c0_141] : memref<2x1x32xf32, #tpu.memory_space<vmem>>, vector<1x1x32xf32>
    %336 = vector.shape_cast %335 : vector<1x1x32xf32> to vector<1x32xf32>
    %c1_142 = arith.constant 1 : index
    %c0_143 = arith.constant 0 : index
    %c0_144 = arith.constant 0 : index
    %337 = vector.load %arg15[%c1_142, %c0_143, %c0_144] : memref<2x1x32xf32, #tpu.memory_space<vmem>>, vector<1x1x32xf32>
    %338 = vector.shape_cast %337 : vector<1x1x32xf32> to vector<1x32xf32>
    %cst_145 = arith.constant dense<0.000000e+00> : vector<32xf32>
    %339 = vector.multi_reduction <add>, %334, %cst_145 [1] : vector<32x32xf32> to vector<32xf32>
    %340 = vector.shape_cast %339 : vector<32xf32> to vector<32x1xf32>
    %cst_146 = arith.constant 3.200000e+01 : f32
    %341 = vector.broadcast %cst_146 : f32 to vector<32x1xf32>
    %342 = arith.divf %340, %341 : vector<32x1xf32>
    %343 = vector.broadcast %342 : vector<32x1xf32> to vector<32x32xf32>
    %344 = arith.subf %334, %343 : vector<32x32xf32>
    %345 = arith.mulf %344, %344 : vector<32x32xf32>
    %cst_147 = arith.constant dense<0.000000e+00> : vector<32xf32>
    %346 = vector.multi_reduction <add>, %345, %cst_147 [1] : vector<32x32xf32> to vector<32xf32>
    %347 = vector.shape_cast %346 : vector<32xf32> to vector<32x1xf32>
    %cst_148 = arith.constant 3.200000e+01 : f32
    %348 = vector.broadcast %cst_148 : f32 to vector<32x1xf32>
    %349 = arith.divf %347, %348 : vector<32x1xf32>
    %cst_149 = arith.constant 9.99999996E-13 : f32
    %350 = vector.broadcast %cst_149 : f32 to vector<32x1xf32>
    %351 = arith.addf %349, %350 : vector<32x1xf32>
    %352 = math.rsqrt %351 : vector<32x1xf32>
    %353 = vector.broadcast %352 : vector<32x1xf32> to vector<32x32xf32>
    %354 = arith.mulf %344, %353 : vector<32x32xf32>
    %355 = vector.broadcast %336 : vector<1x32xf32> to vector<32x32xf32>
    %356 = arith.mulf %354, %355 : vector<32x32xf32>
    %357 = vector.broadcast %338 : vector<1x32xf32> to vector<32x32xf32>
    %358 = arith.addf %356, %357 : vector<32x32xf32>
    %359 = vector.shape_cast %358 : vector<32x32xf32> to vector<4x8x32xf32>
    %360 = vector.extract_strided_slice %359 {offsets = [0, 0, 0], sizes = [4, 1, 32], strides = [1, 1, 1]} : vector<4x8x32xf32> to vector<4x1x32xf32>
    %361 = vector.shape_cast %360 : vector<4x1x32xf32> to vector<4x32xf32>
    %c0_150 = arith.constant 0 : index
    %c0_151 = arith.constant 0 : index
    %362 = vector.load %arg16[%c0_150, %c0_151] : memref<32x32xf32, #tpu.memory_space<vmem>>, vector<32x32xf32>
    %cst_152 = arith.constant dense<0.000000e+00> : vector<4x32xf32>
    %363 = tpu.matmul %361, %362, %cst_152 {dimension_numbers = #tpu.dot_dimension_numbers<[1], [0], [0], [1], [0, 0, 1, 1], [], []>} : vector<4x32xf32>, vector<32x32xf32>, vector<4x32xf32> -> vector<4x32xf32>
    %c0_153 = arith.constant 0 : index
    %c0_154 = arith.constant 0 : index
    %364 = vector.load %arg17[%c0_153, %c0_154] : memref<1x32xf32, #tpu.memory_space<vmem>>, vector<1x32xf32>
    %365 = vector.broadcast %364 : vector<1x32xf32> to vector<4x32xf32>
    %366 = arith.addf %363, %365 : vector<4x32xf32>
    %367 = math.tanh %366 : vector<4x32xf32>
    %368 = vector.extract_strided_slice %367 {offsets = [0, 0], sizes = [2, 32], strides = [1, 1]} : vector<4x32xf32> to vector<2x32xf32>
    %369 = vector.extract_strided_slice %367 {offsets = [2, 0], sizes = [2, 32], strides = [1, 1]} : vector<4x32xf32> to vector<2x32xf32>
    %c0_155 = arith.constant 0 : index
    %c0_156 = arith.constant 0 : index
    %370 = vector.load %arg18[%c0_155, %c0_156] : memref<1x32xf32, #tpu.memory_space<vmem>>, vector<1x32xf32>
    %371 = vector.broadcast %370 : vector<1x32xf32> to vector<2x32xf32>
    %372 = arith.mulf %368, %371 : vector<2x32xf32>
    %cst_157 = arith.constant dense<0.000000e+00> : vector<2xf32>
    %373 = vector.multi_reduction <add>, %372, %cst_157 [1] : vector<2x32xf32> to vector<2xf32>
    %374 = vector.shape_cast %373 : vector<2xf32> to vector<2x1xf32>
    %c0_158 = arith.constant 0 : index
    %c0_159 = arith.constant 0 : index
    %375 = vector.load %arg19[%c0_158, %c0_159] : memref<1x32xf32, #tpu.memory_space<vmem>>, vector<1x32xf32>
    %376 = vector.broadcast %375 : vector<1x32xf32> to vector<2x32xf32>
    %377 = arith.mulf %369, %376 : vector<2x32xf32>
    %cst_160 = arith.constant dense<0.000000e+00> : vector<2xf32>
    %378 = vector.multi_reduction <add>, %377, %cst_160 [1] : vector<2x32xf32> to vector<2xf32>
    %379 = vector.shape_cast %378 : vector<2xf32> to vector<2x1xf32>
    %380 = arith.addf %374, %379 : vector<2x1xf32>
    %c0_161 = arith.constant 0 : index
    %c0_162 = arith.constant 0 : index
    %381 = vector.load %arg20[%c0_161, %c0_162] : memref<1x1xf32, #tpu.memory_space<vmem>>, vector<1x1xf32>
    %382 = vector.broadcast %381 : vector<1x1xf32> to vector<2x1xf32>
    %383 = arith.addf %380, %382 : vector<2x1xf32>
    %c0_163 = arith.constant 0 : index
    %c0_164 = arith.constant 0 : index
    %384 = vector.load %arg21[%c0_163, %c0_164] : memref<2x1xf32, #tpu.memory_space<vmem>>, vector<2x1xf32>
    tpu.vector_store %arg21[%c0_163, %c0_164], %383 {strides = array<i32>} : memref<2x1xf32, #tpu.memory_space<vmem>>, vector<2x1xf32>,
    return
  }
}

</mosaic_0001>

<bundles_post_ra>
// kernel: bert_pair_forward.1
= control target key start
LH: loop header
LB: loop body
LE: loop exit
PB: predicated region body
PF: predicated region fallthrough
CT: control target
= control target key end

     0   :  { %s9421_s0 = inlined_call_operand.vmem [shape: f32[32,32], index: 0, kind: input, shape index: {}]   ;;  %s9422_s1 = inlined_call_operand.hbm [shape: f32[32,32], index: 1, kind: input, shape index: {}]   ;;  %s9423_s2 = inlined_call_operand.vmem [shape: f32[1,32], index: 2, kind: input, shape index: {}]   ;;  %s9424_s3 = inlined_call_operand.vmem [shape: f32[1,32], index: 3, kind: input, shape index: {}, may-alias: {3,17}]   ;;  %s9425_s4 = inlined_call_operand.hbm [shape: f32[2,32,96], index: 4, kind: input, shape index: {}]   ;;  %s9426_s5 = inlined_call_operand.vmem [shape: f32[2,1,96], index: 5, kind: input, shape index: {}]   ;;  %s9427_s6 = inlined_call_operand.hbm [shape: f32[2,32,32], index: 6, kind: input, shape index: {}]   ;;  %s9428_s7 = inlined_call_operand.vmem [shape: f32[2,1,32], index: 7, kind: input, shape index: {}, may-alias: {7,9,13,15}]   ;;  %s9429_s8 = inlined_call_operand.vmem [shape: f32[2,1,32], index: 8, kind: input, shape index: {}, may-alias: {8,14}]   ;;  %s9430_s9 = inlined_call_operand.vmem [shape: f32[2,1,32], index: 9, kind: input, shape index: {}, may-alias: {7,9,13,15}]   ;;  %s9431_s10 = inlined_call_operand.hbm [shape: f32[2,32,64], index: 10, kind: input, shape index: {}]   ;;  %s9432_s11 = inlined_call_operand.vmem [shape: f32[2,1,64], index: 11, kind: input, shape index: {}]   ;;  %s9433_s12 = inlined_call_operand.vmem [shape: f32[2,64,32], index: 12, kind: input, shape index: {}]   ;;  %s9434_s13 = inlined_call_operand.vmem [shape: f32[2,1,32], index: 13, kind: input, shape index: {}, may-alias: {7,9,13,15}]   ;;  %s9435_s14 = inlined_call_operand.vmem [shape: f32[2,1,32], index: 14, kind: input, shape index: {}, may-alias: {8,14}]   ;;  %s9436_s15 = inlined_call_operand.vmem [shape: f32[2,1,32], index: 15, kind: input, shape index: {}, may-alias: {7,9,13,15}]   ;;  %s9437_s16 = inlined_call_operand.hbm [shape: f32[32,32], index: 16, kind: input, shape index: {}]   ;;  %s9438_s17 = inlined_call_operand.vmem [shape: f32[1,32], index: 17, kind: input, shape index: {}, may-alias: {3,17}]   ;;  %s9439_s18 = inlined_call_operand.vmem [shape: f32[1,32], index: 18, kind: input, shape index: {}]   ;;  %s9440_s19 = inlined_call_operand.vmem [shape: f32[1,32], index: 19, kind: input, shape index: {}]   ;;  %s9441_s20 = inlined_call_operand.<no memory space> [shape: f32[1,1], index: 20, kind: input, shape index: {}]   ;;  %s9442_s21 = inlined_call_operand.vmem [shape: f32[2,1], index: 21, kind: output, shape index: {}]  }
   0x1   :  { %9453 = sst [smem:[#allocation14_spill]] %s9421_s0  ;;  %v26_v0 = vstv %s9441_s20 }
   0x2   :  { %9454 = sst [smem:[#allocation15_spill]] %s9422_s1  ;;  %27 = vst [vmem:[#allocation2] sm:$0x1] %v26_v0 }
   0x3   :  { %9455 = sst [smem:[#allocation16_spill]] %s9423_s2 }
   0x4   :  { %9456 = sst [smem:[#allocation17_spill]] %s9424_s3 }
   0x5   :  { %9457 = sst [smem:[#allocation18_spill]] %s9425_s4 }
   0x6   :  { %9458 = sst [smem:[#allocation19_spill]] %s9426_s5 }
   0x7   :  { %9459 = sst [smem:[#allocation20_spill]] %s9442_s21 }
   0x8   :  { %28 = vsyncpa [#allocation4], 0 }
   0x9   :  { %29 = vsyncpa [#allocation6], 0 }
   0xa   :  { %30 = vsyncpa [#allocation9], 0  ;;  %s8274_s26 = smov [#allocation5]   ;;  %s8275_s3 = smov [#allocation8]  }
   0xb   :  { %s54_s27 = sshll.u32 %s8274_s26, 4  ;;  %s86_s28 = sshll.u32 %s8275_s3, 4  ;;  %s55_s27 = int_to_ptr.vmem [resolvable:$true] %s54_s27  ;;  %s8410_s28 = int_to_ptr.vmem [resolvable:$true] %s86_s28 }
   0xc   :  { %s9460_s4 = sld [smem:[#allocation18_spill]] }
  0x12   :  { %s8158_s30 = scalar_lea.hbm %s9460_s4, 1024 }
  0x13   :  { %p8159_p0 = scmp.ne.s32.totalorder %s9460_s4, %s8158_s30  ;;  %p8162_p1 = scmp.lt.u32.totalorder %s8158_s30, %s9460_s4 }
  0x15   :  { %p8164_p2 = pnand %p8162_p1, %p8159_p0 }
  0x17   :  { %8167 = shalt.err (!%p8164_p2)
}
  0x18   :  { %s8168_s1 = scalar_lea.vmem %s55_s27, 1024  ;;  %p8173_p4 = scmp.lt.s32.totalorder %s55_s27, %s55_s27 }
  0x19   :  { %p8169_p3 = scmp.ne.s32.totalorder %s55_s27, %s8168_s1  ;;  %p8174_p5 = scmp.lt.s32.totalorder %s8168_s1, %s8168_s1 }
  0x1b   :  { %p8175_p6 = por %p8174_p5, %p8173_p4 }
  0x1d   :  { %p8176_p7 = pnand %p8175_p6, %p8169_p3 }
  0x1f   :  { %8179 = shalt.err (!%p8176_p7)
}
  0x20   :  { %s8276_s24 = smov 128   ;;  %s9451_s2 = smov 8  }
  0x21   :  { %60 = dma.hbm_to_vmem [thread:$0]  %s9460_s4, 1024, %s55_s27, [#allocation6], %s8276_s24, %s8276_s24, %s9451_s2  }
  0x22   :  { %s8180_s0 = scalar_lea.hbm %s9431_s10, 1024 }
  0x23   :  { %p8181_p8 = scmp.ne.s32.totalorder %s9431_s10, %s8180_s0  ;;  %p8184_p9 = scmp.lt.u32.totalorder %s8180_s0, %s9431_s10 }
  0x25   :  { %p8186_p10 = pnand %p8184_p9, %p8181_p8 }
  0x27   :  { %8189 = shalt.err (!%p8186_p10)
}
  0x28   :  { %s8190_s23 = scalar_lea.vmem %s8410_s28, 1024  ;;  %p8195_p12 = scmp.lt.s32.totalorder %s8410_s28, %s8410_s28 }
  0x29   :  { %p8191_p11 = scmp.ne.s32.totalorder %s8410_s28, %s8190_s23  ;;  %p8196_p13 = scmp.lt.s32.totalorder %s8190_s23, %s8190_s23 }
  0x2b   :  { %p8197_p0 = por %p8196_p13, %p8195_p12 }
  0x2d   :  { %p8198_p1 = pnand %p8197_p0, %p8191_p11 }
  0x2f   :  { %8201 = shalt.err (!%p8198_p1)
}
  0x30   :  { %92 = dma.hbm_to_vmem [thread:$0]  %s9431_s10, 1024, %s8410_s28, [#allocation9], %s8276_s24, %s8276_s24, %s9451_s2  }
  0x31   :  { %s8278_s1 = smov [#allocation3]   ;;  %s8279_s26 = smov [#allocation7]  }
  0x32   :  { %s38_s25 = sshll.u32 %s8278_s1, 4  ;;  %s68_s3 = sshll.u32 %s8279_s26, 4  ;;  %s39_s25 = int_to_ptr.vmem [resolvable:$true] %s38_s25  ;;  %s8447_s3 = int_to_ptr.vmem [resolvable:$true] %s68_s3 }
  0x33   :  { %s9461_s30 = sld [smem:[#allocation15_spill]] }
  0x39   :  { %s8202_s5 = scalar_lea.hbm %s9461_s30, 512 }
  0x3a   :  { %p8203_p2 = scmp.ne.s32.totalorder %s9461_s30, %s8202_s5  ;;  %p8206_p3 = scmp.lt.u32.totalorder %s8202_s5, %s9461_s30 }
  0x3c   :  { %p8208_p4 = pnand %p8206_p3, %p8203_p2 }
  0x3e   :  { %8211 = shalt.err (!%p8208_p4)
}
  0x3f   :  { %s8212_s10 = scalar_lea.vmem %s39_s25, 512  ;;  %p8217_p6 = scmp.lt.s32.totalorder %s39_s25, %s39_s25 }
  0x40   :  { %p8213_p5 = scmp.ne.s32.totalorder %s39_s25, %s8212_s10  ;;  %p8218_p7 = scmp.lt.s32.totalorder %s8212_s10, %s8212_s10 }
  0x42   :  { %p8219_p8 = por %p8218_p7, %p8217_p6 }
  0x44   :  { %p8220_p9 = pnand %p8219_p8, %p8213_p5 }
  0x46   :  { %8223 = shalt.err (!%p8220_p9)
}
  0x47   :  { %44 = dma.hbm_to_vmem [thread:$0]  %s9461_s30, 512, %s39_s25, [#allocation4], %s8276_s24, %s8276_s24, %s9451_s2  }
  0x48   :  { %s8224_s21 = scalar_lea.hbm %s9427_s6, 1024 }
  0x49   :  { %p8225_p10 = scmp.ne.s32.totalorder %s9427_s6, %s8224_s21  ;;  %p8228_p11 = scmp.lt.u32.totalorder %s8224_s21, %s9427_s6 }
  0x4b   :  { %p8230_p12 = pnand %p8228_p11, %p8225_p10 }
  0x4d   :  { %8233 = shalt.err (!%p8230_p12)
}
  0x4e   :  { %s8234_s22 = scalar_lea.vmem %s8447_s3, 1024  ;;  %p8239_p0 = scmp.lt.s32.totalorder %s8447_s3, %s8447_s3 }
  0x4f   :  { %p8235_p13 = scmp.ne.s32.totalorder %s8447_s3, %s8234_s22  ;;  %p8240_p1 = scmp.lt.s32.totalorder %s8234_s22, %s8234_s22 }
  0x51   :  { %p8241_p2 = por %p8240_p1, %p8239_p0 }
  0x53   :  { %p8242_p3 = pnand %p8241_p2, %p8235_p13 }
  0x55   :  { %8245 = shalt.err (!%p8242_p3)
}
  0x56   :  { %74 = dma.hbm_to_vmem [thread:$0]  %s9427_s6, 1024, %s8447_s3, [#allocation6], %s8276_s24, %s8276_s24, %s9451_s2  }
  0x57   :  { %s8280_s20 = smov [#allocation10]   ;;  %s8246_s27 = scalar_lea.hbm %s9437_s16, 512 }
  0x58   :  { %s108_s23 = sshll.u32 %s8280_s20, 4  ;;  %p8247_p4 = scmp.ne.s32.totalorder %s9437_s16, %s8246_s27  ;;  %s109_s23 = int_to_ptr.vmem [resolvable:$true] %s108_s23 }
  0x59   :  { %p8250_p5 = scmp.lt.u32.totalorder %s8246_s27, %s9437_s16 }
  0x5b   :  { %p8252_p6 = pnand %p8250_p5, %p8247_p4 }
  0x5d   :  { %8255 = shalt.err (!%p8252_p6)
}
  0x5e   :  { %s8256_s29 = scalar_lea.vmem %s109_s23, 512  ;;  %p8261_p8 = scmp.lt.s32.totalorder %s109_s23, %s109_s23 }
  0x5f   :  { %p8257_p7 = scmp.ne.s32.totalorder %s109_s23, %s8256_s29  ;;  %p8262_p9 = scmp.lt.s32.totalorder %s8256_s29, %s8256_s29 }
  0x61   :  { %p8263_p10 = por %p8262_p9, %p8261_p8 }
  0x63   :  { %p8264_p11 = pnand %p8263_p10, %p8257_p7 }
  0x65   :  { %8267 = shalt.err (!%p8264_p11)
}
  0x66   :  { %114 = dma.hbm_to_vmem [thread:$0]  %s9437_s16, 512, %s109_s23, [#allocation9], %s8276_s24, %s8276_s24, %s9451_s2  }
  0x67   :  { %8268 = dma.done.wait [#allocation4], 512  }
  0x68   :  { %8269 = vsyncadd [#allocation4], 4294966784 }
  0x69   :  { %8270 = dma.done.wait [#allocation6], 2048  }
  0x6a   :  { %8271 = vsyncadd [#allocation6], 4294965248 }
  0x6b   :  { %8272 = dma.done.wait [#allocation9], 1536  }
  0x6c   :  { %8273 = vsyncadd [#allocation9], 4294965760  ;;  %s9462_s22 = sld [smem:[#allocation14_spill]]  ;;  %v142_v2 = vld [vmem:[#allocation3] sm:$0xff]  ;;  %vm152_vm0 = vcmask 261120   ;;  %v144_v5 = vld [vmem:[#allocation3 + $0x10] sm:$0xff] }
  0x6d   :  { %v143_v7 = vld [vmem:[#allocation3 + $0x8] sm:$0xff]  ;;  %v145_v11 = vld [vmem:[#allocation3 + $0x18] sm:$0xff]  ;;  %v226_v37 = vld [vmem:[#allocation5] sm:$0xff]  ;;  %s9463_s27 = sld [smem:[#allocation16_spill]]  ;;  %s9464_s21 = sld [smem:[#allocation17_spill]]  ;;  %vm8282_vm1 = vmmov 0  }
  0x6e   :  { %v227_v38 = vld [vmem:[#allocation5 + $0x8] sm:$0xff]  ;;  %v228_v39 = vld [vmem:[#allocation5 + $0x10] sm:$0xff]  ;;  %v229_v41 = vld [vmem:[#allocation5 + $0x18] sm:$0xff]  ;;  %s9465_s6 = sld [smem:[#allocation19_spill]]  ;;  %s8283_s3 = smov 96   ;;  %vm337_vm2 = vcmask 64512  }
  0x6f   :  { %v7863_v40 = vpack.c.bf16 %v227_v38, %v226_v37  ;;  %v7867_v42 = vpack.c.bf16 %v229_v41, %v228_v39  ;;  %s8284_s0 = smov 64   ;;  %s8285_s5 = smov 88   ;;  %vm3023_vm3 = vcmask 130048   ;;  %vm3028_vm4 = vcmask 195584  }
  0x70   :  { %s8287_s25 = smov 56   ;;  %s8288_s30 = smov 80   ;;  %vm3378_vm5 = vcmask 523264   ;;  %vm6906_vm6 = vcmask 1041409   ;;  %vm6909_vm7 = vcmask 1042434   ;;  %vm6912_vm8 = vcmask 1043459  }
  0x71   :  { %7864 = vmatprep.subr.bf16.mxu0 %v7863_v40  ;;  %s8289_s20 = smov 112   ;;  %s8290_s16 = smov 48   ;;  %vm7007_vm9 = vcmask 257026   ;;  %vm6995_vm10 = vcmask 254976   ;;  %vm7023_vm11 = vcmask 1024  }
  0x72   :  { %v138_v1 = vld [vmem:[%s9462_s22] sm:$0xff]  ;;  %v140_v3 = vld [vmem:[%s9462_s22 + $0x10] sm:$0xff]  ;;  %v139_v6 = vld [vmem:[%s9462_s22 + $0x8] sm:$0xff]  ;;  %7866 = vmatpush3.bf16.msra.mxu0 %v7863_v40  ;;  %s8291_s24 = smov 72   ;;  %s8292_s23 = smov 104  }
  0x73   :  { %v146_v4 = vadd.f32 %v142_v2, %v138_v1  ;;  %v148_v8 = vadd.f32 %v144_v5, %v140_v3  ;;  %v147_v9 = vadd.f32 %v143_v7, %v139_v6  ;;  %v141_v10 = vld [vmem:[%s9462_s22 + $0x18] sm:$0xff]  ;;  %7868 = vmatprep.subr.bf16.mxu0 %v7867_v42  ;;  %v7032_v56 = vld [vmem:[%s9463_s27] ss:$0 sm:$0xff]  ;;  %s8286_s22 = smov 120   ;;  %s8293_s10 = smov 40  }
  0x74   :  { %v149_v13 = vadd.f32 %v145_v11, %v141_v10  ;;  %v7033_v58 = vld [vmem:[%s9464_s21] ss:$0 sm:$0xff]  ;;  %s9449_s28 = smov 16   ;;  %s9447_s27 = smov 24  }
  0x75   :  { %v153_v12 = vsel %vm152_vm0, %v146_v4, 0.0  ;;  %v159_v14 = vsel %vm152_vm0, %v148_v8, 0.0  ;;  %v156_v15 = vsel %vm152_vm0, %v147_v9, 0.0  ;;  %v7034_v10 = vld [vmem:[%s9465_s6] ss:$0 sm:$0xff] }
  0x76   :  { %154 = vadd.xlane.f32.xlu0 %v153_v12  ;;  %160 = vadd.xlane.f32.xlu1 %v159_v14  ;;  %v162_v16 = vsel %vm152_vm0, %v149_v13, 0.0 }
  0x77   :  { %7870 = vmatpush3.bf16.msra.mxu0 %v7867_v42 }
  0x7a   :  { %157 = vadd.xlane.f32.xlu0 %v156_v15  ;;  %163 = vadd.xlane.f32.xlu1 %v162_v16 }
 0x103   :  { %v155_v17 = vpop.xlane.xlu0 %154  ;;  %v161_v19 = vpop.xlane.xlu1 %160 }
 0x104   :  { %v166_v18 = vmul.f32 0.03125, %v155_v17  ;;  %v168_v20 = vmul.f32 0.03125, %v161_v19 }
 0x106   :  { %v170_v21 = vsub.f32 %v146_v4, %v166_v18  ;;  %v172_v22 = vsub.f32 %v148_v8, %v168_v20 }
 0x107   :  { %v158_v23 = vpop.xlane.xlu0 %157  ;;  %v164_v25 = vpop.xlane.xlu1 %163 }
 0x108   :  { %v167_v24 = vmul.f32 0.03125, %v158_v23  ;;  %v174_v26 = vmul.f32 %v170_v21, %v170_v21  ;;  %v169_v27 = vmul.f32 0.03125, %v164_v25  ;;  %v176_v28 = vmul.f32 %v172_v22, %v172_v22 }
 0x10a   :  { %v171_v29 = vsub.f32 %v147_v9, %v167_v24  ;;  %v178_v30 = vsel %vm152_vm0, %v174_v26, 0.0  ;;  %v173_v31 = vsub.f32 %v149_v13, %v169_v27  ;;  %v184_v32 = vsel %vm152_vm0, %v176_v28, 0.0 }
 0x10b   :  { %179 = vadd.xlane.f32.xlu0 %v178_v30  ;;  %v8281_v9 = vmov 0.0  }
 0x10c   :  { %v175_v33 = vmul.f32 %v171_v29, %v171_v29  ;;  %v177_v34 = vmul.f32 %v173_v31, %v173_v31  ;;  %7423 = vmatprep.subr.mxu1 %v8281_v9  ;;  %7418 = vmatprep.subr.mxu0 %v8281_v9 }
 0x10d   :  { %7425 = vmatprep.mubr.msk.f32.mxu1 %vm8282_vm1, %v8281_v9 }
 0x10e   :  { %v181_v35 = vsel %vm152_vm0, %v175_v33, 0.0  ;;  %v187_v36 = vsel %vm152_vm0, %v177_v34, 0.0 }
 0x10f   :  { %185 = vadd.xlane.f32.xlu0 %v184_v32  ;;  %182 = vadd.xlane.f32.xlu1 %v181_v35 }
 0x113   :  { %188 = vadd.xlane.f32.xlu1 %v187_v36 }
 0x198   :  { %v180_v43 = vpop.xlane.xlu0 %179 }
 0x199   :  { %v190_v44 = vmul.f32 0.03125, %v180_v43 }
 0x19b   :  { %v194_v45 = vadd.f32 1e-12, %v190_v44 }
 0x19c   :  { %v183_v46 = vpop.xlane.xlu1 %182  ;;  %v186_v47 = vpop.xlane.xlu0 %185 }
 0x19d   :  { %7972 = vrsqrt.f32 %v194_v45  ;;  %v191_v48 = vmul.f32 0.03125, %v183_v46  ;;  %v192_v49 = vmul.f32 0.03125, %v186_v47 }
 0x19f   :  { %v195_v50 = vadd.f32 1e-12, %v191_v48  ;;  %v196_v51 = vadd.f32 1e-12, %v192_v49 }
 0x1a0   :  { %v189_v52 = vpop.xlane.xlu1 %188 }
 0x1a1   :  { %7974 = vrsqrt.f32 %v195_v50  ;;  %v193_v53 = vmul.f32 0.03125, %v189_v52 }
 0x1a2   :  { %7976 = vrsqrt.f32 %v196_v51 }
 0x1a3   :  { %v197_v54 = vadd.f32 1e-12, %v193_v53 }
 0x1a5   :  { %7978 = vrsqrt.f32 %v197_v54 }
 0x1a7   :  { %v7973_v55 = vpop.eup %7972 }
 0x1a8   :  { %v202_v57 = vmul.f32 %v7973_v55, %v170_v21 }
 0x1aa   :  { %v212_v59 = vmul.f32 %v7032_v56, %v202_v57 }
 0x1ab   :  { %v7975_v60 = vpop.eup %7974 }
 0x1ac   :  { %v7977_v61 = vpop.eup %7976  ;;  %v8525_v62 = vadd.f32 %v7033_v58, %v212_v59  ;;  %v203_v63 = vmul.f32 %v7975_v60, %v171_v29 }
 0x1ad   :  { %v204_v0 = vmul.f32 %v7977_v61, %v172_v22 }
 0x1ae   :  { %7412 = vmatprep.mubr.msk.f32.mxu0 %vm152_vm0, %v8525_v62  ;;  %v213_v1 = vmul.f32 %v7032_v56, %v203_v63 }
 0x1af   :  { %v7979_v2 = vpop.eup %7978  ;;  %v214_v3 = vmul.f32 %v7032_v56, %v204_v0 }
 0x1b0   :  { %v8529_v4 = vadd.f32 %v7033_v58, %v213_v1  ;;  %v205_v5 = vmul.f32 %v7979_v2, %v173_v31 }
 0x1b1   :  { %v8531_v6 = vadd.f32 %v7033_v58, %v214_v3 }
 0x1b2   :  { %7413 = vmatmul.mubr.msk.f32.vlgmr.msra.gmra.mrb[0].mxu0 %vm152_vm0, %v8529_v4  ;;  %v215_v7 = vmul.f32 %v7032_v56, %v205_v5 }
 0x1b3   :  { %7415 = vmatprep.mubr.msk.f32.mxu0 %vm152_vm0, %v8531_v6 }
 0x1b4   :  { %v8537_v8 = vadd.f32 %v7033_v58, %v215_v7 }
 0x1b6   :  { %7416 = vmatmul.mubr.msk.f32.gmra.mrb[2].mxu0 %vm152_vm0, %v8537_v8 }
 0x1b7   :  { %7420 = vmatprep.mubr.msk.f32.mxu0 %vm8282_vm1, %v8281_v9 }
 0x285   :  { %v7414_v11 = vpop.f32.mrb[0].mxu0 }
 0x286   :  { %v8550_v12 = vadd.f32 %v7414_v11, %v7034_v10  ;;  %v315_v13 = vpop.f32.mrb[1].mxu0 }
 0x287   :  { %v8552_v14 = vadd.f32 %v7034_v10, %v315_v13 }
 0x288   :  { %413 = vrot.lane.b32.xlu1 %v8550_v12, %s8283_s3 }
 0x289   :  { %335 = vrot.lane.b32.xlu0 %v8552_v14, %s8283_s3  ;;  %v7417_v15 = vpop.f32.mrb[2].mxu0 }
 0x28a   :  { %v325_v16 = vpop.f32.mrb[3].mxu0  ;;  %v8562_v18 = vadd.f32 %v7417_v15, %v7034_v10 }
 0x28b   :  { %v8558_v17 = vadd.f32 %v7034_v10, %v325_v16 }
 0x28d   :  { %490 = vrot.lane.b32.xlu1 %v8558_v17, %s8283_s3 }
 0x291   :  { %567 = vrot.lane.b32.xlu1 %v8562_v18, %s8283_s3 }
 0x2fa   :  { %v414_v19 = vpop.permute.xlu1 %413 }
 0x2fb   :  { %7424 = vmatpush3.xpose.msk.msra.mxu1 %vm337_vm2, %v414_v19  ;;  %v336_v20 = vpop.permute.xlu0 %335 }
 0x2fc   :  { %7419 = vmatpush3.xpose.msk.msra.mxu0 %vm337_vm2, %v336_v20  ;;  %7428 = vmatprep.subr.mxu1 %v8281_v9 }
 0x2fd   :  { %7433 = vmatprep.subr.mxu0 %v8281_v9 }
 0x2fe   :  { %7426 = vmatmul.mubr.msk.f32.vlgmr.msra.gmra.mrb[0].mxu1 %vm337_vm2, %v8550_v12 }
 0x2ff   :  { %v491_v21 = vpop.permute.xlu1 %490  ;;  %7421 = vmatmul.mubr.msk.f32.vlgmr.msra.gmra.mrb[4].mxu0 %vm337_vm2, %v8552_v14  ;;  %7430 = vmatprep.mubr.msk.f32.mxu1 %vm8282_vm1, %v8281_v9 }
 0x300   :  { %7429 = vmatpush3.xpose.msk.msra.mxu1 %vm337_vm2, %v491_v21  ;;  %7435 = vmatprep.mubr.msk.f32.mxu0 %vm8282_vm1, %v8281_v9 }
 0x301   :  { %7438 = vmatprep.subr.mxu1 %v8281_v9 }
 0x303   :  { %7431 = vmatmul.mubr.msk.f32.vlgmr.msra.gmra.mrb[2].mxu1 %vm337_vm2, %v8558_v17  ;;  %v568_v22 = vpop.permute.xlu1 %567 }
 0x304   :  { %7434 = vmatpush3.xpose.msk.msra.mxu0 %vm337_vm2, %v568_v22  ;;  %7440 = vmatprep.mubr.msk.f32.mxu1 %vm8282_vm1, %v8281_v9 }
 0x305   :  { %7443 = vmatprep.subr.mxu0 %v8281_v9 }
 0x307   :  { %7436 = vmatmul.mubr.msk.f32.vlgmr.msra.gmra.mrb[6].mxu0 %vm337_vm2, %v8562_v18 }
 0x308   :  { %7445 = vmatprep.mubr.msk.f32.mxu0 %vm8282_vm1, %v8281_v9 }
 0x3d1   :  { %v485_v23 = vpop.f32.mrb[0].mxu1 }
 0x3d2   :  { %v408_v24 = vpop.f32.mrb[4].mxu0  ;;  %v7427_v25 = vpop.f32.mrb[1].mxu1  ;;  %v646_v26 = vsel %vm337_vm2, %v485_v23, -inf }
 0x3d3   :  { %647 = vmax.xlane.f32.xlu1 %v646_v26  ;;  %v7422_v27 = vpop.f32.mrb[5].mxu0  ;;  %v643_v28 = vsel %vm337_vm2, %v408_v24, -inf }
 0x3d4   :  { %644 = vmax.xlane.f32.xlu0 %v643_v28 }
 0x3d6   :  { %v562_v29 = vpop.f32.mrb[2].mxu1 }
 0x3d7   :  { %v7432_v30 = vpop.f32.mrb[3].mxu1  ;;  %v649_v31 = vsel %vm337_vm2, %v562_v29, -inf }
 0x3d8   :  { %650 = vmax.xlane.f32.xlu0 %v649_v31 }
 0x3da   :  { %v639_v32 = vpop.f32.mrb[6].mxu0 }
 0x3db   :  { %v7437_v33 = vpop.f32.mrb[7].mxu0  ;;  %v652_v34 = vsel %vm337_vm2, %v639_v32, -inf }
 0x3dc   :  { %653 = vmax.xlane.f32.xlu0 %v652_v34 }
 0x3e4   :  { %763 = vrot.lane.b32.xlu1 %v8550_v12, %s8284_s0 }
 0x3e8   :  { %839 = vrot.lane.b32.xlu1 %v8558_v17, %s8284_s0 }
 0x3ec   :  { %915 = vrot.lane.b32.xlu1 %v8562_v18, %s8284_s0 }
 0x3f0   :  { %1071 = vrot.lane.b32.xlu1 %v8550_v12, %s8285_s5 }
 0x3f2   :  { %687 = vrot.lane.b32.xlu0 %v8552_v14, %s8284_s0 }
 0x3f6   :  { %993 = vrot.lane.b32.xlu0 %v8552_v14, %s8285_s5 }
 0x460   :  { %v648_v35 = vpop.xlane.xlu1 %647 }
 0x461   :  { %v656_v36 = vsub.f32 %v485_v23, %v648_v35  ;;  %v645_v37 = vpop.xlane.xlu0 %644 }
 0x462   :  { %v655_v38 = vsub.f32 %v408_v24, %v645_v37 }
 0x463   :  { %v661_v39 = vmul.f32 1.442695, %v656_v36 }
 0x464   :  { %v659_v40 = vmul.f32 1.442695, %v655_v38  ;;  %v764_v41 = vpop.permute.xlu1 %763 }
 0x465   :  { %7980 = vpow2.f32 %v661_v39  ;;  %7444 = vmatpush3.msra.mxu0 %v764_v41  ;;  %v651_v42 = vpop.xlane.xlu0 %650 }
 0x466   :  { %7982 = vpow2.f32 %v659_v40  ;;  %v657_v43 = vsub.f32 %v562_v29, %v651_v42  ;;  %7453 = vmatprep.subr.mxu0 %v8281_v9 }
 0x468   :  { %v663_v44 = vmul.f32 1.442695, %v657_v43  ;;  %v840_v57 = vpop.permute.xlu1 %839 }
 0x469   :  { %v654_v45 = vpop.xlane.xlu0 %653 }
 0x46a   :  { %7984 = vpow2.f32 %v663_v44  ;;  %v658_v53 = vsub.f32 %v639_v32, %v654_v45 }
 0x46c   :  { %v665_v54 = vmul.f32 1.442695, %v658_v53  ;;  %v916_v58 = vpop.permute.xlu1 %915 }
 0x46d   :  { %v688_v46 = vpop.permute.xlu0 %687 }
 0x46e   :  { %7439 = vmatpush3.msra.mxu1 %v688_v46  ;;  %7986 = vpow2.f32 %v665_v54 }
 0x46f   :  { %v7981_v47 = vpop.eup %7980  ;;  %7448 = vmatprep.subr.mxu1 %v8281_v9 }
 0x470   :  { %v7983_v48 = vpop.eup %7982  ;;  %v670_v49 = vsel %vm337_vm2, %v7981_v47, 0.0  ;;  %v1072_v59 = vpop.permute.xlu1 %1071 }
 0x471   :  { %671 = vadd.xlane.f32.xlu1 %v670_v49  ;;  %v667_v50 = vsel %vm337_vm2, %v7983_v48, 0.0  ;;  %v994_v60 = vpop.permute.xlu0 %993 }
 0x472   :  { %668 = vadd.xlane.f32.xlu0 %v667_v50 }
 0x474   :  { %v7985_v51 = vpop.eup %7984 }
 0x475   :  { %v673_v52 = vsel %vm337_vm2, %v7985_v51, 0.0 }
 0x476   :  { %674 = vadd.xlane.f32.xlu0 %v673_v52 }
 0x478   :  { %v7987_v55 = vpop.eup %7986 }
 0x479   :  { %v676_v56 = vsel %vm337_vm2, %v7987_v55, 0.0 }
 0x482   :  { %1069 = vrot.lane.b32.xlu1 %v8550_v12, %s8286_s22 }
 0x48c   :  { %991 = vrot.lane.b32.xlu0 %v8552_v14, %s8286_s22 }
 0x490   :  { %1149 = vrot.lane.b32.xlu0 %v8558_v17, %s8285_s5 }
 0x494   :  { %1147 = vrot.lane.b32.xlu0 %v8558_v17, %s8286_s22 }
 0x4a6   :  { %677 = vadd.xlane.f32.xlu1 %v676_v56 }
 0x4b7   :  { %1227 = vrot.lane.b32.xlu1 %v8562_v18, %s8285_s5 }
 0x4bb   :  { %1225 = vrot.lane.b32.xlu1 %v8562_v18, %s8286_s22 }
 0x4fe   :  { %v672_v61 = vpop.xlane.xlu1 %671 }
 0x4ff   :  { %7988 = vrcp.f32 %v672_v61  ;;  %v669_v63 = vpop.xlane.xlu0 %668 }
 0x500   :  { %7990 = vrcp.f32 %v669_v63 }
 0x502   :  { %v1070_v16 = vpop.permute.xlu1 %1069 }
 0x503   :  { %v675_v0 = vpop.xlane.xlu0 %674 }
 0x504   :  { %7992 = vrcp.f32 %v675_v0 }
 0x507   :  { %v992_v10 = vpop.permute.xlu0 %991 }
 0x509   :  { %v7989_v1 = vpop.eup %7988 }
 0x50a   :  { %v7991_v2 = vpop.eup %7990  ;;  %v682_v3 = vmul.f32 %v7989_v1, %v7981_v47 }
 0x50b   :  { %v680_v5 = vmul.f32 %v7991_v2, %v7983_v48  ;;  %v1150_v13 = vpop.permute.xlu0 %1149 }
 0x50c   :  { %7446 = vmatmul.mubr.msk.f32.vlgmr.msra.gmra.mrb[8].mxu0 %vm337_vm2, %v682_v3 }
 0x50d   :  { %7454 = vmatpush3.msra.mxu0 %v916_v58  ;;  %7441 = vmatmul.mubr.msk.f32.vlgmr.msra.gmra.mrb[4].mxu1 %vm337_vm2, %v680_v5 }
 0x50e   :  { %v7993_v7 = vpop.eup %7992  ;;  %7449 = vmatpush3.msra.mxu1 %v840_v57  ;;  %7450 = vmatprep.mubr.msk.f32.mxu1 %vm8282_vm1, %v8281_v9 }
 0x50f   :  { %v684_v11 = vmul.f32 %v7993_v7, %v7985_v51  ;;  %7458 = vmatprep.subr.mxu1 %v8281_v9  ;;  %7455 = vmatprep.mubr.msk.f32.mxu0 %vm8282_vm1, %v8281_v9  ;;  %v1148_v15 = vpop.permute.xlu0 %1147 }
 0x510   :  { %7463 = vmatprep.subr.mxu0 %v8281_v9 }
 0x511   :  { %7451 = vmatmul.mubr.msk.f32.vlgmr.msra.gmra.mrb[6].mxu1 %vm337_vm2, %v684_v11 }
 0x512   :  { %7460 = vmatprep.mubr.msk.f32.mxu1 %vm8282_vm1, %v8281_v9 }
 0x515   :  { %7459 = vmatpush3.xpose.msk.msra.mxu1 %vm337_vm2, %v994_v60 }
 0x516   :  { %7468 = vmatprep.subr.mxu1 %v8281_v9 }
 0x518   :  { %7461 = vmatmul.mubr.msk.f32.vlgmr.msra.gmra.mrb[8].mxu1 %vm337_vm2, %v992_v10 }
 0x519   :  { %7469 = vmatpush3.xpose.msk.msra.mxu1 %vm337_vm2, %v1150_v13  ;;  %7470 = vmatprep.mubr.msk.f32.mxu1 %vm8282_vm1, %v8281_v9 }
 0x51a   :  { %7478 = vmatprep.subr.mxu1 %v8281_v9 }
 0x51c   :  { %7471 = vmatmul.mubr.msk.f32.vlgmr.msra.gmra.mrb[10].mxu1 %vm337_vm2, %v1148_v15 }
 0x51d   :  { %7480 = vmatprep.mubr.msk.f32.mxu1 %vm8282_vm1, %v8281_v9 }
 0x533   :  { %v678_v19 = vpop.xlane.xlu1 %677 }
 0x534   :  { %7994 = vrcp.f32 %v678_v19 }
 0x537   :  { %v1228_v22 = vpop.permute.xlu1 %1227 }
 0x53b   :  { %v1226_v23 = vpop.permute.xlu1 %1225 }
 0x53e   :  { %v7995_v20 = vpop.eup %7994 }
 0x53f   :  { %v686_v21 = vmul.f32 %v7995_v20, %v7987_v55 }
 0x541   :  { %7456 = vmatmul.mubr.msk.f32.vlgmr.msra.gmra.mrb[10].mxu0 %vm337_vm2, %v686_v21 }
 0x542   :  { %7464 = vmatpush3.xpose.msk.msra.mxu0 %vm337_vm2, %v1072_v59  ;;  %7465 = vmatprep.mubr.msk.f32.mxu0 %vm8282_vm1, %v8281_v9 }
 0x543   :  { %7473 = vmatprep.subr.mxu0 %v8281_v9 }
 0x545   :  { %7466 = vmatmul.mubr.msk.f32.vlgmr.msra.gmra.mrb[12].mxu0 %vm337_vm2, %v1070_v16 }
 0x546   :  { %7474 = vmatpush3.xpose.msk.msra.mxu0 %vm337_vm2, %v1228_v22  ;;  %7475 = vmatprep.mubr.msk.f32.mxu0 %vm8282_vm1, %v8281_v9 }
 0x547   :  { %7483 = vmatprep.subr.mxu0 %v8281_v9 }
 0x549   :  { %7476 = vmatmul.mubr.msk.f32.vlgmr.msra.gmra.mrb[14].mxu0 %vm337_vm2, %v1226_v23 }
 0x54a   :  { %7485 = vmatprep.mubr.msk.f32.mxu0 %vm8282_vm1, %v8281_v9 }
 0x5df   :  { %v8658_v24 = vpop.f32.mrb[8].mxu0 }
 0x5e0   :  { %v8660_v25 = vpop.f32.mrb[4].mxu1  ;;  %v7447_v26 = vpop.f32.mrb[9].mxu0 }
 0x5e1   :  { %v7442_v27 = vpop.f32.mrb[5].mxu1 }
 0x5e4   :  { %v8662_v28 = vpop.f32.mrb[6].mxu1 }
 0x5e5   :  { %v7452_v29 = vpop.f32.mrb[7].mxu1 }
 0x5eb   :  { %v1065_v30 = vpop.f32.mrb[8].mxu1 }
 0x5ec   :  { %v7462_v31 = vpop.f32.mrb[9].mxu1  ;;  %v1303_v32 = vsel %vm337_vm2, %v1065_v30, -inf }
 0x5ed   :  { %1304 = vmax.xlane.f32.xlu0 %v1303_v32 }
 0x5ef   :  { %v1221_v33 = vpop.f32.mrb[10].mxu1 }
 0x5f0   :  { %v7472_v34 = vpop.f32.mrb[11].mxu1  ;;  %v1309_v35 = vsel %vm337_vm2, %v1221_v33, -inf }
 0x5f1   :  { %1310 = vmax.xlane.f32.xlu0 %v1309_v35 }
 0x614   :  { %v8666_v36 = vpop.f32.mrb[10].mxu0 }
 0x615   :  { %v7457_v37 = vpop.f32.mrb[11].mxu0 }
 0x618   :  { %v1143_v38 = vpop.f32.mrb[12].mxu0 }
 0x619   :  { %v7467_v39 = vpop.f32.mrb[13].mxu0  ;;  %v1306_v40 = vsel %vm337_vm2, %v1143_v38, -inf }
 0x61a   :  { %1307 = vmax.xlane.f32.xlu1 %v1306_v40 }
 0x61c   :  { %v1299_v41 = vpop.f32.mrb[14].mxu0 }
 0x61d   :  { %v7477_v42 = vpop.f32.mrb[15].mxu0  ;;  %v1312_v43 = vsel %vm337_vm2, %v1299_v41, -inf }
 0x61e   :  { %1313 = vmax.xlane.f32.xlu0 %v1312_v43 }
 0x62b   :  { %1423 = vrot.lane.b32.xlu1 %v8550_v12, %s8287_s25 }
 0x62f   :  { %1499 = vrot.lane.b32.xlu1 %v8558_v17, %s8287_s25 }
 0x633   :  { %1575 = vrot.lane.b32.xlu1 %v8562_v18, %s8287_s25 }
 0x634   :  { %1347 = vrot.lane.b32.xlu0 %v8552_v14, %s8287_s25 }
 0x637   :  { %1731 = vrot.lane.b32.xlu1 %v8550_v12, %s8288_s30 }
 0x638   :  { %1653 = vrot.lane.b32.xlu0 %v8552_v14, %s8288_s30 }
 0x67a   :  { %v1305_v44 = vpop.xlane.xlu0 %1304 }
 0x67b   :  { %v1315_v45 = vsub.f32 %v1065_v30, %v1305_v44 }
 0x67d   :  { %v1319_v46 = vmul.f32 1.442695, %v1315_v45 }
 0x67e   :  { %v1311_v47 = vpop.xlane.xlu0 %1310 }
 0x67f   :  { %7996 = vpow2.f32 %v1319_v46  ;;  %v1317_v48 = vsub.f32 %v1221_v33, %v1311_v47 }
 0x681   :  { %v1323_v49 = vmul.f32 1.442695, %v1317_v48 }
 0x683   :  { %7998 = vpow2.f32 %v1323_v49 }
 0x689   :  { %v7997_v50 = vpop.eup %7996 }
 0x68a   :  { %v1327_v51 = vsel %vm337_vm2, %v7997_v50, 0.0 }
 0x68b   :  { %1328 = vadd.xlane.f32.xlu0 %v1327_v51 }
 0x68d   :  { %v7999_v52 = vpop.eup %7998 }
 0x68e   :  { %v1333_v53 = vsel %vm337_vm2, %v7999_v52, 0.0 }
 0x68f   :  { %1334 = vadd.xlane.f32.xlu0 %v1333_v53 }
 0x6a5   :  { %1651 = vrot.lane.b32.xlu0 %v8552_v14, %s8289_s20 }
 0x6a7   :  { %v1308_v54 = vpop.xlane.xlu1 %1307 }
 0x6a8   :  { %v1316_v55 = vsub.f32 %v1143_v38, %v1308_v54 }
 0x6a9   :  { %1809 = vrot.lane.b32.xlu0 %v8558_v17, %s8288_s30 }
 0x6aa   :  { %v1321_v56 = vmul.f32 1.442695, %v1316_v55 }
 0x6ab   :  { %v1424_v57 = vpop.permute.xlu1 %1423  ;;  %v1314_v58 = vpop.xlane.xlu0 %1313 }
 0x6ac   :  { %8000 = vpow2.f32 %v1321_v56  ;;  %v1318_v59 = vsub.f32 %v1299_v41, %v1314_v58  ;;  %7484 = vmatpush3.msra.mxu0 %v1424_v57 }
 0x6ad   :  { %1807 = vrot.lane.b32.xlu0 %v8558_v17, %s8289_s20  ;;  %7493 = vmatprep.subr.mxu0 %v8281_v9 }
 0x6ae   :  { %v1325_v60 = vmul.f32 1.442695, %v1318_v59 }
 0x6af   :  { %v1348_v61 = vpop.permute.xlu0 %1347  ;;  %v1500_v13 = vpop.permute.xlu1 %1499 }
 0x6b0   :  { %8002 = vpow2.f32 %v1325_v60  ;;  %7479 = vmatpush3.msra.mxu1 %v1348_v61 }
 0x6b1   :  { %7488 = vmatprep.subr.mxu1 %v8281_v9 }
 0x6b3   :  { %v1654_v3 = vpop.permute.xlu0 %1653  ;;  %v1576_v22 = vpop.permute.xlu1 %1575 }
 0x6b6   :  { %v8001_v63 = vpop.eup %8000 }
 0x6b7   :  { %v1330_v0 = vsel %vm337_vm2, %v8001_v63, 0.0  ;;  %v1732_v23 = vpop.permute.xlu1 %1731 }
 0x6b8   :  { %1331 = vadd.xlane.f32.xlu1 %v1330_v0 }
 0x6ba   :  { %v8003_v1 = vpop.eup %8002 }
 0x6bb   :  { %v1336_v2 = vsel %vm337_vm2, %v8003_v1, 0.0 }
 0x6bc   :  { %1337 = vadd.xlane.f32.xlu1 %v1336_v2 }
 0x6cd   :  { %1729 = vrot.lane.b32.xlu1 %v8550_v12, %s8289_s20 }
 0x6d1   :  { %1887 = vrot.lane.b32.xlu1 %v8562_v18, %s8288_s30 }
 0x6d5   :  { %1885 = vrot.lane.b32.xlu1 %v8562_v18, %s8289_s20 }
 0x718   :  { %v1329_v5 = vpop.xlane.xlu0 %1328 }
 0x719   :  { %8004 = vrcp.f32 %v1329_v5 }
 0x71c   :  { %v1335_v7 = vpop.xlane.xlu0 %1334 }
 0x71d   :  { %8006 = vrcp.f32 %v1335_v7 }
 0x720   :  { %v1652_v16 = vpop.permute.xlu0 %1651 }
 0x723   :  { %v8005_v10 = vpop.eup %8004 }
 0x724   :  { %v1340_v11 = vmul.f32 %v8005_v10, %v7997_v50  ;;  %v1810_v20 = vpop.permute.xlu0 %1809 }
 0x726   :  { %7481 = vmatmul.mubr.msk.f32.vlgmr.msra.gmra.mrb[12].mxu1 %vm337_vm2, %v1340_v11 }
 0x727   :  { %v8007_v15 = vpop.eup %8006  ;;  %7489 = vmatpush3.msra.mxu1 %v1500_v13  ;;  %7490 = vmatprep.mubr.msk.f32.mxu1 %vm8282_vm1, %v8281_v9 }
 0x728   :  { %v1344_v19 = vmul.f32 %v8007_v15, %v7999_v52  ;;  %7498 = vmatprep.subr.mxu1 %v8281_v9  ;;  %v1808_v21 = vpop.permute.xlu0 %1807 }
 0x72a   :  { %7491 = vmatmul.mubr.msk.f32.vlgmr.msra.gmra.mrb[14].mxu1 %vm337_vm2, %v1344_v19 }
 0x72b   :  { %7500 = vmatprep.mubr.msk.f32.mxu1 %vm8282_vm1, %v8281_v9 }
 0x72e   :  { %7499 = vmatpush3.xpose.msk.msra.mxu1 %vm337_vm2, %v1654_v3 }
 0x72f   :  { %7508 = vmatprep.subr.mxu1 %v8281_v9 }
 0x731   :  { %7501 = vmatmul.mubr.msk.f32.vlgmr.msra.gmra.mrb[16].mxu1 %vm337_vm2, %v1652_v16 }
 0x732   :  { %7509 = vmatpush3.xpose.msk.msra.mxu1 %vm337_vm2, %v1810_v20  ;;  %7510 = vmatprep.mubr.msk.f32.mxu1 %vm8282_vm1, %v8281_v9 }
 0x733   :  { %7518 = vmatprep.subr.mxu1 %v8281_v9 }
 0x735   :  { %7511 = vmatmul.mubr.msk.f32.vlgmr.msra.gmra.mrb[18].mxu1 %vm337_vm2, %v1808_v21 }
 0x736   :  { %7520 = vmatprep.mubr.msk.f32.mxu1 %vm8282_vm1, %v8281_v9 }
 0x745   :  { %v1332_v26 = vpop.xlane.xlu1 %1331 }
 0x746   :  { %8008 = vrcp.f32 %v1332_v26 }
 0x749   :  { %v1338_v27 = vpop.xlane.xlu1 %1337 }
 0x74a   :  { %8010 = vrcp.f32 %v1338_v27 }
 0x74d   :  { %v1730_v32 = vpop.permute.xlu1 %1729 }
 0x750   :  { %v8009_v29 = vpop.eup %8008 }
 0x751   :  { %v1342_v30 = vmul.f32 %v8009_v29, %v8001_v63  ;;  %v1888_v34 = vpop.permute.xlu1 %1887 }
 0x753   :  { %7486 = vmatmul.mubr.msk.f32.vlgmr.msra.gmra.mrb[16].mxu0 %vm337_vm2, %v1342_v30 }
 0x754   :  { %v8011_v31 = vpop.eup %8010  ;;  %7494 = vmatpush3.msra.mxu0 %v1576_v22  ;;  %7495 = vmatprep.mubr.msk.f32.mxu0 %vm8282_vm1, %v8281_v9 }
 0x755   :  { %v1346_v33 = vmul.f32 %v8011_v31, %v8003_v1  ;;  %7503 = vmatprep.subr.mxu0 %v8281_v9  ;;  %v1886_v35 = vpop.permute.xlu1 %1885 }
 0x757   :  { %7496 = vmatmul.mubr.msk.f32.vlgmr.msra.gmra.mrb[18].mxu0 %vm337_vm2, %v1346_v33 }
 0x758   :  { %7505 = vmatprep.mubr.msk.f32.mxu0 %vm8282_vm1, %v8281_v9 }
 0x75b   :  { %7504 = vmatpush3.xpose.msk.msra.mxu0 %vm337_vm2, %v1732_v23 }
 0x75c   :  { %7513 = vmatprep.subr.mxu0 %v8281_v9 }
 0x75e   :  { %7506 = vmatmul.mubr.msk.f32.vlgmr.msra.gmra.mrb[20].mxu0 %vm337_vm2, %v1730_v32 }
 0x75f   :  { %7514 = vmatpush3.xpose.msk.msra.mxu0 %vm337_vm2, %v1888_v34  ;;  %7515 = vmatprep.mubr.msk.f32.mxu0 %vm8282_vm1, %v8281_v9 }
 0x760   :  { %7523 = vmatprep.subr.mxu0 %v8281_v9 }
 0x762   :  { %7516 = vmatmul.mubr.msk.f32.vlgmr.msra.gmra.mrb[22].mxu0 %vm337_vm2, %v1886_v35 }
 0x763   :  { %7525 = vmatprep.mubr.msk.f32.mxu0 %vm8282_vm1, %v8281_v9 }
 0x7f9   :  { %v8734_v37 = vpop.f32.mrb[12].mxu1 }
 0x7fa   :  { %v7482_v38 = vpop.f32.mrb[13].mxu1 }
 0x7fd   :  { %v8736_v39 = vpop.f32.mrb[14].mxu1 }
 0x7fe   :  { %v7492_v40 = vpop.f32.mrb[15].mxu1 }
 0x804   :  { %v1725_v41 = vpop.f32.mrb[16].mxu1 }
 0x805   :  { %v7502_v42 = vpop.f32.mrb[17].mxu1  ;;  %v1963_v43 = vsel %vm337_vm2, %v1725_v41, -inf }
 0x806   :  { %1964 = vmax.xlane.f32.xlu0 %v1963_v43 }
 0x808   :  { %v1881_v44 = vpop.f32.mrb[18].mxu1 }
 0x809   :  { %v7512_v45 = vpop.f32.mrb[19].mxu1  ;;  %v1969_v56 = vsel %vm337_vm2, %v1881_v44, -inf }
 0x826   :  { %v8739_v46 = vpop.f32.mrb[16].mxu0 }
 0x827   :  { %v7487_v47 = vpop.f32.mrb[17].mxu0 }
 0x82a   :  { %v8741_v48 = vpop.f32.mrb[18].mxu0 }
 0x82b   :  { %v7497_v49 = vpop.f32.mrb[19].mxu0 }
 0x831   :  { %v1803_v50 = vpop.f32.mrb[20].mxu0 }
 0x832   :  { %v7507_v51 = vpop.f32.mrb[21].mxu0  ;;  %v1966_v52 = vsel %vm337_vm2, %v1803_v50, -inf }
 0x833   :  { %1967 = vmax.xlane.f32.xlu1 %v1966_v52 }
 0x835   :  { %v1959_v53 = vpop.f32.mrb[22].mxu0 }
 0x836   :  { %v7517_v54 = vpop.f32.mrb[23].mxu0  ;;  %v1972_v55 = vsel %vm337_vm2, %v1959_v53, -inf }
 0x837   :  { %1973 = vmax.xlane.f32.xlu0 %v1972_v55 }
 0x83b   :  { %1970 = vmax.xlane.f32.xlu0 %v1969_v56 }
 0x844   :  { %2083 = vrot.lane.b32.xlu1 %v8550_v12, %s8290_s16 }
 0x848   :  { %2159 = vrot.lane.b32.xlu1 %v8558_v17, %s8290_s16 }
 0x84c   :  { %2235 = vrot.lane.b32.xlu1 %v8562_v18, %s8290_s16 }
 0x851   :  { %2007 = vrot.lane.b32.xlu0 %v8552_v14, %s8290_s16 }
 0x893   :  { %v1965_v57 = vpop.xlane.xlu0 %1964 }
 0x894   :  { %v1975_v58 = vsub.f32 %v1725_v41, %v1965_v57 }
 0x896   :  { %v1979_v59 = vmul.f32 1.442695, %v1975_v58 }
 0x898   :  { %8012 = vpow2.f32 %v1979_v59 }
 0x8a2   :  { %v8013_v60 = vpop.eup %8012 }
 0x8a3   :  { %v1987_v61 = vsel %vm337_vm2, %v8013_v60, 0.0 }
 0x8a4   :  { %1988 = vadd.xlane.f32.xlu0 %v1987_v61 }
 0x8ba   :  { %2313 = vrot.lane.b32.xlu0 %v8552_v14, %s8291_s24 }
 0x8c0   :  { %v1968_v63 = vpop.xlane.xlu1 %1967 }
 0x8c1   :  { %v1976_v0 = vsub.f32 %v1803_v50, %v1968_v63 }
 0x8c3   :  { %v1981_v1 = vmul.f32 1.442695, %v1976_v0 }
 0x8c4   :  { %v2084_v2 = vpop.permute.xlu1 %2083  ;;  %v1974_v3 = vpop.xlane.xlu0 %1973 }
 0x8c5   :  { %8014 = vpow2.f32 %v1981_v1  ;;  %7524 = vmatpush3.msra.mxu0 %v2084_v2  ;;  %v1978_v20 = vsub.f32 %v1959_v53, %v1974_v3 }
 0x8c6   :  { %7533 = vmatprep.subr.mxu0 %v8281_v9 }
 0x8c7   :  { %v1985_v21 = vmul.f32 1.442695, %v1978_v20 }
 0x8c8   :  { %v1971_v5 = vpop.xlane.xlu0 %1970  ;;  %v2160_v30 = vpop.permute.xlu1 %2159 }
 0x8c9   :  { %v1977_v7 = vsub.f32 %v1881_v44, %v1971_v5 }
 0x8cb   :  { %v1983_v10 = vmul.f32 1.442695, %v1977_v7 }
 0x8cc   :  { %v2008_v11 = vpop.permute.xlu0 %2007  ;;  %v2236_v31 = vpop.permute.xlu1 %2235 }
 0x8cd   :  { %8016 = vpow2.f32 %v1983_v10  ;;  %7519 = vmatpush3.msra.mxu1 %v2008_v11 }
 0x8ce   :  { %7528 = vmatprep.subr.mxu1 %v8281_v9  ;;  %8018 = vpow2.f32 %v1985_v21 }
 0x8cf   :  { %v8015_v13 = vpop.eup %8014 }
 0x8d0   :  { %v1990_v15 = vsel %vm337_vm2, %v8015_v13, 0.0 }
 0x8d1   :  { %1991 = vadd.xlane.f32.xlu1 %v1990_v15 }
 0x8d7   :  { %v8017_v16 = vpop.eup %8016 }
 0x8d8   :  { %v1993_v19 = vsel %vm337_vm2, %v8017_v16, 0.0  ;;  %v8019_v22 = vpop.eup %8018 }
 0x8d9   :  { %1994 = vadd.xlane.f32.xlu0 %v1993_v19  ;;  %v1996_v23 = vsel %vm337_vm2, %v8019_v22, 0.0 }
 0x8e2   :  { %2391 = vrot.lane.b32.xlu1 %v8550_v12, %s8291_s24 }
 0x8ef   :  { %2311 = vrot.lane.b32.xlu0 %v8552_v14, %s8292_s23 }
 0x8f3   :  { %2469 = vrot.lane.b32.xlu0 %v8558_v17, %s8291_s24 }
 0x8f7   :  { %2467 = vrot.lane.b32.xlu0 %v8558_v17, %s8292_s23 }
 0x906   :  { %1997 = vadd.xlane.f32.xlu1 %v1996_v23 }
 0x917   :  { %2389 = vrot.lane.b32.xlu1 %v8550_v12, %s8292_s23 }
 0x91b   :  { %2547 = vrot.lane.b32.xlu1 %v8562_v18, %s8291_s24 }
 0x91f   :  { %2545 = vrot.lane.b32.xlu1 %v8562_v18, %s8292_s23 }
 0x931   :  { %v1989_v26 = vpop.xlane.xlu0 %1988 }
 0x932   :  { %8020 = vrcp.f32 %v1989_v26 }
 0x935   :  { %v2314_v33 = vpop.permute.xlu0 %2313 }
 0x93c   :  { %v8021_v27 = vpop.eup %8020 }
 0x93d   :  { %v2000_v29 = vmul.f32 %v8021_v27, %v8013_v60 }
 0x93f   :  { %7521 = vmatmul.mubr.msk.f32.vlgmr.msra.gmra.mrb[20].mxu1 %vm337_vm2, %v2000_v29 }
 0x940   :  { %7529 = vmatpush3.msra.mxu1 %v2160_v30  ;;  %7530 = vmatprep.mubr.msk.f32.mxu1 %vm8282_vm1, %v8281_v9 }
 0x941   :  { %7538 = vmatprep.subr.mxu1 %v8281_v9 }
 0x95e   :  { %v1992_v32 = vpop.xlane.xlu1 %1991 }
 0x95f   :  { %8022 = vrcp.f32 %v1992_v32 }
 0x962   :  { %v2392_v45 = vpop.permute.xlu1 %2391 }
 0x966   :  { %v1995_v34 = vpop.xlane.xlu0 %1994 }
 0x967   :  { %8024 = vrcp.f32 %v1995_v34 }
 0x969   :  { %v8023_v35 = vpop.eup %8022 }
 0x96a   :  { %v2002_v38 = vmul.f32 %v8023_v35, %v8015_v13  ;;  %v2312_v40 = vpop.permute.xlu0 %2311 }
 0x96c   :  { %7526 = vmatmul.mubr.msk.f32.vlgmr.msra.gmra.mrb[24].mxu0 %vm337_vm2, %v2002_v38 }
 0x96d   :  { %7534 = vmatpush3.msra.mxu0 %v2236_v31  ;;  %7535 = vmatprep.mubr.msk.f32.mxu0 %vm8282_vm1, %v8281_v9 }
 0x96e   :  { %7543 = vmatprep.subr.mxu0 %v8281_v9  ;;  %v2470_v43 = vpop.permute.xlu0 %2469 }
 0x971   :  { %v8025_v41 = vpop.eup %8024 }
 0x972   :  { %v2004_v42 = vmul.f32 %v8025_v41, %v8017_v16  ;;  %v2468_v44 = vpop.permute.xlu0 %2467 }
 0x974   :  { %7531 = vmatmul.mubr.msk.f32.vlgmr.msra.gmra.mrb[22].mxu1 %vm337_vm2, %v2004_v42 }
 0x975   :  { %7539 = vmatpush3.xpose.msk.msra.mxu1 %vm337_vm2, %v2314_v33  ;;  %7540 = vmatprep.mubr.msk.f32.mxu1 %vm8282_vm1, %v8281_v9 }
 0x976   :  { %7548 = vmatprep.subr.mxu1 %v8281_v9 }
 0x978   :  { %7541 = vmatmul.mubr.msk.f32.vlgmr.msra.gmra.mrb[24].mxu1 %vm337_vm2, %v2312_v40 }
 0x979   :  { %7549 = vmatpush3.xpose.msk.msra.mxu1 %vm337_vm2, %v2470_v43  ;;  %7550 = vmatprep.mubr.msk.f32.mxu1 %vm8282_vm1, %v8281_v9 }
 0x97a   :  { %7558 = vmatprep.subr.mxu1 %v8281_v9 }
 0x97c   :  { %7551 = vmatmul.mubr.msk.f32.vlgmr.msra.gmra.mrb[26].mxu1 %vm337_vm2, %v2468_v44 }
 0x97d   :  { %7560 = vmatprep.mubr.msk.f32.mxu1 %vm8282_vm1, %v8281_v9 }
 0x993   :  { %v1998_v47 = vpop.xlane.xlu1 %1997 }
 0x994   :  { %8026 = vrcp.f32 %v1998_v47 }
 0x997   :  { %v2390_v49 = vpop.permute.xlu1 %2389 }
 0x99b   :  { %v2548_v52 = vpop.permute.xlu1 %2547 }
 0x99e   :  { %v8027_v50 = vpop.eup %8026 }
 0x99f   :  { %v2006_v51 = vmul.f32 %v8027_v50, %v8019_v22  ;;  %v2546_v53 = vpop.permute.xlu1 %2545 }
 0x9a1   :  { %7536 = vmatmul.mubr.msk.f32.vlgmr.msra.gmra.mrb[26].mxu0 %vm337_vm2, %v2006_v51 }
 0x9a2   :  { %7544 = vmatpush3.xpose.msk.msra.mxu0 %vm337_vm2, %v2392_v45  ;;  %7545 = vmatprep.mubr.msk.f32.mxu0 %vm8282_vm1, %v8281_v9 }
 0x9a3   :  { %7553 = vmatprep.subr.mxu0 %v8281_v9 }
 0x9a5   :  { %7546 = vmatmul.mubr.msk.f32.vlgmr.msra.gmra.mrb[28].mxu0 %vm337_vm2, %v2390_v49 }
 0x9a6   :  { %7554 = vmatpush3.xpose.msk.msra.mxu0 %vm337_vm2, %v2548_v52  ;;  %7555 = vmatprep.mubr.msk.f32.mxu0 %vm8282_vm1, %v8281_v9 }
 0x9a7   :  { %7563 = vmatprep.subr.mxu0 %v8281_v9 }
 0x9a9   :  { %7556 = vmatmul.mubr.msk.f32.vlgmr.msra.gmra.mrb[30].mxu0 %vm337_vm2, %v2546_v53 }
 0x9aa   :  { %7565 = vmatprep.mubr.msk.f32.mxu0 %vm8282_vm1, %v8281_v9 }
 0xa12   :  { %v2079_v54 = vpop.f32.mrb[20].mxu1 }
 0xa13   :  { %v7522_v55 = vpop.f32.mrb[21].mxu1 }
 0xa3f   :  { %v2155_v56 = vpop.f32.mrb[24].mxu0 }
 0xa40   :  { %v7527_v57 = vpop.f32.mrb[25].mxu0 }
 0xa41   :  { %v3033_v57 = vld [vmem:[#allocation7] sm:$0xff] }
 0xa47   :  { %v8810_v58 = vpop.f32.mrb[22].mxu1 }
 0xa48   :  { %v7532_v59 = vpop.f32.mrb[23].mxu1 }
 0xa49   :  { %v3034_v59 = vld [vmem:[#allocation7 + $0x8] sm:$0xff] }
 0xa4b   :  { %v2385_v60 = vpop.f32.mrb[24].mxu1 }
 0xa4c   :  { %v7542_v61 = vpop.f32.mrb[25].mxu1  ;;  %v2623_v63 = vsel %vm337_vm2, %v2385_v60, -inf }
 0xa4d   :  { %2624 = vmax.xlane.f32.xlu0 %v2623_v63  ;;  %v7871_v61 = vpack.c.bf16 %v3034_v59, %v3033_v57  ;;  %v3036_v63 = vld [vmem:[#allocation7 + $0x18] sm:$0xff] }
 0xa4f   :  { %v2541_v0 = vpop.f32.mrb[26].mxu1 }
 0xa50   :  { %v7552_v1 = vpop.f32.mrb[27].mxu1  ;;  %v2629_v2 = vsel %vm337_vm2, %v2541_v0, -inf }
 0xa51   :  { %2630 = vmax.xlane.f32.xlu0 %v2629_v2 }
 0xa74   :  { %v8814_v3 = vpop.f32.mrb[26].mxu0 }
 0xa75   :  { %v7537_v5 = vpop.f32.mrb[27].mxu0 }
 0xa78   :  { %v2463_v7 = vpop.f32.mrb[28].mxu0 }
 0xa79   :  { %v7547_v10 = vpop.f32.mrb[29].mxu0  ;;  %v2626_v11 = vsel %vm337_vm2, %v2463_v7, -inf }
 0xa7a   :  { %2627 = vmax.xlane.f32.xlu1 %v2626_v11 }
 0xa7c   :  { %v2619_v13 = vpop.f32.mrb[30].mxu0 }
 0xa7d   :  { %v7557_v15 = vpop.f32.mrb[31].mxu0  ;;  %v2632_v16 = vsel %vm337_vm2, %v2619_v13, -inf }
 0xa7e   :  { %2633 = vmax.xlane.f32.xlu0 %v2632_v16 }
 0xada   :  { %v2625_v19 = vpop.xlane.xlu0 %2624 }
 0xadb   :  { %v2635_v20 = vsub.f32 %v2385_v60, %v2625_v19  ;;  %v3035_v60 = vld [vmem:[#allocation7 + $0x10] sm:$0xff] }
 0xadd   :  { %v2639_v21 = vmul.f32 1.442695, %v2635_v20 }
 0xade   :  { %v2631_v22 = vpop.xlane.xlu0 %2630 }
 0xadf   :  { %8028 = vpow2.f32 %v2639_v21  ;;  %v2637_v23 = vsub.f32 %v2541_v0, %v2631_v22  ;;  %v7875_v0 = vpack.c.bf16 %v3036_v63, %v3035_v60 }
 0xae1   :  { %v2643_v26 = vmul.f32 1.442695, %v2637_v23 }
 0xae3   :  { %8030 = vpow2.f32 %v2643_v26 }
 0xae9   :  { %v8029_v27 = vpop.eup %8028 }
 0xaea   :  { %v2647_v29 = vsel %vm337_vm2, %v8029_v27, 0.0 }
 0xaeb   :  { %2648 = vadd.xlane.f32.xlu0 %v2647_v29 }
 0xaed   :  { %v8031_v30 = vpop.eup %8030 }
 0xaee   :  { %v2653_v31 = vsel %vm337_vm2, %v8031_v30, 0.0 }
 0xaef   :  { %2654 = vadd.xlane.f32.xlu0 %v2653_v31 }
 0xb05   :  { %2667 = vrot.lane.b32.xlu0 %v8552_v14, %s8293_s10 }
 0xb07   :  { %v2628_v32 = vpop.xlane.xlu1 %2627 }
 0xb08   :  { %v2636_v33 = vsub.f32 %v2463_v7, %v2628_v32 }
 0xb09   :  { %2975 = vrot.lane.b32.xlu0 %v8734_v37, %s9451_s2 }
 0xb0a   :  { %v2641_v34 = vmul.f32 1.442695, %v2636_v33 }
 0xb0b   :  { %v2634_v35 = vpop.xlane.xlu0 %2633 }
 0xb0c   :  { %8032 = vpow2.f32 %v2641_v34  ;;  %v2638_v38 = vsub.f32 %v2619_v13, %v2634_v35 }
 0xb0d   :  { %2991 = vrot.lane.b32.xlu0 %v2079_v54, %s9449_s28 }
 0xb0e   :  { %v2645_v40 = vmul.f32 1.442695, %v2638_v38 }
 0xb10   :  { %8034 = vpow2.f32 %v2645_v40 }
 0xb16   :  { %v8033_v41 = vpop.eup %8032 }
 0xb17   :  { %v2650_v42 = vsel %vm337_vm2, %v8033_v41, 0.0 }
 0xb18   :  { %2651 = vadd.xlane.f32.xlu1 %v2650_v42 }
 0xb1a   :  { %v8035_v43 = vpop.eup %8034 }
 0xb1b   :  { %v2656_v14 = vsel %vm337_vm2, %v8035_v43, 0.0 }
 0xb1c   :  { %2657 = vadd.xlane.f32.xlu1 %v2656_v14 }
 0xb2d   :  { %2743 = vrot.lane.b32.xlu1 %v8550_v12, %s8293_s10 }
 0xb31   :  { %2819 = vrot.lane.b32.xlu1 %v8558_v17, %s8293_s10 }
 0xb35   :  { %2895 = vrot.lane.b32.xlu1 %v8562_v18, %s8293_s10 }
 0xb39   :  { %2977 = vrot.lane.b32.xlu1 %v8739_v46, %s9451_s2 }
 0xb3d   :  { %2993 = vrot.lane.b32.xlu1 %v2155_v56, %s9449_s28 }
 0xb78   :  { %v2649_v37 = vpop.xlane.xlu0 %2648 }
 0xb79   :  { %8036 = vrcp.f32 %v2649_v37 }
 0xb7c   :  { %v2655_v44 = vpop.xlane.xlu0 %2654 }
 0xb7d   :  { %8038 = vrcp.f32 %v2655_v44 }
 0xb80   :  { %v2668_v45 = vpop.permute.xlu0 %2667 }
 0xb81   :  { %7559 = vmatpush3.msra.mxu1 %v2668_v45 }
 0xb82   :  { %7568 = vmatprep.subr.mxu1 %v8281_v9 }
 0xb83   :  { %v8037_v47 = vpop.eup %8036 }
 0xb84   :  { %v2660_v12 = vmul.f32 %v8037_v47, %v8029_v27 }
 0xb86   :  { %7561 = vmatmul.mubr.msk.f32.vlgmr.msra.gmra.mrb[28].mxu1 %vm337_vm2, %v2660_v12 }
 0xb87   :  { %7570 = vmatprep.mubr.msk.f32.mxu1 %vm8282_vm1, %v8281_v9  ;;  %v8039_v49 = vpop.eup %8038 }
 0xb88   :  { %v2664_v53 = vmul.f32 %v8039_v49, %v8031_v30 }
 0xba5   :  { %v2652_v17 = vpop.xlane.xlu1 %2651 }
 0xba6   :  { %8040 = vrcp.f32 %v2652_v17 }
 0xba9   :  { %v2658_v18 = vpop.xlane.xlu1 %2657 }
 0xbaa   :  { %8042 = vrcp.f32 %v2658_v18 }
 0xbad   :  { %v2744_v46 = vpop.permute.xlu1 %2743 }
 0xbae   :  { %7564 = vmatpush3.msra.mxu0 %v2744_v46 }
 0xbaf   :  { %7573 = vmatprep.subr.mxu0 %v8281_v9 }
 0xbb0   :  { %v8041_v50 = vpop.eup %8040 }
 0xbb1   :  { %v2820_v51 = vpop.permute.xlu1 %2819  ;;  %v2662_v52 = vmul.f32 %v8041_v50, %v8033_v41  ;;  %v7087_v41 = vld [vmem:[%s9428_s7] ss:$0 sm:$0xff] }
 0xbb2   :  { %7569 = vmatpush3.msra.mxu1 %v2820_v51 }
 0xbb3   :  { %7566 = vmatmul.mubr.msk.f32.vlgmr.msra.gmra.mrb[32].mxu0 %vm337_vm2, %v2662_v52  ;;  %7571 = vmatmul.mubr.msk.f32.vlgmr.msra.gmra.mrb[30].mxu1 %vm337_vm2, %v2664_v53 }
 0xbb4   :  { %v8043_v54 = vpop.eup %8042  ;;  %7575 = vmatprep.mubr.msk.f32.mxu0 %vm8282_vm1, %v8281_v9  ;;  %7872 = vmatprep.subr.bf16.mxu1 %v7871_v61 }
 0xbb5   :  { %v2896_v55 = vpop.permute.xlu1 %2895  ;;  %v2666_v56 = vmul.f32 %v8043_v54, %v8035_v43  ;;  %7874 = vmatpush3.bf16.msra.mxu1 %v7871_v61 }
 0xbb6   :  { %7574 = vmatpush3.msra.mxu0 %v2896_v55  ;;  %7876 = vmatprep.subr.bf16.mxu1 %v7875_v0 }
 0xbb7   :  { %7576 = vmatmul.mubr.msk.f32.vlgmr.msra.gmra.mrb[34].mxu0 %vm337_vm2, %v2666_v56 }
 0xbb9   :  { %7878 = vmatpush3.bf16.msra.mxu1 %v7875_v0 }
 0xc59   :  { %v2739_v1 = vpop.f32.mrb[28].mxu1 }
 0xc5a   :  { %3007 = vrot.lane.b32.xlu0 %v2739_v1, %s9447_s27  ;;  %v7562_v2 = vpop.f32.mrb[29].mxu1 }
 0xc5e   :  { %2979 = vrot.lane.b32.xlu0 %v8736_v39, %s9451_s2  ;;  %v2976_v39 = vpop.permute.xlu0 %2975 }
 0xc5f   :  { %v3019_v16 = vsel %vm337_vm2, %v8660_v25, %v2976_v39 }
 0xc62   :  { %2995 = vrot.lane.b32.xlu0 %v8810_v58, %s9449_s28  ;;  %v2992_v58 = vpop.permute.xlu0 %2991 }
 0xc63   :  { %v3024_v19 = vsel %vm3023_vm3, %v3019_v16, %v2992_v58  ;;  %v3221_v58 = vld [vmem:[#allocation8 + $0x10] sm:$0xff]  ;;  %v3222_v16 = vld [vmem:[#allocation8 + $0x18] sm:$0xff] }
 0xc86   :  { %v2815_v5 = vpop.f32.mrb[32].mxu0  ;;  %v2891_v7 = vpop.f32.mrb[30].mxu1 }
 0xc87   :  { %3011 = vrot.lane.b32.xlu0 %v2891_v7, %s9447_s27  ;;  %v7572_v10 = vpop.f32.mrb[31].mxu1  ;;  %3009 = vrot.lane.b32.xlu1 %v2815_v5, %s9447_s27  ;;  %v7567_v11 = vpop.f32.mrb[33].mxu0 }
 0xc8a   :  { %v2967_v13 = vpop.f32.mrb[34].mxu0 }
 0xc8b   :  { %2981 = vrot.lane.b32.xlu1 %v8741_v48, %s9451_s2  ;;  %v7577_v15 = vpop.f32.mrb[35].mxu0  ;;  %v2978_v48 = vpop.permute.xlu1 %2977 }
 0xc8c   :  { %v3020_v26 = vsel %vm337_vm2, %v8658_v24, %v2978_v48  ;;  %v3220_v15 = vld [vmem:[#allocation8 + $0x8] sm:$0xff] }
 0xc8f   :  { %2997 = vrot.lane.b32.xlu1 %v8814_v3, %s9449_s28  ;;  %v2994_v23 = vpop.permute.xlu1 %2993 }
 0xc90   :  { %v3025_v29 = vsel %vm3023_vm3, %v3020_v26, %v2994_v23 }
 0xc93   :  { %3013 = vrot.lane.b32.xlu1 %v2967_v13, %s9447_s27  ;;  %v3219_v13 = vld [vmem:[#allocation8] sm:$0xff] }
 0xc94   :  { %v7879_v39 = vpack.c.bf16 %v3220_v15, %v3219_v13 }
 0xc96   :  { %7880 = vmatprep.subr.bf16.mxu0 %v7879_v39 }
 0xc97   :  { %7882 = vmatpush3.bf16.msra.mxu0 %v7879_v39 }
 0xccc   :  { %v3008_v20 = vpop.permute.xlu0 %3007 }
 0xccd   :  { %v3029_v21 = vsel %vm3028_vm4, %v3024_v19, %v3008_v20  ;;  %v7883_v19 = vpack.c.bf16 %v3222_v16, %v3221_v58 }
 0xcce   :  { %7586 = vmatprep.mubr.msk.f32.mxu1 %vm152_vm0, %v3029_v21 }
 0xccf   :  { %7884 = vmatprep.subr.bf16.mxu0 %v7883_v19 }
 0xcd0   :  { %v2980_v22 = vpop.permute.xlu0 %2979  ;;  %7886 = vmatpush3.bf16.msra.mxu0 %v7883_v19 }
 0xcd1   :  { %v3021_v27 = vsel %vm337_vm2, %v8662_v28, %v2980_v22 }
 0xcd4   :  { %v2996_v3 = vpop.permute.xlu0 %2995 }
 0xcd5   :  { %v3026_v25 = vsel %vm3023_vm3, %v3021_v27, %v2996_v3 }
 0xcf9   :  { %v3012_v30 = vpop.permute.xlu0 %3011  ;;  %v3010_v31 = vpop.permute.xlu1 %3009 }
 0xcfa   :  { %v3031_v32 = vsel %vm3028_vm4, %v3026_v25, %v3012_v30  ;;  %v3030_v33 = vsel %vm3028_vm4, %v3025_v29, %v3010_v31  ;;  %v7092_v25 = vld [vmem:[%s9429_s8] ss:$0 sm:$0xff] }
 0xcfb   :  { %7587 = vmatmul.mubr.msk.f32.vlgmr.msra.gmra.mrb[32].mxu1 %vm152_vm0, %v3030_v33 }
 0xcfc   :  { %7589 = vmatprep.mubr.msk.f32.mxu1 %vm152_vm0, %v3031_v32 }
 0xcfd   :  { %v2982_v34 = vpop.permute.xlu1 %2981 }
 0xcfe   :  { %v3022_v24 = vsel %vm337_vm2, %v8666_v36, %v2982_v34 }
 0xd01   :  { %v2998_v35 = vpop.permute.xlu1 %2997 }
 0xd02   :  { %v3027_v28 = vsel %vm3023_vm3, %v3022_v24, %v2998_v35  ;;  %v7093_v24 = vld [vmem:[%s9430_s9] ss:$0 sm:$0xff] }
 0xd05   :  { %v3014_v38 = vpop.permute.xlu1 %3013 }
 0xd06   :  { %v3032_v40 = vsel %vm3028_vm4, %v3027_v28, %v3014_v38 }
 0xd07   :  { %7590 = vmatmul.mubr.msk.f32.gmra.mrb[34].mxu1 %vm152_vm0, %v3032_v40 }
 0xdce   :  { %v7588_v42 = vpop.f32.mrb[32].mxu1 }
 0xdcf   :  { %v3128_v43 = vadd.f32 %v7588_v42, %v7087_v41  ;;  %v3122_v14 = vpop.f32.mrb[33].mxu1 }
 0xdd0   :  { %v3123_v37 = vadd.f32 %v7087_v41, %v3122_v14 }
 0xdd1   :  { %v3142_v44 = vadd.f32 %v3128_v43, %v8529_v4 }
 0xdd2   :  { %v3141_v45 = vadd.f32 %v3123_v37, %v8525_v62 }
 0xdd3   :  { %v3150_v36 = vsel %vm152_vm0, %v3142_v44, 0.0 }
 0xdd4   :  { %3151 = vadd.xlane.f32.xlu1 %v3150_v36  ;;  %v3147_v47 = vsel %vm152_vm0, %v3141_v45, 0.0 }
 0xdd5   :  { %3148 = vadd.xlane.f32.xlu0 %v3147_v47 }
 0xdda   :  { %v7591_v12 = vpop.f32.mrb[34].mxu1 }
 0xddb   :  { %v3132_v17 = vpop.f32.mrb[35].mxu1  ;;  %v3138_v18 = vadd.f32 %v7591_v12, %v7087_v41 }
 0xddc   :  { %v3133_v46 = vadd.f32 %v7087_v41, %v3132_v17  ;;  %v3363_v17 = vld [vmem:[%s9433_s12] sm:$0xff] }
 0xddd   :  { %v3144_v50 = vadd.f32 %v3138_v18, %v8537_v8  ;;  %v3364_v18 = vld [vmem:[%s9433_s12 + $0x8] sm:$0xff] }
 0xdde   :  { %v3143_v49 = vadd.f32 %v3133_v46, %v8531_v6  ;;  %v7887_v46 = vpack.c.bf16 %v3364_v18, %v3363_v17 }
 0xddf   :  { %v3156_v4 = vsel %vm152_vm0, %v3144_v50, 0.0 }
 0xde0   :  { %v3153_v51 = vsel %vm152_vm0, %v3143_v49, 0.0  ;;  %7888 = vmatprep.subr.bf16.mxu1 %v7887_v46 }
 0xde1   :  { %3154 = vadd.xlane.f32.xlu0 %v3153_v51  ;;  %7890 = vmatpush3.bf16.msra.mxu1 %v7887_v46 }
 0xde5   :  { %3157 = vadd.xlane.f32.xlu0 %v3156_v4  ;;  %v3367_v4 = vld [vmem:[%s9433_s12 + $0x20] sm:$0xff] }
 0xe61   :  { %v3152_v62 = vpop.xlane.xlu1 %3151 }
 0xe62   :  { %v3160_v52 = vmul.f32 0.03125, %v3152_v62  ;;  %v3149_v53 = vpop.xlane.xlu0 %3148  ;;  %v3368_v62 = vld [vmem:[%s9433_s12 + $0x28] sm:$0xff] }
 0xe63   :  { %v3159_v54 = vmul.f32 0.03125, %v3149_v53  ;;  %v3369_v53 = vld [vmem:[%s9433_s12 + $0x30] sm:$0xff] }
 0xe64   :  { %v3164_v55 = vsub.f32 %v3142_v44, %v3160_v52  ;;  %v7895_v52 = vpack.c.bf16 %v3368_v62, %v3367_v4 }
 0xe65   :  { %v3163_v56 = vsub.f32 %v3141_v45, %v3159_v54  ;;  %v3370_v54 = vld [vmem:[%s9433_s12 + $0x38] sm:$0xff] }
 0xe66   :  { %v3168_v57 = vmul.f32 %v3164_v55, %v3164_v55 }
 0xe67   :  { %v3167_v59 = vmul.f32 %v3163_v56, %v3163_v56 }
 0xe68   :  { %v3174_v60 = vsel %vm152_vm0, %v3168_v57, 0.0 }
 0xe69   :  { %3175 = vadd.xlane.f32.xlu1 %v3174_v60  ;;  %v3171_v6 = vsel %vm152_vm0, %v3167_v59, 0.0 }
 0xe6a   :  { %3172 = vadd.xlane.f32.xlu0 %v3171_v6 }
 0xe6e   :  { %v3155_v8 = vpop.xlane.xlu0 %3154 }
 0xe6f   :  { %v3161_v61 = vmul.f32 0.03125, %v3155_v8 }
 0xe71   :  { %v3165_v63 = vsub.f32 %v3143_v49, %v3161_v61  ;;  %v3365_v49 = vld [vmem:[%s9433_s12 + $0x10] sm:$0xff] }
 0xe72   :  { %v3158_v0 = vpop.xlane.xlu0 %3157 }
 0xe73   :  { %v3162_v1 = vmul.f32 0.03125, %v3158_v0  ;;  %v3169_v2 = vmul.f32 %v3165_v63, %v3165_v63 }
 0xe75   :  { %v3166_v5 = vsub.f32 %v3144_v50, %v3162_v1  ;;  %v3177_v7 = vsel %vm152_vm0, %v3169_v2, 0.0  ;;  %v3366_v50 = vld [vmem:[%s9433_s12 + $0x18] sm:$0xff] }
 0xe76   :  { %3178 = vadd.xlane.f32.xlu0 %v3177_v7  ;;  %v7891_v51 = vpack.c.bf16 %v3366_v50, %v3365_v49 }
 0xe77   :  { %v3170_v10 = vmul.f32 %v3166_v5, %v3166_v5 }
 0xe78   :  { %7892 = vmatprep.subr.bf16.mxu1 %v7891_v51 }
 0xe79   :  { %v3180_v11 = vsel %vm152_vm0, %v3170_v10, 0.0  ;;  %7894 = vmatpush3.bf16.msra.mxu1 %v7891_v51 }
 0xe7a   :  { %3181 = vadd.xlane.f32.xlu1 %v3180_v11  ;;  %7896 = vmatprep.subr.bf16.mxu1 %v7895_v52 }
 0xe7d   :  { %7898 = vmatpush3.bf16.msra.mxu1 %v7895_v52 }
 0xef6   :  { %v3176_v20 = vpop.xlane.xlu1 %3175 }
 0xef7   :  { %v3184_v21 = vmul.f32 0.03125, %v3176_v20  ;;  %v3173_v48 = vpop.xlane.xlu0 %3172 }
 0xef8   :  { %v3183_v22 = vmul.f32 0.03125, %v3173_v48 }
 0xef9   :  { %v3188_v23 = vadd.f32 1e-12, %v3184_v21 }
 0xefa   :  { %v3187_v3 = vadd.f32 1e-12, %v3183_v22 }
 0xefb   :  { %8044 = vrsqrt.f32 %v3188_v23 }
 0xefc   :  { %8046 = vrsqrt.f32 %v3187_v3 }
 0xf03   :  { %v3179_v26 = vpop.xlane.xlu0 %3178 }
 0xf04   :  { %v3185_v27 = vmul.f32 0.03125, %v3179_v26 }
 0xf05   :  { %v8045_v29 = vpop.eup %8044 }
 0xf06   :  { %v8047_v30 = vpop.eup %8046  ;;  %v3196_v31 = vmul.f32 %v8045_v29, %v3164_v55  ;;  %v3189_v32 = vadd.f32 1e-12, %v3185_v27  ;;  %v7899_v55 = vpack.c.bf16 %v3370_v54, %v3369_v53 }
 0xf07   :  { %v3182_v33 = vpop.xlane.xlu1 %3181  ;;  %v3195_v34 = vmul.f32 %v8047_v30, %v3163_v56  ;;  %v7094_v56 = vld [vmem:[%s9432_s11] ss:$0 sm:$0xff] }
 0xf08   :  { %8048 = vrsqrt.f32 %v3189_v32  ;;  %v3186_v35 = vmul.f32 0.03125, %v3182_v33  ;;  %v3206_v28 = vmul.f32 %v7092_v25, %v3196_v31  ;;  %7900 = vmatprep.subr.bf16.mxu1 %v7899_v55 }
 0xf09   :  { %v3205_v38 = vmul.f32 %v7092_v25, %v3195_v34  ;;  %7902 = vmatpush3.bf16.msra.mxu1 %v7899_v55 }
 0xf0a   :  { %v3190_v40 = vadd.f32 1e-12, %v3186_v35  ;;  %v8901_v42 = vadd.f32 %v7093_v24, %v3206_v28  ;;  %7652 = vmatprep.subr.mxu1 %v8281_v9 }
 0xf0b   :  { %v8899_v41 = vadd.f32 %v7093_v24, %v3205_v38 }
 0xf0c   :  { %8050 = vrsqrt.f32 %v3190_v40 }
 0xf0d   :  { %7600 = vmatprep.mubr.msk.f32.mxu0 %vm152_vm0, %v8899_v41 }
 0xf0e   :  { %7601 = vmatmul.mubr.msk.f32.vlgmr.msra.gmra.mrb[36].mxu0 %vm152_vm0, %v8901_v42 }
 0xf12   :  { %v8049_v43 = vpop.eup %8048 }
 0xf13   :  { %v3197_v14 = vmul.f32 %v8049_v43, %v3165_v63 }
 0xf15   :  { %v3207_v37 = vmul.f32 %v7092_v25, %v3197_v14 }
 0xf16   :  { %v8051_v44 = vpop.eup %8050 }
 0xf17   :  { %v8907_v45 = vadd.f32 %v7093_v24, %v3207_v37  ;;  %v3198_v36 = vmul.f32 %v8051_v44, %v3166_v5 }
 0xf19   :  { %7603 = vmatprep.mubr.msk.f32.mxu0 %vm152_vm0, %v8907_v45  ;;  %v3208_v47 = vmul.f32 %v7092_v25, %v3198_v36  ;;  %v7099_v36 = vld [vmem:[%s9434_s13] ss:$0 sm:$0xff] }
 0xf1b   :  { %v8911_v12 = vadd.f32 %v7093_v24, %v3208_v47 }
 0xf1d   :  { %7604 = vmatmul.mubr.msk.f32.gmra.mrb[38].mxu0 %vm152_vm0, %v8911_v12 }
 0xfe1   :  { %v7602_v57 = vpop.f32.mrb[36].mxu0 }
 0xfe2   :  { %v3314_v59 = vadd.f32 %v7602_v57, %v7094_v56  ;;  %v3308_v60 = vpop.f32.mrb[37].mxu0 }
 0xfe3   :  { %v3309_v6 = vadd.f32 %v7094_v56, %v3308_v60 }
 0xfe4   :  { %v3332_v8 = vmul.f32 0.044715, %v3314_v59  ;;  %v3328_v31 = vmul.f32 0.5, %v3314_v59 }
 0xfe5   :  { %v3331_v61 = vmul.f32 0.044715, %v3309_v6  ;;  %v3327_v25 = vmul.f32 0.5, %v3309_v6 }
 0xfe6   :  { %v3336_v63 = vmul.f32 %v3332_v8, %v3314_v59 }
 0xfe7   :  { %v3335_v0 = vmul.f32 %v3331_v61, %v3309_v6 }
 0xfe8   :  { %v3340_v1 = vmul.f32 %v3336_v63, %v3314_v59 }
 0xfe9   :  { %v3339_v2 = vmul.f32 %v3335_v0, %v3309_v6 }
 0xfea   :  { %v3344_v5 = vadd.f32 %v3340_v1, %v3314_v59 }
 0xfeb   :  { %v3343_v7 = vadd.f32 %v3339_v2, %v3309_v6 }
 0xfec   :  { %v3348_v10 = vmul.f32 0.7978846, %v3344_v5 }
 0xfed   :  { %v3347_v11 = vmul.f32 0.7978846, %v3343_v7 }
 0xfee   :  { %8052 = vtanh.f32 %v3348_v10 }
 0xfef   :  { %8054 = vtanh.f32 %v3347_v11 }
 0xff0   :  { %v7605_v13 = vpop.f32.mrb[38].mxu0 }
 0xff1   :  { %v3324_v15 = vadd.f32 %v7605_v13, %v7094_v56  ;;  %v3318_v39 = vpop.f32.mrb[39].mxu0 }
 0xff2   :  { %v3319_v58 = vadd.f32 %v7094_v56, %v3318_v39 }
 0xff3   :  { %v3334_v16 = vmul.f32 0.044715, %v3324_v15  ;;  %v3330_v14 = vmul.f32 0.5, %v3324_v15 }
 0xff4   :  { %v3333_v19 = vmul.f32 0.044715, %v3319_v58  ;;  %v3329_v40 = vmul.f32 0.5, %v3319_v58 }
 0xff5   :  { %v3338_v20 = vmul.f32 %v3334_v16, %v3324_v15  ;;  %v3555_v16 = vld [vmem:[#allocation5 + $0x20] sm:$0xff] }
 0xff6   :  { %v3337_v21 = vmul.f32 %v3333_v19, %v3319_v58  ;;  %v3556_v19 = vld [vmem:[#allocation5 + $0x28] sm:$0xff] }
 0xff7   :  { %v3342_v48 = vmul.f32 %v3338_v20, %v3324_v15  ;;  %v7903_v20 = vpack.c.bf16 %v3556_v19, %v3555_v16 }
 0xff8   :  { %v8053_v22 = vpop.eup %8052  ;;  %v3341_v23 = vmul.f32 %v3337_v21, %v3319_v58  ;;  %v3557_v21 = vld [vmem:[#allocation5 + $0x30] sm:$0xff] }
 0xff9   :  { %v8055_v3 = vpop.eup %8054  ;;  %v3356_v26 = vadd.f32 1.0, %v8053_v22  ;;  %v3346_v27 = vadd.f32 %v3342_v48, %v3324_v15  ;;  %7904 = vmatprep.subr.bf16.mxu0 %v7903_v20  ;;  %v3558_v48 = vld [vmem:[#allocation5 + $0x38] sm:$0xff] }
 0xffa   :  { %v3345_v29 = vadd.f32 %v3341_v23, %v3319_v58  ;;  %v3355_v30 = vadd.f32 1.0, %v8055_v3  ;;  %7906 = vmatpush3.bf16.msra.mxu0 %v7903_v20  ;;  %v7907_v22 = vpack.c.bf16 %v3558_v48, %v3557_v21 }
 0xffb   :  { %v3350_v32 = vmul.f32 0.7978846, %v3346_v27  ;;  %v3360_v35 = vmul.f32 %v3356_v26, %v3328_v31 }
 0xffc   :  { %v3359_v33 = vmul.f32 %v3355_v30, %v3327_v25  ;;  %v3349_v34 = vmul.f32 0.7978846, %v3345_v29  ;;  %7908 = vmatprep.subr.bf16.mxu0 %v7907_v22 }
 0xffd   :  { %8056 = vtanh.f32 %v3350_v32  ;;  %v7104_v32 = vld [vmem:[%s9435_s14] ss:$0 sm:$0xff] }
 0xffe   :  { %7622 = vmatprep.mubr.msk.f32.mxu1 %vm3378_vm5, %v3359_v33  ;;  %8058 = vtanh.f32 %v3349_v34  ;;  %7910 = vmatpush3.bf16.msra.mxu0 %v7907_v22 }
 0xfff   :  { %7623 = vmatmul.mubr.msk.f32.vlgmr.msra.gmra.mrb[36].mxu1 %vm3378_vm5, %v3360_v35  ;;  %7642 = vmatprep.subr.mxu0 %v8281_v9 }
0x1007   :  { %v8057_v24 = vpop.eup %8056 }
0x1008   :  { %v8059_v28 = vpop.eup %8058  ;;  %v3358_v38 = vadd.f32 1.0, %v8057_v24 }
0x1009   :  { %v3357_v43 = vadd.f32 1.0, %v8059_v28 }
0x100a   :  { %v3362_v44 = vmul.f32 %v3358_v38, %v3330_v14 }
0x100b   :  { %v3361_v37 = vmul.f32 %v3357_v43, %v3329_v40  ;;  %v7105_v43 = vld [vmem:[%s9436_s15] ss:$0 sm:$0xff] }
0x100d   :  { %7625 = vmatprep.mubr.msk.f32.mxu1 %vm3378_vm5, %v3361_v37 }
0x100e   :  { %7626 = vmatmul.mubr.msk.f32.gmra.mrb[38].mxu1 %vm3378_vm5, %v3362_v44 }
0x100f   :  { %7654 = vmatprep.mubr.msk.f32.mxu1 %vm8282_vm1, %v8281_v9 }
0x10d2   :  { %v7624_v47 = vpop.f32.mrb[36].mxu1 }
0x10d3   :  { %v3463_v17 = vadd.f32 %v7624_v47, %v7099_v36  ;;  %v3457_v18 = vpop.f32.mrb[37].mxu1 }
0x10d4   :  { %v3458_v46 = vadd.f32 %v7099_v36, %v3457_v18 }
0x10d5   :  { %v3477_v49 = vadd.f32 %v3463_v17, %v8901_v42 }
0x10d6   :  { %v3476_v50 = vadd.f32 %v3458_v46, %v8899_v41 }
0x10d7   :  { %v3485_v51 = vsel %vm152_vm0, %v3477_v49, 0.0 }
0x10d8   :  { %3486 = vadd.xlane.f32.xlu1 %v3485_v51  ;;  %v3482_v4 = vsel %vm152_vm0, %v3476_v50, 0.0 }
0x10d9   :  { %3483 = vadd.xlane.f32.xlu0 %v3482_v4 }
0x10e1   :  { %v7627_v62 = vpop.f32.mrb[38].mxu1 }
0x10e2   :  { %v3473_v52 = vadd.f32 %v7627_v62, %v7099_v36  ;;  %v3467_v53 = vpop.f32.mrb[39].mxu1 }
0x10e3   :  { %v3468_v54 = vadd.f32 %v7099_v36, %v3467_v53 }
0x10e4   :  { %v3479_v55 = vadd.f32 %v3473_v52, %v8911_v12  ;;  %v7107_v52 = vld [vmem:[%s9465_s6 + $0x1] ss:$0 sm:$0xff]  ;;  %s9466_s6 = smov 8  }
0x10e5   :  { %v3478_v56 = vadd.f32 %v3468_v54, %v8907_v45 }
0x10e6   :  { %v3491_v57 = vsel %vm152_vm0, %v3479_v55, 0.0 }
0x10e7   :  { %3492 = vadd.xlane.f32.xlu1 %v3491_v57  ;;  %v3488_v42 = vsel %vm152_vm0, %v3478_v56, 0.0 }
0x10e8   :  { %3489 = vadd.xlane.f32.xlu0 %v3488_v42 }
0x1165   :  { %v3487_v41 = vpop.xlane.xlu1 %3486 }
0x1166   :  { %v3495_v59 = vmul.f32 0.03125, %v3487_v41  ;;  %v3484_v60 = vpop.xlane.xlu0 %3483 }
0x1167   :  { %v3494_v6 = vmul.f32 0.03125, %v3484_v60 }
0x1168   :  { %v3499_v8 = vsub.f32 %v3477_v49, %v3495_v59 }
0x1169   :  { %v3498_v61 = vsub.f32 %v3476_v50, %v3494_v6 }
0x116a   :  { %v3503_v63 = vmul.f32 %v3499_v8, %v3499_v8 }
0x116b   :  { %v3502_v0 = vmul.f32 %v3498_v61, %v3498_v61 }
0x116c   :  { %v3509_v1 = vsel %vm152_vm0, %v3503_v63, 0.0 }
0x116d   :  { %3510 = vadd.xlane.f32.xlu1 %v3509_v1  ;;  %v3506_v12 = vsel %vm152_vm0, %v3502_v0, 0.0 }
0x116e   :  { %3507 = vadd.xlane.f32.xlu0 %v3506_v12 }
0x1174   :  { %v3493_v45 = vpop.xlane.xlu1 %3492 }
0x1175   :  { %v3497_v2 = vmul.f32 0.03125, %v3493_v45  ;;  %v3490_v5 = vpop.xlane.xlu0 %3489 }
0x1176   :  { %v3496_v7 = vmul.f32 0.03125, %v3490_v5 }
0x1177   :  { %v3501_v10 = vsub.f32 %v3479_v55, %v3497_v2 }
0x1178   :  { %v3500_v11 = vsub.f32 %v3478_v56, %v3496_v7 }
0x1179   :  { %v3505_v13 = vmul.f32 %v3501_v10, %v3501_v10 }
0x117a   :  { %v3504_v15 = vmul.f32 %v3500_v11, %v3500_v11 }
0x117b   :  { %v3515_v39 = vsel %vm152_vm0, %v3505_v13, 0.0 }
0x117c   :  { %3516 = vadd.xlane.f32.xlu1 %v3515_v39  ;;  %v3512_v58 = vsel %vm152_vm0, %v3504_v15, 0.0 }
0x117d   :  { %3513 = vadd.xlane.f32.xlu0 %v3512_v58 }
0x11fa   :  { %v3511_v23 = vpop.xlane.xlu1 %3510 }
0x11fb   :  { %v3519_v3 = vmul.f32 0.03125, %v3511_v23  ;;  %v3508_v26 = vpop.xlane.xlu0 %3507 }
0x11fc   :  { %v3518_v27 = vmul.f32 0.03125, %v3508_v26 }
0x11fd   :  { %v3523_v29 = vadd.f32 1e-12, %v3519_v3 }
0x11fe   :  { %v3522_v25 = vadd.f32 1e-12, %v3518_v27 }
0x11ff   :  { %8060 = vrsqrt.f32 %v3523_v29 }
0x1200   :  { %8062 = vrsqrt.f32 %v3522_v25 }
0x1209   :  { %v8061_v30 = vpop.eup %8060  ;;  %v3517_v31 = vpop.xlane.xlu1 %3516 }
0x120a   :  { %v8063_v33 = vpop.eup %8062  ;;  %v3531_v34 = vmul.f32 %v8061_v30, %v3499_v8  ;;  %v3521_v35 = vmul.f32 0.03125, %v3517_v31  ;;  %v3514_v24 = vpop.xlane.xlu0 %3513 }
0x120b   :  { %v3520_v28 = vmul.f32 0.03125, %v3514_v24  ;;  %v3530_v38 = vmul.f32 %v8063_v33, %v3498_v61 }
0x120c   :  { %v3525_v40 = vadd.f32 1e-12, %v3521_v35  ;;  %v3541_v14 = vmul.f32 %v7104_v32, %v3531_v34 }
0x120d   :  { %v3524_v37 = vadd.f32 1e-12, %v3520_v28  ;;  %v3540_v44 = vmul.f32 %v7104_v32, %v3530_v38 }
0x120e   :  { %8064 = vrsqrt.f32 %v3525_v40  ;;  %v8973_v47 = vadd.f32 %v7105_v43, %v3541_v14 }
0x120f   :  { %8066 = vrsqrt.f32 %v3524_v37  ;;  %v8971_v36 = vadd.f32 %v7105_v43, %v3540_v44 }
0x1211   :  { %7636 = vmatprep.mubr.msk.f32.mxu0 %vm152_vm0, %v8971_v36 }
0x1212   :  { %7637 = vmatmul.mubr.msk.f32.vlgmr.msra.gmra.mrb[40].mxu0 %vm152_vm0, %v8973_v47 }
0x1218   :  { %v8065_v17 = vpop.eup %8064 }
0x1219   :  { %v8067_v18 = vpop.eup %8066  ;;  %v3533_v46 = vmul.f32 %v8065_v17, %v3501_v10 }
0x121a   :  { %v3532_v49 = vmul.f32 %v8067_v18, %v3500_v11 }
0x121b   :  { %v3543_v50 = vmul.f32 %v7104_v32, %v3533_v46 }
0x121c   :  { %v3542_v51 = vmul.f32 %v7104_v32, %v3532_v49 }
0x121d   :  { %v8981_v62 = vadd.f32 %v7105_v43, %v3543_v50 }
0x121e   :  { %v8979_v4 = vadd.f32 %v7105_v43, %v3542_v51 }
0x1220   :  { %7639 = vmatprep.mubr.msk.f32.mxu0 %vm152_vm0, %v8979_v4 }
0x1221   :  { %7640 = vmatmul.mubr.msk.f32.gmra.mrb[42].mxu0 %vm152_vm0, %v8981_v62 }
0x1222   :  { %7644 = vmatprep.mubr.msk.f32.mxu0 %vm8282_vm1, %v8281_v9 }
0x12e5   :  { %v7638_v53 = vpop.f32.mrb[40].mxu0 }
0x12e6   :  { %v8992_v54 = vadd.f32 %v7638_v53, %v7107_v52  ;;  %v3645_v55 = vpop.f32.mrb[41].mxu0 }
0x12e7   :  { %v8994_v56 = vadd.f32 %v7107_v52, %v3645_v55 }
0x12e8   :  { %3742 = vrot.lane.b32.xlu1 %v8992_v54, %s8283_s3 }
0x12e9   :  { %3665 = vrot.lane.b32.xlu0 %v8994_v56, %s8283_s3 }
0x12f4   :  { %v7641_v57 = vpop.f32.mrb[42].mxu0 }
0x12f5   :  { %v3655_v42 = vpop.f32.mrb[43].mxu0  ;;  %v9004_v59 = vadd.f32 %v7641_v57, %v7107_v52 }
0x12f6   :  { %v9000_v41 = vadd.f32 %v7107_v52, %v3655_v42 }
0x12f8   :  { %3819 = vrot.lane.b32.xlu1 %v9000_v41, %s8283_s3 }
0x12fc   :  { %3896 = vrot.lane.b32.xlu1 %v9004_v59, %s8283_s3  ;;  %s9467_s3 = smov 16  }
0x135a   :  { %v3743_v6 = vpop.permute.xlu1 %3742 }
0x135b   :  { %v3666_v60 = vpop.permute.xlu0 %3665 }
0x135c   :  { %7643 = vmatpush3.xpose.msk.msra.mxu0 %vm337_vm2, %v3666_v60 }
0x135d   :  { %7647 = vmatprep.subr.mxu0 %v8281_v9 }
0x135f   :  { %7645 = vmatmul.mubr.msk.f32.vlgmr.msra.gmra.mrb[44].mxu0 %vm337_vm2, %v8994_v56 }
0x1360   :  { %7648 = vmatpush3.xpose.msk.msra.mxu0 %vm337_vm2, %v3743_v6  ;;  %7649 = vmatprep.mubr.msk.f32.mxu0 %vm8282_vm1, %v8281_v9 }
0x1361   :  { %7657 = vmatprep.subr.mxu0 %v8281_v9 }
0x1363   :  { %7650 = vmatmul.mubr.msk.f32.vlgmr.msra.gmra.mrb[46].mxu0 %vm337_vm2, %v8992_v54 }
0x1364   :  { %7659 = vmatprep.mubr.msk.f32.mxu0 %vm8282_vm1, %v8281_v9 }
0x136a   :  { %v3820_v8 = vpop.permute.xlu1 %3819 }
0x136b   :  { %7653 = vmatpush3.xpose.msk.msra.mxu1 %vm337_vm2, %v3820_v8 }
0x136c   :  { %7662 = vmatprep.subr.mxu1 %v8281_v9 }
0x136e   :  { %7655 = vmatmul.mubr.msk.f32.vlgmr.msra.gmra.mrb[40].mxu1 %vm337_vm2, %v9000_v41  ;;  %v3897_v61 = vpop.permute.xlu1 %3896 }
0x136f   :  { %7658 = vmatpush3.xpose.msk.msra.mxu0 %vm337_vm2, %v3897_v61  ;;  %7664 = vmatprep.mubr.msk.f32.mxu1 %vm8282_vm1, %v8281_v9 }
0x1370   :  { %7667 = vmatprep.subr.mxu0 %v8281_v9 }
0x1372   :  { %7660 = vmatmul.mubr.msk.f32.vlgmr.msra.gmra.mrb[48].mxu0 %vm337_vm2, %v9004_v59 }
0x1373   :  { %7669 = vmatprep.mubr.msk.f32.mxu0 %vm8282_vm1, %v8281_v9 }
0x1432   :  { %v3737_v63 = vpop.f32.mrb[44].mxu0 }
0x1433   :  { %v7646_v0 = vpop.f32.mrb[45].mxu0  ;;  %v3972_v1 = vsel %vm337_vm2, %v3737_v63, -inf }
0x1434   :  { %3973 = vmax.xlane.f32.xlu0 %v3972_v1 }
0x1436   :  { %v3814_v12 = vpop.f32.mrb[46].mxu0 }
0x1437   :  { %v7651_v45 = vpop.f32.mrb[47].mxu0  ;;  %v3975_v2 = vsel %vm337_vm2, %v3814_v12, -inf }
0x1438   :  { %3976 = vmax.xlane.f32.xlu1 %v3975_v2 }
0x1441   :  { %v3891_v5 = vpop.f32.mrb[40].mxu1 }
0x1442   :  { %v7656_v7 = vpop.f32.mrb[41].mxu1  ;;  %v3978_v10 = vsel %vm337_vm2, %v3891_v5, -inf }
0x1443   :  { %3979 = vmax.xlane.f32.xlu0 %v3978_v10 }
0x1445   :  { %v3968_v11 = vpop.f32.mrb[48].mxu0 }
0x1446   :  { %v7661_v13 = vpop.f32.mrb[49].mxu0  ;;  %v3981_v15 = vsel %vm337_vm2, %v3968_v11, -inf }
0x1447   :  { %3982 = vmax.xlane.f32.xlu0 %v3981_v15 }
0x1449   :  { %4092 = vrot.lane.b32.xlu1 %v8992_v54, %s8284_s0 }
0x144d   :  { %4168 = vrot.lane.b32.xlu1 %v9000_v41, %s8284_s0 }
0x1451   :  { %4244 = vrot.lane.b32.xlu1 %v9004_v59, %s8284_s0 }
0x1455   :  { %4400 = vrot.lane.b32.xlu1 %v8992_v54, %s8285_s5 }
0x145d   :  { %4016 = vrot.lane.b32.xlu0 %v8994_v56, %s8284_s0  ;;  %s9468_s0 = smov 24  }
0x1461   :  { %4322 = vrot.lane.b32.xlu0 %v8994_v56, %s8285_s5 }
0x14c1   :  { %v3974_v39 = vpop.xlane.xlu0 %3973 }
0x14c2   :  { %v3984_v58 = vsub.f32 %v3737_v63, %v3974_v39 }
0x14c4   :  { %v3988_v16 = vmul.f32 1.442695, %v3984_v58 }
0x14c5   :  { %v3977_v19 = vpop.xlane.xlu1 %3976 }
0x14c6   :  { %8068 = vpow2.f32 %v3988_v16  ;;  %v3985_v20 = vsub.f32 %v3814_v12, %v3977_v19 }
0x14c8   :  { %v3990_v21 = vmul.f32 1.442695, %v3985_v20 }
0x14c9   :  { %v4093_v48 = vpop.permute.xlu1 %4092 }
0x14ca   :  { %8070 = vpow2.f32 %v3990_v21  ;;  %7668 = vmatpush3.msra.mxu0 %v4093_v48 }
0x14cb   :  { %7677 = vmatprep.subr.mxu0 %v8281_v9 }
0x14cd   :  { %v4169_v38 = vpop.permute.xlu1 %4168 }
0x14d0   :  { %v8069_v22 = vpop.eup %8068  ;;  %v3980_v23 = vpop.xlane.xlu0 %3979 }
0x14d1   :  { %v3986_v3 = vsub.f32 %v3891_v5, %v3980_v23  ;;  %v3996_v26 = vsel %vm337_vm2, %v8069_v22, 0.0  ;;  %v4245_v40 = vpop.permute.xlu1 %4244 }
0x14d2   :  { %3997 = vadd.xlane.f32.xlu0 %v3996_v26 }
0x14d3   :  { %v3992_v27 = vmul.f32 1.442695, %v3986_v3 }
0x14d4   :  { %v8071_v29 = vpop.eup %8070  ;;  %v3983_v25 = vpop.xlane.xlu0 %3982 }
0x14d5   :  { %8072 = vpow2.f32 %v3992_v27  ;;  %v3999_v30 = vsel %vm337_vm2, %v8071_v29, 0.0  ;;  %v3987_v34 = vsub.f32 %v3968_v11, %v3983_v25  ;;  %v4401_v14 = vpop.permute.xlu1 %4400 }
0x14d6   :  { %4000 = vadd.xlane.f32.xlu1 %v3999_v30 }
0x14d7   :  { %v3994_v35 = vmul.f32 1.442695, %v3987_v34 }
0x14d8   :  { %v4017_v31 = vpop.permute.xlu0 %4016 }
0x14d9   :  { %7663 = vmatpush3.msra.mxu1 %v4017_v31  ;;  %8074 = vpow2.f32 %v3994_v35 }
0x14da   :  { %7672 = vmatprep.subr.mxu1 %v8281_v9 }
0x14dc   :  { %v4323_v43 = vpop.permute.xlu0 %4322 }
0x14df   :  { %v8073_v32 = vpop.eup %8072 }
0x14e0   :  { %v4002_v33 = vsel %vm337_vm2, %v8073_v32, 0.0 }
0x14e1   :  { %4003 = vadd.xlane.f32.xlu0 %v4002_v33 }
0x14e3   :  { %v8075_v24 = vpop.eup %8074 }
0x14e4   :  { %v4005_v28 = vsel %vm337_vm2, %v8075_v24, 0.0 }
0x14e7   :  { %4398 = vrot.lane.b32.xlu1 %v8992_v54, %s8286_s22 }
0x14f7   :  { %4320 = vrot.lane.b32.xlu0 %v8994_v56, %s8286_s22 }
0x14fb   :  { %4478 = vrot.lane.b32.xlu0 %v9000_v41, %s8285_s5 }
0x14ff   :  { %4476 = vrot.lane.b32.xlu0 %v9000_v41, %s8286_s22 }
0x150b   :  { %4006 = vadd.xlane.f32.xlu1 %v4005_v28 }
0x151c   :  { %4556 = vrot.lane.b32.xlu1 %v9004_v59, %s8285_s5 }
0x1520   :  { %4554 = vrot.lane.b32.xlu1 %v9004_v59, %s8286_s22 }
0x155f   :  { %v3998_v37 = vpop.xlane.xlu0 %3997 }
0x1560   :  { %8076 = vrcp.f32 %v3998_v37 }
0x1563   :  { %v4001_v44 = vpop.xlane.xlu1 %4000 }
0x1564   :  { %8078 = vrcp.f32 %v4001_v44 }
0x1567   :  { %v4399_v42 = vpop.permute.xlu1 %4398 }
0x156a   :  { %v8077_v17 = vpop.eup %8076 }
0x156b   :  { %v4009_v18 = vmul.f32 %v8077_v17, %v8069_v22 }
0x156d   :  { %7665 = vmatmul.mubr.msk.f32.vlgmr.msra.gmra.mrb[42].mxu1 %vm337_vm2, %v4009_v18 }
0x156e   :  { %v8079_v46 = vpop.eup %8078  ;;  %7673 = vmatpush3.msra.mxu1 %v4169_v38  ;;  %v4004_v49 = vpop.xlane.xlu0 %4003  ;;  %7674 = vmatprep.mubr.msk.f32.mxu1 %vm8282_vm1, %v8281_v9 }
0x156f   :  { %v4011_v50 = vmul.f32 %v8079_v46, %v8071_v29  ;;  %8080 = vrcp.f32 %v4004_v49  ;;  %7682 = vmatprep.subr.mxu1 %v8281_v9 }
0x1571   :  { %7670 = vmatmul.mubr.msk.f32.vlgmr.msra.gmra.mrb[50].mxu0 %vm337_vm2, %v4011_v50 }
0x1572   :  { %7678 = vmatpush3.msra.mxu0 %v4245_v40  ;;  %7679 = vmatprep.mubr.msk.f32.mxu0 %vm8282_vm1, %v8281_v9  ;;  %v4321_v51 = vpop.permute.xlu0 %4320 }
0x1573   :  { %7687 = vmatprep.subr.mxu0 %v8281_v9 }
0x1576   :  { %v4479_v55 = vpop.permute.xlu0 %4478 }
0x1579   :  { %v8081_v52 = vpop.eup %8080 }
0x157a   :  { %v4013_v53 = vmul.f32 %v8081_v52, %v8073_v32  ;;  %v4477_v57 = vpop.permute.xlu0 %4476 }
0x157c   :  { %7675 = vmatmul.mubr.msk.f32.vlgmr.msra.gmra.mrb[44].mxu1 %vm337_vm2, %v4013_v53 }
0x157d   :  { %7683 = vmatpush3.xpose.msk.msra.mxu1 %vm337_vm2, %v4323_v43  ;;  %7684 = vmatprep.mubr.msk.f32.mxu1 %vm8282_vm1, %v8281_v9 }
0x157e   :  { %7692 = vmatprep.subr.mxu1 %v8281_v9 }
0x1580   :  { %7685 = vmatmul.mubr.msk.f32.vlgmr.msra.gmra.mrb[46].mxu1 %vm337_vm2, %v4321_v51 }
0x1581   :  { %7693 = vmatpush3.xpose.msk.msra.mxu1 %vm337_vm2, %v4479_v55  ;;  %7694 = vmatprep.mubr.msk.f32.mxu1 %vm8282_vm1, %v8281_v9 }
0x1582   :  { %7702 = vmatprep.subr.mxu1 %v8281_v9 }
0x1584   :  { %7695 = vmatmul.mubr.msk.f32.vlgmr.msra.gmra.mrb[48].mxu1 %vm337_vm2, %v4477_v57 }
0x1585   :  { %7704 = vmatprep.mubr.msk.f32.mxu1 %vm8282_vm1, %v8281_v9 }
0x1598   :  { %v4007_v60 = vpop.xlane.xlu1 %4006 }
0x1599   :  { %8082 = vrcp.f32 %v4007_v60 }
0x159c   :  { %v4557_v61 = vpop.permute.xlu1 %4556 }
0x15a0   :  { %v4555_v63 = vpop.permute.xlu1 %4554 }
0x15a3   :  { %v8083_v6 = vpop.eup %8082 }
0x15a4   :  { %v4015_v8 = vmul.f32 %v8083_v6, %v8075_v24 }
0x15a6   :  { %7680 = vmatmul.mubr.msk.f32.vlgmr.msra.gmra.mrb[52].mxu0 %vm337_vm2, %v4015_v8 }
0x15a7   :  { %7688 = vmatpush3.xpose.msk.msra.mxu0 %vm337_vm2, %v4401_v14  ;;  %7689 = vmatprep.mubr.msk.f32.mxu0 %vm8282_vm1, %v8281_v9 }
0x15a8   :  { %7697 = vmatprep.subr.mxu0 %v8281_v9 }
0x15aa   :  { %7690 = vmatmul.mubr.msk.f32.vlgmr.msra.gmra.mrb[54].mxu0 %vm337_vm2, %v4399_v42 }
0x15ab   :  { %7698 = vmatpush3.xpose.msk.msra.mxu0 %vm337_vm2, %v4557_v61  ;;  %7699 = vmatprep.mubr.msk.f32.mxu0 %vm8282_vm1, %v8281_v9 }
0x15ac   :  { %7707 = vmatprep.subr.mxu0 %v8281_v9 }
0x15ae   :  { %7700 = vmatmul.mubr.msk.f32.vlgmr.msra.gmra.mrb[56].mxu0 %vm337_vm2, %v4555_v63 }
0x15af   :  { %7709 = vmatprep.mubr.msk.f32.mxu0 %vm8282_vm1, %v8281_v9 }
0x1640   :  { %v9100_v0 = vpop.f32.mrb[42].mxu1 }
0x1641   :  { %v7666_v1 = vpop.f32.mrb[43].mxu1 }
0x1644   :  { %v9102_v12 = vpop.f32.mrb[50].mxu0 }
0x1645   :  { %v7671_v45 = vpop.f32.mrb[51].mxu0 }
0x164f   :  { %v9104_v2 = vpop.f32.mrb[44].mxu1 }
0x1650   :  { %v7676_v5 = vpop.f32.mrb[45].mxu1 }
0x1653   :  { %v4394_v7 = vpop.f32.mrb[46].mxu1 }
0x1654   :  { %v7686_v10 = vpop.f32.mrb[47].mxu1  ;;  %v4632_v11 = vsel %vm337_vm2, %v4394_v7, -inf }
0x1655   :  { %4633 = vmax.xlane.f32.xlu0 %v4632_v11 }
0x1657   :  { %v4550_v13 = vpop.f32.mrb[48].mxu1 }
0x1658   :  { %v7696_v15 = vpop.f32.mrb[49].mxu1  ;;  %v4638_v39 = vsel %vm337_vm2, %v4550_v13, -inf }
0x1659   :  { %4639 = vmax.xlane.f32.xlu0 %v4638_v39 }
0x1679   :  { %v9108_v58 = vpop.f32.mrb[52].mxu0 }
0x167a   :  { %v7681_v16 = vpop.f32.mrb[53].mxu0 }
0x167d   :  { %v4472_v19 = vpop.f32.mrb[54].mxu0 }
0x167e   :  { %v7691_v20 = vpop.f32.mrb[55].mxu0  ;;  %v4635_v21 = vsel %vm337_vm2, %v4472_v19, -inf }
0x167f   :  { %4636 = vmax.xlane.f32.xlu1 %v4635_v21 }
0x1681   :  { %v4628_v48 = vpop.f32.mrb[56].mxu0 }
0x1682   :  { %v7701_v22 = vpop.f32.mrb[57].mxu0  ;;  %v4641_v23 = vsel %vm337_vm2, %v4628_v48, -inf }
0x1683   :  { %4642 = vmax.xlane.f32.xlu0 %v4641_v23 }
0x1690   :  { %4752 = vrot.lane.b32.xlu1 %v8992_v54, %s8287_s25 }
0x1694   :  { %4828 = vrot.lane.b32.xlu1 %v9000_v41, %s8287_s25 }
0x1698   :  { %4904 = vrot.lane.b32.xlu1 %v9004_v59, %s8287_s25 }
0x1699   :  { %4676 = vrot.lane.b32.xlu0 %v8994_v56, %s8287_s25 }
0x169c   :  { %5060 = vrot.lane.b32.xlu1 %v8992_v54, %s8288_s30 }
0x169d   :  { %4982 = vrot.lane.b32.xlu0 %v8994_v56, %s8288_s30 }
0x16e2   :  { %v4634_v3 = vpop.xlane.xlu0 %4633 }
0x16e3   :  { %v4644_v26 = vsub.f32 %v4394_v7, %v4634_v3 }
0x16e5   :  { %v4648_v27 = vmul.f32 1.442695, %v4644_v26 }
0x16e6   :  { %v4640_v29 = vpop.xlane.xlu0 %4639 }
0x16e7   :  { %8084 = vpow2.f32 %v4648_v27  ;;  %v4646_v25 = vsub.f32 %v4550_v13, %v4640_v29 }
0x16e9   :  { %v4652_v30 = vmul.f32 1.442695, %v4646_v25 }
0x16eb   :  { %8086 = vpow2.f32 %v4652_v30 }
0x16f1   :  { %v8085_v31 = vpop.eup %8084 }
0x16f2   :  { %v4656_v32 = vsel %vm337_vm2, %v8085_v31, 0.0 }
0x16f3   :  { %4657 = vadd.xlane.f32.xlu0 %v4656_v32 }
0x16f5   :  { %v8087_v33 = vpop.eup %8086 }
0x16f6   :  { %v4662_v34 = vsel %vm337_vm2, %v8087_v33, 0.0 }
0x16f7   :  { %4663 = vadd.xlane.f32.xlu0 %v4662_v34 }
0x170c   :  { %v4637_v35 = vpop.xlane.xlu1 %4636 }
0x170d   :  { %v4645_v24 = vsub.f32 %v4472_v19, %v4637_v35  ;;  %4980 = vrot.lane.b32.xlu0 %v8994_v56, %s8289_s20 }
0x170f   :  { %v4650_v28 = vmul.f32 1.442695, %v4645_v24 }
0x1710   :  { %v4753_v38 = vpop.permute.xlu1 %4752  ;;  %v4643_v40 = vpop.xlane.xlu0 %4642 }
0x1711   :  { %8088 = vpow2.f32 %v4650_v28  ;;  %7708 = vmatpush3.msra.mxu0 %v4753_v38  ;;  %5138 = vrot.lane.b32.xlu0 %v9000_v41, %s8288_s30  ;;  %v4647_v44 = vsub.f32 %v4628_v48, %v4643_v40 }
0x1712   :  { %7717 = vmatprep.subr.mxu0 %v8281_v9 }
0x1713   :  { %v4654_v17 = vmul.f32 1.442695, %v4647_v44 }
0x1714   :  { %v4677_v43 = vpop.permute.xlu0 %4676  ;;  %v4829_v57 = vpop.permute.xlu1 %4828 }
0x1715   :  { %5136 = vrot.lane.b32.xlu0 %v9000_v41, %s8289_s20  ;;  %7703 = vmatpush3.msra.mxu1 %v4677_v43  ;;  %8090 = vpow2.f32 %v4654_v17 }
0x1716   :  { %7712 = vmatprep.subr.mxu1 %v8281_v9 }
0x1718   :  { %v4983_v49 = vpop.permute.xlu0 %4982  ;;  %v4905_v63 = vpop.permute.xlu1 %4904 }
0x1719   :  { %5336 = vrot.lane.b32.xlu0 %v8994_v56, %s8290_s16 }
0x171b   :  { %v8089_v14 = vpop.eup %8088 }
0x171c   :  { %v4659_v37 = vsel %vm337_vm2, %v8089_v14, 0.0  ;;  %v5061_v1 = vpop.permute.xlu1 %5060 }
0x171d   :  { %4660 = vadd.xlane.f32.xlu1 %v4659_v37 }
0x171f   :  { %v8091_v18 = vpop.eup %8090 }
0x1720   :  { %v4665_v46 = vsel %vm337_vm2, %v8091_v18, 0.0 }
0x172e   :  { %5058 = vrot.lane.b32.xlu1 %v8992_v54, %s8289_s20 }
0x1752   :  { %4666 = vadd.xlane.f32.xlu1 %v4665_v46 }
0x1763   :  { %5216 = vrot.lane.b32.xlu1 %v9004_v59, %s8288_s30 }
0x1767   :  { %5214 = vrot.lane.b32.xlu1 %v9004_v59, %s8289_s20 }
0x176b   :  { %5412 = vrot.lane.b32.xlu1 %v8992_v54, %s8290_s16 }
0x176f   :  { %5488 = vrot.lane.b32.xlu1 %v9000_v41, %s8290_s16 }
0x1773   :  { %5564 = vrot.lane.b32.xlu1 %v9004_v59, %s8290_s16  ;;  %s9469_s16 = sld [smem:[#allocation20_spill]] }
0x1780   :  { %v4658_v50 = vpop.xlane.xlu0 %4657 }
0x1781   :  { %8092 = vrcp.f32 %v4658_v50 }
0x1784   :  { %v4664_v51 = vpop.xlane.xlu0 %4663 }
0x1785   :  { %8094 = vrcp.f32 %v4664_v51 }
0x1788   :  { %v4981_v53 = vpop.permute.xlu0 %4980 }
0x178b   :  { %v8093_v52 = vpop.eup %8092 }
0x178c   :  { %v4669_v55 = vmul.f32 %v8093_v52, %v8085_v31  ;;  %v5139_v6 = vpop.permute.xlu0 %5138 }
0x178e   :  { %7705 = vmatmul.mubr.msk.f32.vlgmr.msra.gmra.mrb[50].mxu1 %vm337_vm2, %v4669_v55 }
0x178f   :  { %v8095_v42 = vpop.eup %8094  ;;  %7713 = vmatpush3.msra.mxu1 %v4829_v57  ;;  %7714 = vmatprep.mubr.msk.f32.mxu1 %vm8282_vm1, %v8281_v9 }
0x1790   :  { %v4673_v60 = vmul.f32 %v8095_v42, %v8087_v33  ;;  %7722 = vmatprep.subr.mxu1 %v8281_v9  ;;  %v5137_v8 = vpop.permute.xlu0 %5136 }
0x1792   :  { %7715 = vmatmul.mubr.msk.f32.vlgmr.msra.gmra.mrb[52].mxu1 %vm337_vm2, %v4673_v60 }
0x1793   :  { %7724 = vmatprep.mubr.msk.f32.mxu1 %vm8282_vm1, %v8281_v9 }
0x1794   :  { %v5337_v61 = vpop.permute.xlu0 %5336 }
0x1796   :  { %7723 = vmatpush3.xpose.msk.msra.mxu1 %vm337_vm2, %v4983_v49 }
0x1797   :  { %7732 = vmatprep.subr.mxu1 %v8281_v9 }
0x1799   :  { %7725 = vmatmul.mubr.msk.f32.vlgmr.msra.gmra.mrb[54].mxu1 %vm337_vm2, %v4981_v53 }
0x179a   :  { %7733 = vmatpush3.xpose.msk.msra.mxu1 %vm337_vm2, %v5139_v6  ;;  %7734 = vmatprep.mubr.msk.f32.mxu1 %vm8282_vm1, %v8281_v9 }
0x179b   :  { %7742 = vmatprep.subr.mxu1 %v8281_v9 }
0x179d   :  { %7735 = vmatmul.mubr.msk.f32.vlgmr.msra.gmra.mrb[56].mxu1 %vm337_vm2, %v5137_v8 }
0x179e   :  { %7743 = vmatpush3.msra.mxu1 %v5337_v61  ;;  %7744 = vmatprep.mubr.msk.f32.mxu1 %vm8282_vm1, %v8281_v9 }
0x179f   :  { %7752 = vmatprep.subr.mxu1 %v8281_v9 }
0x17aa   :  { %v4661_v45 = vpop.xlane.xlu1 %4660 }
0x17ab   :  { %8096 = vrcp.f32 %v4661_v45 }
0x17ae   :  { %v5059_v10 = vpop.permute.xlu1 %5058 }
0x17b5   :  { %v8097_v5 = vpop.eup %8096 }
0x17b6   :  { %v4671_v7 = vmul.f32 %v8097_v5, %v8089_v14 }
0x17b8   :  { %7710 = vmatmul.mubr.msk.f32.vlgmr.msra.gmra.mrb[58].mxu0 %vm337_vm2, %v4671_v7 }
0x17b9   :  { %7718 = vmatpush3.msra.mxu0 %v4905_v63  ;;  %7719 = vmatprep.mubr.msk.f32.mxu0 %vm8282_vm1, %v8281_v9 }
0x17ba   :  { %7727 = vmatprep.subr.mxu0 %v8281_v9 }
0x17df   :  { %v4667_v11 = vpop.xlane.xlu1 %4666 }
0x17e0   :  { %8098 = vrcp.f32 %v4667_v11 }
0x17e3   :  { %v5217_v13 = vpop.permute.xlu1 %5216 }
0x17e7   :  { %v5215_v16 = vpop.permute.xlu1 %5214 }
0x17ea   :  { %v8099_v15 = vpop.eup %8098 }
0x17eb   :  { %v4675_v39 = vmul.f32 %v8099_v15, %v8091_v18  ;;  %v5413_v19 = vpop.permute.xlu1 %5412 }
0x17ed   :  { %7720 = vmatmul.mubr.msk.f32.vlgmr.msra.gmra.mrb[60].mxu0 %vm337_vm2, %v4675_v39 }
0x17ee   :  { %7728 = vmatpush3.xpose.msk.msra.mxu0 %vm337_vm2, %v5061_v1  ;;  %7729 = vmatprep.mubr.msk.f32.mxu0 %vm8282_vm1, %v8281_v9 }
0x17ef   :  { %7737 = vmatprep.subr.mxu0 %v8281_v9  ;;  %v5489_v52 = vpop.permute.xlu1 %5488 }
0x17f1   :  { %7730 = vmatmul.mubr.msk.f32.vlgmr.msra.gmra.mrb[62].mxu0 %vm337_vm2, %v5059_v10 }
0x17f2   :  { %7738 = vmatpush3.xpose.msk.msra.mxu0 %vm337_vm2, %v5217_v13  ;;  %7739 = vmatprep.mubr.msk.f32.mxu0 %vm8282_vm1, %v8281_v9 }
0x17f3   :  { %7747 = vmatprep.subr.mxu0 %v8281_v9  ;;  %v5565_v53 = vpop.permute.xlu1 %5564 }
0x17f5   :  { %7740 = vmatmul.mubr.msk.f32.vlgmr.msra.gmra.mrb[64].mxu0 %vm337_vm2, %v5215_v16 }
0x17f6   :  { %7748 = vmatpush3.msra.mxu0 %v5413_v19  ;;  %7749 = vmatprep.mubr.msk.f32.mxu0 %vm8282_vm1, %v8281_v9 }
0x17f7   :  { %7757 = vmatprep.subr.mxu0 %v8281_v9 }
0x1861   :  { %v9186_v20 = vpop.f32.mrb[50].mxu1 }
0x1862   :  { %v7706_v21 = vpop.f32.mrb[51].mxu1 }
0x1865   :  { %v9188_v48 = vpop.f32.mrb[52].mxu1 }
0x1866   :  { %v7716_v22 = vpop.f32.mrb[53].mxu1 }
0x186c   :  { %v5054_v23 = vpop.f32.mrb[54].mxu1 }
0x186d   :  { %v7726_v3 = vpop.f32.mrb[55].mxu1  ;;  %v5292_v26 = vsel %vm337_vm2, %v5054_v23, -inf }
0x186e   :  { %5293 = vmax.xlane.f32.xlu0 %v5292_v26 }
0x1870   :  { %v5210_v27 = vpop.f32.mrb[56].mxu1 }
0x1871   :  { %v7736_v29 = vpop.f32.mrb[57].mxu1  ;;  %v5298_v25 = vsel %vm337_vm2, %v5210_v27, -inf }
0x1872   :  { %5299 = vmax.xlane.f32.xlu0 %v5298_v25 }
0x188b   :  { %v9192_v30 = vpop.f32.mrb[58].mxu0 }
0x188c   :  { %v7711_v31 = vpop.f32.mrb[59].mxu0 }
0x18c0   :  { %v9194_v32 = vpop.f32.mrb[60].mxu0 }
0x18c1   :  { %v7721_v33 = vpop.f32.mrb[61].mxu0 }
0x18c4   :  { %v5132_v34 = vpop.f32.mrb[62].mxu0 }
0x18c5   :  { %v7731_v35 = vpop.f32.mrb[63].mxu0  ;;  %v5295_v24 = vsel %vm337_vm2, %v5132_v34, -inf }
0x18c6   :  { %5296 = vmax.xlane.f32.xlu1 %v5295_v24 }
0x18c8   :  { %v5288_v28 = vpop.f32.mrb[64].mxu0 }
0x18c9   :  { %v7741_v38 = vpop.f32.mrb[65].mxu0  ;;  %v5301_v40 = vsel %vm337_vm2, %v5288_v28, -inf }
0x18ca   :  { %5302 = vmax.xlane.f32.xlu0 %v5301_v40 }
0x18d7   :  { %5720 = vrot.lane.b32.xlu1 %v8992_v54, %s8291_s24 }
0x18db   :  { %5718 = vrot.lane.b32.xlu1 %v8992_v54, %s8292_s23 }
0x18e0   :  { %5642 = vrot.lane.b32.xlu0 %v8994_v56, %s8291_s24 }
0x18fb   :  { %v5294_v43 = vpop.xlane.xlu0 %5293 }
0x18fc   :  { %v5304_v14 = vsub.f32 %v5054_v23, %v5294_v43 }
0x18fe   :  { %v5308_v37 = vmul.f32 1.442695, %v5304_v14 }
0x18ff   :  { %v5300_v18 = vpop.xlane.xlu0 %5299 }
0x1900   :  { %8100 = vpow2.f32 %v5308_v37  ;;  %v5306_v46 = vsub.f32 %v5210_v27, %v5300_v18 }
0x1902   :  { %v5312_v49 = vmul.f32 1.442695, %v5306_v46 }
0x1904   :  { %8102 = vpow2.f32 %v5312_v49 }
0x190a   :  { %v8101_v44 = vpop.eup %8100 }
0x190b   :  { %v5316_v17 = vsel %vm337_vm2, %v8101_v44, 0.0 }
0x190c   :  { %5317 = vadd.xlane.f32.xlu0 %v5316_v17 }
0x190e   :  { %v8103_v50 = vpop.eup %8102 }
0x190f   :  { %v5322_v51 = vsel %vm337_vm2, %v8103_v50, 0.0 }
0x1922   :  { %5640 = vrot.lane.b32.xlu0 %v8994_v56, %s8292_s23 }
0x1941   :  { %5323 = vadd.xlane.f32.xlu0 %v5322_v51 }
0x1953   :  { %v5297_v55 = vpop.xlane.xlu1 %5296 }
0x1954   :  { %v5305_v57 = vsub.f32 %v5132_v34, %v5297_v55 }
0x1956   :  { %v5310_v42 = vmul.f32 1.442695, %v5305_v57 }
0x1957   :  { %5798 = vrot.lane.b32.xlu0 %v9000_v41, %s8291_s24  ;;  %v5303_v8 = vpop.xlane.xlu0 %5302  ;;  %v5721_v22 = vpop.permute.xlu1 %5720 }
0x1958   :  { %8104 = vpow2.f32 %v5310_v42  ;;  %v5307_v61 = vsub.f32 %v5288_v28, %v5303_v8 }
0x195a   :  { %v5314_v63 = vmul.f32 1.442695, %v5307_v61 }
0x195b   :  { %5796 = vrot.lane.b32.xlu0 %v9000_v41, %s8292_s23  ;;  %v5643_v45 = vpop.permute.xlu0 %5642  ;;  %v5719_v23 = vpop.permute.xlu1 %5718 }
0x195c   :  { %8106 = vpow2.f32 %v5314_v63 }
0x1962   :  { %v8105_v60 = vpop.eup %8104 }
0x1963   :  { %v5319_v6 = vsel %vm337_vm2, %v8105_v60, 0.0 }
0x1964   :  { %5320 = vadd.xlane.f32.xlu1 %v5319_v6 }
0x1966   :  { %v8107_v1 = vpop.eup %8106 }
0x1967   :  { %v5325_v5 = vsel %vm337_vm2, %v8107_v1, 0.0 }
0x1975   :  { %5876 = vrot.lane.b32.xlu1 %v9004_v59, %s8291_s24 }
0x1999   :  { %v5318_v7 = vpop.xlane.xlu0 %5317  ;;  %5326 = vadd.xlane.f32.xlu1 %v5325_v5 }
0x199a   :  { %8108 = vrcp.f32 %v5318_v7 }
0x199d   :  { %v5641_v13 = vpop.permute.xlu0 %5640 }
0x19a4   :  { %v8109_v10 = vpop.eup %8108 }
0x19a5   :  { %v5329_v11 = vmul.f32 %v8109_v10, %v8101_v44 }
0x19a7   :  { %7745 = vmatmul.mubr.msk.f32.vlgmr.msra.gmra.mrb[58].mxu1 %vm337_vm2, %v5329_v11 }
0x19a8   :  { %7753 = vmatpush3.msra.mxu1 %v5489_v52  ;;  %7754 = vmatprep.mubr.msk.f32.mxu1 %vm8282_vm1, %v8281_v9 }
0x19a9   :  { %7762 = vmatprep.subr.mxu1 %v8281_v9 }
0x19aa   :  { %5874 = vrot.lane.b32.xlu1 %v9004_v59, %s8292_s23 }
0x19ce   :  { %v5324_v15 = vpop.xlane.xlu0 %5323 }
0x19cf   :  { %8110 = vrcp.f32 %v5324_v15 }
0x19d2   :  { %v5799_v19 = vpop.permute.xlu0 %5798 }
0x19d6   :  { %v5797_v21 = vpop.permute.xlu0 %5796 }
0x19d9   :  { %v8111_v39 = vpop.eup %8110 }
0x19da   :  { %v5333_v16 = vmul.f32 %v8111_v39, %v8103_v50 }
0x19dc   :  { %7755 = vmatmul.mubr.msk.f32.vlgmr.msra.gmra.mrb[60].mxu1 %vm337_vm2, %v5333_v16 }
0x19dd   :  { %7763 = vmatpush3.xpose.msk.msra.mxu1 %vm337_vm2, %v5643_v45  ;;  %7764 = vmatprep.mubr.msk.f32.mxu1 %vm8282_vm1, %v8281_v9 }
0x19de   :  { %7772 = vmatprep.subr.mxu1 %v8281_v9 }
0x19e0   :  { %7765 = vmatmul.mubr.msk.f32.vlgmr.msra.gmra.mrb[62].mxu1 %vm337_vm2, %v5641_v13 }
0x19e1   :  { %7773 = vmatpush3.xpose.msk.msra.mxu1 %vm337_vm2, %v5799_v19  ;;  %7774 = vmatprep.mubr.msk.f32.mxu1 %vm8282_vm1, %v8281_v9 }
0x19e2   :  { %7782 = vmatprep.subr.mxu1 %v8281_v9 }
0x19e4   :  { %7775 = vmatmul.mubr.msk.f32.vlgmr.msra.gmra.mrb[64].mxu1 %vm337_vm2, %v5797_v21 }
0x19e5   :  { %7784 = vmatprep.mubr.msk.f32.mxu1 %vm8282_vm1, %v8281_v9 }
0x19f1   :  { %v5321_v3 = vpop.xlane.xlu1 %5320 }
0x19f2   :  { %8112 = vrcp.f32 %v5321_v3 }
0x19f5   :  { %v5877_v29 = vpop.permute.xlu1 %5876 }
0x19fc   :  { %v8113_v26 = vpop.eup %8112 }
0x19fd   :  { %v5331_v27 = vmul.f32 %v8113_v26, %v8105_v60 }
0x19ff   :  { %7750 = vmatmul.mubr.msk.f32.vlgmr.msra.gmra.mrb[66].mxu0 %vm337_vm2, %v5331_v27 }
0x1a00   :  { %7758 = vmatpush3.msra.mxu0 %v5565_v53  ;;  %7759 = vmatprep.mubr.msk.f32.mxu0 %vm8282_vm1, %v8281_v9 }
0x1a01   :  { %7767 = vmatprep.subr.mxu0 %v8281_v9 }
0x1a26   :  { %v5327_v25 = vpop.xlane.xlu1 %5326 }
0x1a27   :  { %8114 = vrcp.f32 %v5327_v25 }
0x1a2a   :  { %v5875_v34 = vpop.permute.xlu1 %5874 }
0x1a31   :  { %v8115_v31 = vpop.eup %8114 }
0x1a32   :  { %v5335_v33 = vmul.f32 %v8115_v31, %v8107_v1 }
0x1a34   :  { %7760 = vmatmul.mubr.msk.f32.vlgmr.msra.gmra.mrb[68].mxu0 %vm337_vm2, %v5335_v33 }
0x1a35   :  { %7768 = vmatpush3.xpose.msk.msra.mxu0 %vm337_vm2, %v5721_v22  ;;  %7769 = vmatprep.mubr.msk.f32.mxu0 %vm8282_vm1, %v8281_v9 }
0x1a36   :  { %7777 = vmatprep.subr.mxu0 %v8281_v9 }
0x1a38   :  { %7770 = vmatmul.mubr.msk.f32.vlgmr.msra.gmra.mrb[70].mxu0 %vm337_vm2, %v5719_v23 }
0x1a39   :  { %7778 = vmatpush3.xpose.msk.msra.mxu0 %vm337_vm2, %v5877_v29  ;;  %7779 = vmatprep.mubr.msk.f32.mxu0 %vm8282_vm1, %v8281_v9 }
0x1a3a   :  { %7787 = vmatprep.subr.mxu0 %v8281_v9 }
0x1a3c   :  { %7780 = vmatmul.mubr.msk.f32.vlgmr.msra.gmra.mrb[72].mxu0 %vm337_vm2, %v5875_v34 }
0x1a3d   :  { %7789 = vmatprep.mubr.msk.f32.mxu0 %vm8282_vm1, %v8281_v9 }
0x1a7a   :  { %v5408_v35 = vpop.f32.mrb[58].mxu1 }
0x1a7b   :  { %v7746_v24 = vpop.f32.mrb[59].mxu1 }
0x1aaf   :  { %v5560_v28 = vpop.f32.mrb[60].mxu1 }
0x1ab0   :  { %v7756_v38 = vpop.f32.mrb[61].mxu1 }
0x1ab3   :  { %v5714_v40 = vpop.f32.mrb[62].mxu1 }
0x1ab4   :  { %v7766_v43 = vpop.f32.mrb[63].mxu1  ;;  %v5952_v14 = vsel %vm337_vm2, %v5714_v40, -inf }
0x1ab5   :  { %5953 = vmax.xlane.f32.xlu0 %v5952_v14  ;;  %v6361_v14 = vld [vmem:[#allocation7 + $0x20] sm:$0xff] }
0x1ab7   :  { %v5870_v37 = vpop.f32.mrb[64].mxu1 }
0x1ab8   :  { %v7776_v44 = vpop.f32.mrb[65].mxu1  ;;  %v5958_v17 = vsel %vm337_vm2, %v5870_v37, -inf }
0x1ab9   :  { %5959 = vmax.xlane.f32.xlu0 %v5958_v17  ;;  %v6363_v17 = vld [vmem:[#allocation7 + $0x30] sm:$0xff] }
0x1ad2   :  { %v5484_v18 = vpop.f32.mrb[66].mxu0 }
0x1ad3   :  { %v7751_v46 = vpop.f32.mrb[67].mxu0 }
0x1b07   :  { %v5636_v49 = vpop.f32.mrb[68].mxu0 }
0x1b08   :  { %v7761_v50 = vpop.f32.mrb[69].mxu0 }
0x1b0b   :  { %v5792_v51 = vpop.f32.mrb[70].mxu0 }
0x1b0c   :  { %v7771_v52 = vpop.f32.mrb[71].mxu0  ;;  %v5955_v53 = vsel %vm337_vm2, %v5792_v51, -inf }
0x1b0d   :  { %5956 = vmax.xlane.f32.xlu1 %v5955_v53 }
0x1b0f   :  { %v5948_v55 = vpop.f32.mrb[72].mxu0 }
0x1b10   :  { %v7781_v57 = vpop.f32.mrb[73].mxu0  ;;  %v5961_v42 = vsel %vm337_vm2, %v5948_v55, -inf }
0x1b11   :  { %5962 = vmax.xlane.f32.xlu0 %v5961_v42 }
0x1b42   :  { %v5954_v60 = vpop.xlane.xlu0 %5953 }
0x1b43   :  { %v5964_v6 = vsub.f32 %v5714_v40, %v5954_v60 }
0x1b45   :  { %v5968_v8 = vmul.f32 1.442695, %v5964_v6 }
0x1b46   :  { %v5960_v61 = vpop.xlane.xlu0 %5959 }
0x1b47   :  { %8116 = vpow2.f32 %v5968_v8  ;;  %v5966_v63 = vsub.f32 %v5870_v37, %v5960_v61  ;;  %v6362_v37 = vld [vmem:[#allocation7 + $0x28] sm:$0xff] }
0x1b48   :  { %v7911_v44 = vpack.c.bf16 %v6362_v37, %v6361_v14  ;;  %v6554_v14 = vld [vmem:[#allocation8 + $0x38] sm:$0xff] }
0x1b49   :  { %v5972_v1 = vmul.f32 1.442695, %v5966_v63 }
0x1b4b   :  { %8118 = vpow2.f32 %v5972_v1 }
0x1b51   :  { %v8117_v45 = vpop.eup %8116 }
0x1b52   :  { %v5976_v5 = vsel %vm337_vm2, %v8117_v45, 0.0 }
0x1b53   :  { %5977 = vadd.xlane.f32.xlu0 %v5976_v5 }
0x1b55   :  { %v8119_v7 = vpop.eup %8118 }
0x1b56   :  { %v5982_v10 = vsel %vm337_vm2, %v8119_v7, 0.0 }
0x1b57   :  { %5983 = vadd.xlane.f32.xlu0 %v5982_v10 }
0x1b6d   :  { %5996 = vrot.lane.b32.xlu0 %v8994_v56, %s8293_s10 }
0x1b71   :  { %6304 = vrot.lane.b32.xlu0 %v9186_v20, %s9466_s6 }
0x1b75   :  { %6320 = vrot.lane.b32.xlu0 %v5408_v35, %s9467_s3 }
0x1b79   :  { %6308 = vrot.lane.b32.xlu0 %v9188_v48, %s9466_s6 }
0x1b7d   :  { %6324 = vrot.lane.b32.xlu0 %v5560_v28, %s9467_s3 }
0x1b9a   :  { %v5957_v11 = vpop.xlane.xlu1 %5956 }
0x1b9b   :  { %v5965_v13 = vsub.f32 %v5792_v51, %v5957_v11 }
0x1b9d   :  { %v5970_v15 = vmul.f32 1.442695, %v5965_v13 }
0x1b9e   :  { %v5963_v56 = vpop.xlane.xlu0 %5962 }
0x1b9f   :  { %8120 = vpow2.f32 %v5970_v15  ;;  %v5967_v20 = vsub.f32 %v5948_v55, %v5963_v56 }
0x1ba1   :  { %v5974_v19 = vmul.f32 1.442695, %v5967_v20  ;;  %v7161_v20 = vld [vmem:[%s9428_s7 + $0x1] ss:$0 sm:$0xff] }
0x1ba3   :  { %8122 = vpow2.f32 %v5974_v19 }
0x1ba9   :  { %v8121_v39 = vpop.eup %8120 }
0x1baa   :  { %v5979_v16 = vsel %vm337_vm2, %v8121_v39, 0.0 }
0x1bab   :  { %5980 = vadd.xlane.f32.xlu1 %v5979_v16 }
0x1bad   :  { %v8123_v48 = vpop.eup %8122 }
0x1bae   :  { %v5985_v22 = vsel %vm337_vm2, %v8123_v48, 0.0 }
0x1bbc   :  { %6072 = vrot.lane.b32.xlu1 %v8992_v54, %s8293_s10 }
0x1bc0   :  { %6148 = vrot.lane.b32.xlu1 %v9000_v41, %s8293_s10 }
0x1be0   :  { %v5978_v21 = vpop.xlane.xlu0 %5977 }
0x1be1   :  { %8124 = vrcp.f32 %v5978_v21 }
0x1be4   :  { %v5984_v23 = vpop.xlane.xlu0 %5983  ;;  %5986 = vadd.xlane.f32.xlu1 %v5985_v22 }
0x1be5   :  { %8126 = vrcp.f32 %v5984_v23 }
0x1be8   :  { %v5997_v3 = vpop.permute.xlu0 %5996 }
0x1be9   :  { %7783 = vmatpush3.msra.mxu1 %v5997_v3 }
0x1bea   :  { %7792 = vmatprep.subr.mxu1 %v8281_v9 }
0x1beb   :  { %v8125_v26 = vpop.eup %8124 }
0x1bec   :  { %v5989_v54 = vmul.f32 %v8125_v26, %v8117_v45  ;;  %v6305_v27 = vpop.permute.xlu0 %6304 }
0x1bed   :  { %v6348_v55 = vsel %vm337_vm2, %v9100_v0, %v6305_v27 }
0x1bee   :  { %7785 = vmatmul.mubr.msk.f32.vlgmr.msra.gmra.mrb[66].mxu1 %vm337_vm2, %v5989_v54 }
0x1bef   :  { %7794 = vmatprep.mubr.msk.f32.mxu1 %vm8282_vm1, %v8281_v9  ;;  %v8127_v34 = vpop.eup %8126 }
0x1bf0   :  { %v6321_v41 = vpop.permute.xlu0 %6320 }
0x1bf1   :  { %v6352_v57 = vsel %vm3023_vm3, %v6348_v55, %v6321_v41 }
0x1bf4   :  { %v6309_v29 = vpop.permute.xlu0 %6308 }
0x1bf5   :  { %v9278_v25 = vsel %vm337_vm2, %v9104_v2, %v6309_v29  ;;  %6224 = vrot.lane.b32.xlu1 %v9004_v59, %s8293_s10  ;;  %v5993_v2 = vmul.f32 %v8127_v34, %v8119_v7 }
0x1bf8   :  { %v6325_v53 = vpop.permute.xlu0 %6324 }
0x1bf9   :  { %6306 = vrot.lane.b32.xlu1 %v9192_v30, %s9466_s6  ;;  %v6354_v11 = vsel %vm3023_vm3, %v9278_v25, %v6325_v53 }
0x1bfd   :  { %6322 = vrot.lane.b32.xlu1 %v5484_v18, %s9467_s3  ;;  %v6364_v18 = vld [vmem:[#allocation7 + $0x38] sm:$0xff] }
0x1bfe   :  { %v7915_v46 = vpack.c.bf16 %v6364_v18, %v6363_v17 }
0x1c01   :  { %6310 = vrot.lane.b32.xlu1 %v9194_v32, %s9466_s6 }
0x1c05   :  { %6326 = vrot.lane.b32.xlu1 %v5636_v49, %s9467_s3 }
0x1c38   :  { %v5981_v31 = vpop.xlane.xlu1 %5980 }
0x1c39   :  { %8128 = vrcp.f32 %v5981_v31 }
0x1c3c   :  { %v6073_v33 = vpop.permute.xlu1 %6072 }
0x1c3d   :  { %7788 = vmatpush3.msra.mxu0 %v6073_v33 }
0x1c3e   :  { %7797 = vmatprep.subr.mxu0 %v8281_v9 }
0x1c40   :  { %v6149_v59 = vpop.permute.xlu1 %6148 }
0x1c41   :  { %7793 = vmatpush3.msra.mxu1 %v6149_v59 }
0x1c42   :  { %7795 = vmatmul.mubr.msk.f32.vlgmr.msra.gmra.mrb[68].mxu1 %vm337_vm2, %v5993_v2  ;;  %7912 = vmatprep.subr.bf16.mxu1 %v7911_v44 }
0x1c43   :  { %v8129_v30 = vpop.eup %8128  ;;  %7914 = vmatpush3.bf16.msra.mxu1 %v7911_v44 }
0x1c44   :  { %v5991_v35 = vmul.f32 %v8129_v30, %v8121_v39  ;;  %7916 = vmatprep.subr.bf16.mxu1 %v7915_v46 }
0x1c46   :  { %7790 = vmatmul.mubr.msk.f32.vlgmr.msra.gmra.mrb[74].mxu0 %vm337_vm2, %v5991_v35 }
0x1c47   :  { %7799 = vmatprep.mubr.msk.f32.mxu0 %vm8282_vm1, %v8281_v9  ;;  %7918 = vmatpush3.bf16.msra.mxu1 %v7915_v46 }
0x1c71   :  { %v5987_v32 = vpop.xlane.xlu1 %5986 }
0x1c72   :  { %8130 = vrcp.f32 %v5987_v32 }
0x1c75   :  { %v6225_v24 = vpop.permute.xlu1 %6224 }
0x1c76   :  { %7798 = vmatpush3.msra.mxu0 %v6225_v24 }
0x1c79   :  { %v6307_v61 = vpop.permute.xlu1 %6306 }
0x1c7a   :  { %v6349_v5 = vsel %vm337_vm2, %v9102_v12, %v6307_v61 }
0x1c7c   :  { %v8131_v28 = vpop.eup %8130 }
0x1c7d   :  { %v5995_v38 = vmul.f32 %v8131_v28, %v8123_v48  ;;  %v6323_v63 = vpop.permute.xlu1 %6322 }
0x1c7e   :  { %v6353_v0 = vsel %vm3023_vm3, %v6349_v5, %v6323_v63 }
0x1c7f   :  { %7800 = vmatmul.mubr.msk.f32.vlgmr.msra.gmra.mrb[76].mxu0 %vm337_vm2, %v5995_v38  ;;  %v6552_v38 = vld [vmem:[#allocation8 + $0x28] sm:$0xff] }
0x1c81   :  { %v6311_v1 = vpop.permute.xlu1 %6310 }
0x1c82   :  { %v6351_v39 = vsel %vm337_vm2, %v9108_v58, %v6311_v1  ;;  %v7168_v1 = vld [vmem:[%s9429_s8 + $0x1] ss:$0 sm:$0xff] }
0x1c85   :  { %v6327_v45 = vpop.permute.xlu1 %6326 }
0x1c86   :  { %v6355_v12 = vsel %vm3023_vm3, %v6351_v39, %v6327_v45 }
0x1cc1   :  { %v6068_v40 = vpop.f32.mrb[66].mxu1 }
0x1cc2   :  { %6336 = vrot.lane.b32.xlu0 %v6068_v40, %s9468_s0  ;;  %v7786_v43 = vpop.f32.mrb[67].mxu1 }
0x1cc3   :  { %v6553_v43 = vld [vmem:[#allocation8 + $0x30] sm:$0xff] }
0x1cc4   :  { %v7923_v37 = vpack.c.bf16 %v6554_v14, %v6553_v43 }
0x1d15   :  { %v6220_v49 = vpop.f32.mrb[68].mxu1 }
0x1d16   :  { %6340 = vrot.lane.b32.xlu0 %v6220_v49, %s9468_s0  ;;  %v7796_v50 = vpop.f32.mrb[69].mxu1 }
0x1d19   :  { %v6144_v51 = vpop.f32.mrb[74].mxu0 }
0x1d1a   :  { %6338 = vrot.lane.b32.xlu1 %v6144_v51, %s9468_s0  ;;  %v7791_v52 = vpop.f32.mrb[75].mxu0 }
0x1d34   :  { %v6337_v42 = vpop.permute.xlu0 %6336 }
0x1d35   :  { %v6356_v60 = vsel %vm3028_vm4, %v6352_v57, %v6337_v42 }
0x1d36   :  { %7810 = vmatprep.mubr.msk.f32.mxu1 %vm152_vm0, %v6356_v60 }
0x1d52   :  { %v6296_v6 = vpop.f32.mrb[76].mxu0 }
0x1d53   :  { %6342 = vrot.lane.b32.xlu1 %v6296_v6, %s9468_s0  ;;  %v7801_v8 = vpop.f32.mrb[77].mxu0 }
0x1d88   :  { %v6341_v7 = vpop.permute.xlu0 %6340 }
0x1d89   :  { %v6358_v15 = vsel %vm3028_vm4, %v6354_v11, %v6341_v7 }
0x1d8c   :  { %v6339_v10 = vpop.permute.xlu1 %6338 }
0x1d8d   :  { %v6357_v13 = vsel %vm3028_vm4, %v6353_v0, %v6339_v10  ;;  %v7169_v0 = vld [vmem:[%s9430_s9 + $0x1] ss:$0 sm:$0xff] }
0x1d8e   :  { %7811 = vmatmul.mubr.msk.f32.vlgmr.msra.gmra.mrb[70].mxu1 %vm152_vm0, %v6357_v13 }
0x1d8f   :  { %7813 = vmatprep.mubr.msk.f32.mxu1 %vm152_vm0, %v6358_v15 }
0x1dc5   :  { %v6343_v16 = vpop.permute.xlu1 %6342 }
0x1dc6   :  { %v6359_v56 = vsel %vm3028_vm4, %v6355_v12, %v6343_v16 }
0x1dc7   :  { %7814 = vmatmul.mubr.msk.f32.gmra.mrb[72].mxu1 %vm152_vm0, %v6359_v56 }
0x1e61   :  { %v7812_v19 = vpop.f32.mrb[70].mxu1 }
0x1e62   :  { %v6457_v48 = vadd.f32 %v7812_v19, %v7161_v20  ;;  %v6451_v21 = vpop.f32.mrb[71].mxu1 }
0x1e63   :  { %v6452_v22 = vadd.f32 %v7161_v20, %v6451_v21 }
0x1e64   :  { %v6471_v23 = vadd.f32 %v6457_v48, %v8973_v47 }
0x1e65   :  { %v6470_v3 = vadd.f32 %v6452_v22, %v8971_v36 }
0x1e66   :  { %v6481_v58 = vsel %vm152_vm0, %v6471_v23, 0.0 }
0x1e67   :  { %6482 = vadd.xlane.f32.xlu1 %v6481_v58  ;;  %v6478_v26 = vsel %vm152_vm0, %v6470_v3, 0.0 }
0x1e68   :  { %6479 = vadd.xlane.f32.xlu0 %v6478_v26 }
0x1e9a   :  { %v7815_v54 = vpop.f32.mrb[72].mxu1 }
0x1e9b   :  { %v6461_v27 = vpop.f32.mrb[73].mxu1  ;;  %v6467_v41 = vadd.f32 %v7815_v54, %v7161_v20 }
0x1e9c   :  { %v6462_v29 = vadd.f32 %v7161_v20, %v6461_v27  ;;  %v7176_v27 = vld [vmem:[%s9433_s12 + $0x40] sm:$0xff] }
0x1e9d   :  { %v6473_v31 = vadd.f32 %v6467_v41, %v8981_v62  ;;  %v6551_v62 = vld [vmem:[#allocation8 + $0x20] sm:$0xff] }
0x1e9e   :  { %v6472_v25 = vadd.f32 %v6462_v29, %v8979_v4  ;;  %v7919_v40 = vpack.c.bf16 %v6552_v38, %v6551_v62  ;;  %v7177_v41 = vld [vmem:[%s9433_s12 + $0x48] sm:$0xff] }
0x1e9f   :  { %v6487_v47 = vsel %vm152_vm0, %v6473_v31, 0.0  ;;  %v7927_v29 = vpack.c.bf16 %v7177_v41, %v7176_v27 }
0x1ea0   :  { %v6484_v33 = vsel %vm152_vm0, %v6472_v25, 0.0  ;;  %7920 = vmatprep.subr.bf16.mxu0 %v7919_v40 }
0x1ea1   :  { %6485 = vadd.xlane.f32.xlu0 %v6484_v33  ;;  %7922 = vmatpush3.bf16.msra.mxu0 %v7919_v40  ;;  %v7180_v33 = vld [vmem:[%s9433_s12 + $0x60] sm:$0xff] }
0x1ea2   :  { %7924 = vmatprep.subr.bf16.mxu0 %v7923_v37  ;;  %7928 = vmatprep.subr.bf16.mxu1 %v7927_v29 }
0x1ea3   :  { %7930 = vmatpush3.bf16.msra.mxu1 %v7927_v29 }
0x1ea5   :  { %6488 = vadd.xlane.f32.xlu0 %v6487_v47  ;;  %7926 = vmatpush3.bf16.msra.mxu0 %v7923_v37  ;;  %v7181_v47 = vld [vmem:[%s9433_s12 + $0x68] sm:$0xff] }
0x1ef4   :  { %v6483_v36 = vpop.xlane.xlu1 %6482 }
0x1ef5   :  { %v6491_v34 = vmul.f32 0.03125, %v6483_v36  ;;  %v6480_v2 = vpop.xlane.xlu0 %6479  ;;  %v7935_v36 = vpack.c.bf16 %v7181_v47, %v7180_v33 }
0x1ef6   :  { %v6490_v59 = vmul.f32 0.03125, %v6480_v2  ;;  %v7183_v2 = vld [vmem:[%s9433_s12 + $0x78] sm:$0xff] }
0x1ef7   :  { %v6495_v30 = vsub.f32 %v6471_v23, %v6491_v34  ;;  %v7182_v34 = vld [vmem:[%s9433_s12 + $0x70] sm:$0xff] }
0x1ef8   :  { %v6494_v35 = vsub.f32 %v6470_v3, %v6490_v59  ;;  %v7939_v59 = vpack.c.bf16 %v7183_v2, %v7182_v34 }
0x1ef9   :  { %v6499_v32 = vmul.f32 %v6495_v30, %v6495_v30 }
0x1efa   :  { %v6498_v24 = vmul.f32 %v6494_v35, %v6494_v35 }
0x1efb   :  { %v6505_v28 = vsel %vm152_vm0, %v6499_v32, 0.0 }
0x1efc   :  { %6506 = vadd.xlane.f32.xlu1 %v6505_v28  ;;  %v6502_v4 = vsel %vm152_vm0, %v6498_v24, 0.0 }
0x1efd   :  { %6503 = vadd.xlane.f32.xlu0 %v6502_v4 }
0x1f2e   :  { %v6486_v44 = vpop.xlane.xlu0 %6485 }
0x1f2f   :  { %v6492_v17 = vmul.f32 0.03125, %v6486_v44 }
0x1f31   :  { %v6496_v18 = vsub.f32 %v6472_v25, %v6492_v17  ;;  %v7178_v25 = vld [vmem:[%s9433_s12 + $0x50] sm:$0xff] }
0x1f32   :  { %v6489_v46 = vpop.xlane.xlu0 %6488 }
0x1f33   :  { %v6493_v49 = vmul.f32 0.03125, %v6489_v46  ;;  %v6500_v50 = vmul.f32 %v6496_v18, %v6496_v18 }
0x1f35   :  { %v6497_v51 = vsub.f32 %v6473_v31, %v6493_v49  ;;  %v6508_v52 = vsel %vm152_vm0, %v6500_v50, 0.0  ;;  %v7179_v31 = vld [vmem:[%s9433_s12 + $0x58] sm:$0xff] }
0x1f36   :  { %6509 = vadd.xlane.f32.xlu0 %v6508_v52 }
0x1f37   :  { %v6501_v53 = vmul.f32 %v6497_v51, %v6497_v51 }
0x1f39   :  { %v6511_v55 = vsel %vm152_vm0, %v6501_v53, 0.0 }
0x1f3a   :  { %6512 = vadd.xlane.f32.xlu1 %v6511_v55 }
0x1f89   :  { %v6507_v57 = vpop.xlane.xlu1 %6506 }
0x1f8a   :  { %v6515_v42 = vmul.f32 0.03125, %v6507_v57  ;;  %v6504_v60 = vpop.xlane.xlu0 %6503 }
0x1f8b   :  { %v6514_v6 = vmul.f32 0.03125, %v6504_v60 }
0x1f8c   :  { %v6519_v8 = vadd.f32 1e-12, %v6515_v42 }
0x1f8d   :  { %v6518_v61 = vadd.f32 1e-12, %v6514_v6 }
0x1f8e   :  { %8132 = vrsqrt.f32 %v6519_v8 }
0x1f8f   :  { %8134 = vrsqrt.f32 %v6518_v61 }
0x1f98   :  { %v8133_v63 = vpop.eup %8132 }
0x1f99   :  { %v8135_v45 = vpop.eup %8134  ;;  %v6527_v5 = vmul.f32 %v8133_v63, %v6495_v30  ;;  %v7171_v30 = vld [vmem:[%s9432_s11 + $0x1] ss:$0 sm:$0xff] }
0x1f9a   :  { %v6526_v7 = vmul.f32 %v8135_v45, %v6494_v35 }
0x1f9b   :  { %v6537_v10 = vmul.f32 %v7168_v1, %v6527_v5 }
0x1f9c   :  { %v6536_v11 = vmul.f32 %v7168_v1, %v6526_v7 }
0x1f9d   :  { %v9340_v15 = vadd.f32 %v7169_v0, %v6537_v10 }
0x1f9e   :  { %v9338_v13 = vadd.f32 %v7169_v0, %v6536_v11 }
0x1fa0   :  { %7824 = vmatprep.mubr.msk.f32.mxu0 %vm152_vm0, %v9338_v13 }
0x1fa1   :  { %7825 = vmatmul.mubr.msk.f32.vlgmr.msra.gmra.mrb[78].mxu0 %vm152_vm0, %v9340_v15 }
0x1fc3   :  { %v6510_v39 = vpop.xlane.xlu0 %6509 }
0x1fc4   :  { %v6516_v12 = vmul.f32 0.03125, %v6510_v39 }
0x1fc6   :  { %v6520_v16 = vadd.f32 1e-12, %v6516_v12 }
0x1fc7   :  { %v6513_v56 = vpop.xlane.xlu1 %6512 }
0x1fc8   :  { %8136 = vrsqrt.f32 %v6520_v16  ;;  %v6517_v20 = vmul.f32 0.03125, %v6513_v56 }
0x1fca   :  { %v6521_v19 = vadd.f32 1e-12, %v6517_v20 }
0x1fcc   :  { %8138 = vrsqrt.f32 %v6521_v19 }
0x1fd2   :  { %v8137_v48 = vpop.eup %8136 }
0x1fd3   :  { %v6528_v21 = vmul.f32 %v8137_v48, %v6496_v18 }
0x1fd5   :  { %v6538_v22 = vmul.f32 %v7168_v1, %v6528_v21 }
0x1fd6   :  { %v8139_v23 = vpop.eup %8138 }
0x1fd7   :  { %v9346_v3 = vadd.f32 %v7169_v0, %v6538_v22  ;;  %v6529_v58 = vmul.f32 %v8139_v23, %v6497_v51  ;;  %v7185_v23 = vld [vmem:[%s9434_s13 + $0x1] ss:$0 sm:$0xff] }
0x1fd9   :  { %7827 = vmatprep.mubr.msk.f32.mxu0 %vm152_vm0, %v9346_v3  ;;  %v6539_v26 = vmul.f32 %v7168_v1, %v6529_v58 }
0x1fdb   :  { %v9350_v54 = vadd.f32 %v7169_v0, %v6539_v26 }
0x1fdd   :  { %7828 = vmatmul.mubr.msk.f32.gmra.mrb[80].mxu0 %vm152_vm0, %v9350_v54 }
0x1fde   :  { %7860 = vmatprep.mubr.msk.f32.mxu0 %vm8282_vm1, %v8281_v9  ;;  %v7931_v9 = vpack.c.bf16 %v7179_v31, %v7178_v25 }
0x1fe0   :  { %7932 = vmatprep.subr.bf16.mxu1 %v7931_v9 }
0x1fe1   :  { %7934 = vmatpush3.bf16.msra.mxu1 %v7931_v9 }
0x1fe2   :  { %7936 = vmatprep.subr.bf16.mxu1 %v7935_v36 }
0x1fe5   :  { %7938 = vmatpush3.bf16.msra.mxu1 %v7935_v36 }
0x1fe6   :  { %7940 = vmatprep.subr.bf16.mxu1 %v7939_v59 }
0x1fe9   :  { %7942 = vmatpush3.bf16.msra.mxu1 %v7939_v59 }
0x2074   :  { %v7826_v35 = vpop.f32.mrb[78].mxu0 }
0x2075   :  { %v6647_v32 = vadd.f32 %v7826_v35, %v7171_v30  ;;  %v6641_v24 = vpop.f32.mrb[79].mxu0 }
0x2076   :  { %v6642_v28 = vadd.f32 %v7171_v30, %v6641_v24 }
0x2077   :  { %v6665_v4 = vmul.f32 0.044715, %v6647_v32  ;;  %v6661_v53 = vmul.f32 0.5, %v6647_v32 }
0x2078   :  { %v6664_v62 = vmul.f32 0.044715, %v6642_v28  ;;  %v6660_v51 = vmul.f32 0.5, %v6642_v28 }
0x2079   :  { %v6669_v38 = vmul.f32 %v6665_v4, %v6647_v32 }
0x207a   :  { %v6668_v40 = vmul.f32 %v6664_v62, %v6642_v28 }
0x207b   :  { %v6673_v43 = vmul.f32 %v6669_v38, %v6647_v32 }
0x207c   :  { %v6672_v14 = vmul.f32 %v6668_v40, %v6642_v28 }
0x207d   :  { %v6677_v37 = vadd.f32 %v6673_v43, %v6647_v32 }
0x207e   :  { %v6676_v44 = vadd.f32 %v6672_v14, %v6642_v28 }
0x207f   :  { %v6681_v17 = vmul.f32 0.7978846, %v6677_v37 }
0x2080   :  { %v6680_v18 = vmul.f32 0.7978846, %v6676_v44 }
0x2081   :  { %8140 = vtanh.f32 %v6681_v17 }
0x2082   :  { %8142 = vtanh.f32 %v6680_v18 }
0x208b   :  { %v8141_v46 = vpop.eup %8140 }
0x208c   :  { %v8143_v49 = vpop.eup %8142  ;;  %v6689_v50 = vadd.f32 1.0, %v8141_v46 }
0x208d   :  { %v6688_v52 = vadd.f32 1.0, %v8143_v49 }
0x208e   :  { %v6693_v57 = vmul.f32 %v6689_v50, %v6661_v53 }
0x208f   :  { %v6692_v55 = vmul.f32 %v6688_v52, %v6660_v51  ;;  %v6890_v51 = vld [vmem:[#allocation10] sm:$0xff]  ;;  %v6891_v52 = vld [vmem:[#allocation10 + $0x8] sm:$0xff] }
0x2090   :  { %v7944_v53 = vpack.c.bf16 %v6891_v52, %v6890_v51 }
0x2091   :  { %7846 = vmatprep.mubr.msk.f32.mxu1 %vm3378_vm5, %v6692_v55  ;;  %v6892_v55 = vld [vmem:[#allocation10 + $0x10] sm:$0xff] }
0x2092   :  { %7847 = vmatmul.mubr.msk.f32.vlgmr.msra.gmra.mrb[74].mxu1 %vm3378_vm5, %v6693_v57  ;;  %v6893_v57 = vld [vmem:[#allocation10 + $0x18] sm:$0xff] }
0x20b0   :  { %v7829_v42 = vpop.f32.mrb[80].mxu0 }
0x20b1   :  { %v6657_v60 = vadd.f32 %v7829_v42, %v7171_v30  ;;  %v6651_v6 = vpop.f32.mrb[81].mxu0  ;;  %v8296_v42 = vmov 0.0|0.0  }
0x20b2   :  { %v6652_v8 = vadd.f32 %v7171_v30, %v6651_v6  ;;  %7943 = vmatprep.subr.bf16.mxu0 %v8296_v42 }
0x20b3   :  { %v6667_v61 = vmul.f32 0.044715, %v6657_v60  ;;  %v6663_v48 = vmul.f32 0.5, %v6657_v60  ;;  %7945 = vmatpush3.bf16.msra.mxu0 %v7944_v53 }
0x20b4   :  { %v6666_v63 = vmul.f32 0.044715, %v6652_v8  ;;  %v6662_v20 = vmul.f32 0.5, %v6652_v8  ;;  %7946 = vmatprep.subr.bf16.mxu0 %v8296_v42 }
0x20b5   :  { %v6671_v1 = vmul.f32 %v6667_v61, %v6657_v60 }
0x20b6   :  { %v6670_v45 = vmul.f32 %v6666_v63, %v6652_v8 }
0x20b7   :  { %v6675_v5 = vmul.f32 %v6671_v1, %v6657_v60 }
0x20b8   :  { %v6674_v7 = vmul.f32 %v6670_v45, %v6652_v8 }
0x20b9   :  { %v6679_v0 = vadd.f32 %v6675_v5, %v6657_v60  ;;  %v7947_v60 = vpack.c.bf16 %v6893_v57, %v6892_v55 }
0x20ba   :  { %v6678_v10 = vadd.f32 %v6674_v7, %v6652_v8 }
0x20bb   :  { %v6683_v11 = vmul.f32 0.7978846, %v6679_v0  ;;  %7948 = vmatpush3.bf16.msra.mxu0 %v7947_v60 }
0x20bc   :  { %v6682_v39 = vmul.f32 0.7978846, %v6678_v10 }
0x20bd   :  { %8144 = vtanh.f32 %v6683_v11 }
0x20be   :  { %8146 = vtanh.f32 %v6682_v39 }
0x20c7   :  { %v8145_v12 = vpop.eup %8144 }
0x20c8   :  { %v8147_v16 = vpop.eup %8146  ;;  %v6691_v56 = vadd.f32 1.0, %v8145_v12 }
0x20c9   :  { %v6690_v19 = vadd.f32 1.0, %v8147_v16 }
0x20ca   :  { %v6695_v22 = vmul.f32 %v6691_v56, %v6663_v48 }
0x20cb   :  { %v6694_v21 = vmul.f32 %v6690_v19, %v6662_v20  ;;  %v7192_v20 = vld [vmem:[%s9435_s14 + $0x1] ss:$0 sm:$0xff] }
0x20cd   :  { %7849 = vmatprep.mubr.msk.f32.mxu1 %vm3378_vm5, %v6694_v21 }
0x20ce   :  { %7850 = vmatmul.mubr.msk.f32.gmra.mrb[76].mxu1 %vm3378_vm5, %v6695_v22 }
0x2165   :  { %v7848_v58 = vpop.f32.mrb[74].mxu1 }
0x2166   :  { %v6797_v26 = vadd.f32 %v7848_v58, %v7185_v23  ;;  %v6791_v27 = vpop.f32.mrb[75].mxu1 }
0x2167   :  { %v6792_v41 = vadd.f32 %v7185_v23, %v6791_v27 }
0x2168   :  { %v6811_v29 = vadd.f32 %v6797_v26, %v9340_v15 }
0x2169   :  { %v6810_v25 = vadd.f32 %v6792_v41, %v9338_v13 }
0x216a   :  { %v6821_v31 = vsel %vm152_vm0, %v6811_v29, 0.0 }
0x216b   :  { %6822 = vadd.xlane.f32.xlu0 %v6821_v31  ;;  %v6818_v9 = vsel %vm152_vm0, %v6810_v25, 0.0 }
0x216f   :  { %6819 = vadd.xlane.f32.xlu0 %v6818_v9 }
0x21a1   :  { %v7851_v33 = vpop.f32.mrb[76].mxu1 }
0x21a2   :  { %v6807_v47 = vadd.f32 %v7851_v33, %v7185_v23  ;;  %v6801_v36 = vpop.f32.mrb[77].mxu1 }
0x21a3   :  { %v6802_v34 = vadd.f32 %v7185_v23, %v6801_v36  ;;  %v7193_v23 = vld [vmem:[%s9436_s15 + $0x1] ss:$0 sm:$0xff] }
0x21a4   :  { %v6813_v59 = vadd.f32 %v6807_v47, %v9350_v54 }
0x21a5   :  { %v6812_v2 = vadd.f32 %v6802_v34, %v9346_v3 }
0x21a6   :  { %v6827_v15 = vsel %vm152_vm0, %v6813_v59, 0.0 }
0x21a7   :  { %v6824_v30 = vsel %vm152_vm0, %v6812_v2, 0.0 }
0x21a8   :  { %6825 = vadd.xlane.f32.xlu1 %v6824_v30 }
0x21ac   :  { %6828 = vadd.xlane.f32.xlu1 %v6827_v15  ;;  %v7194_v15 = vld [vmem:[%s9438_s17] ss:$0 sm:$0xff] }
0x21f8   :  { %v6823_v13 = vpop.xlane.xlu0 %6822 }
0x21f9   :  { %v6831_v35 = vmul.f32 0.03125, %v6823_v13 }
0x21fb   :  { %v6835_v32 = vsub.f32 %v6811_v29, %v6831_v35 }
0x21fc   :  { %v6820_v24 = vpop.xlane.xlu0 %6819 }
0x21fd   :  { %v6830_v28 = vmul.f32 0.03125, %v6820_v24  ;;  %v6839_v4 = vmul.f32 %v6835_v32, %v6835_v32  ;;  %v7197_v24 = vld [vmem:[%s9440_s19] ss:$0 sm:$0xff] }
0x21ff   :  { %v6834_v62 = vsub.f32 %v6810_v25, %v6830_v28  ;;  %v6845_v38 = vsel %vm152_vm0, %v6839_v4, 0.0  ;;  %v7196_v28 = vld [vmem:[%s9439_s18] ss:$0 sm:$0xff] }
0x2200   :  { %6846 = vadd.xlane.f32.xlu0 %v6845_v38 }
0x2201   :  { %v6838_v40 = vmul.f32 %v6834_v62, %v6834_v62 }
0x2203   :  { %v6842_v3 = vsel %vm152_vm0, %v6838_v40, 0.0 }
0x2204   :  { %6843 = vadd.xlane.f32.xlu0 %v6842_v3 }
0x2235   :  { %v6826_v54 = vpop.xlane.xlu1 %6825 }
0x2236   :  { %v6832_v43 = vmul.f32 0.03125, %v6826_v54 }
0x2238   :  { %v6836_v14 = vsub.f32 %v6812_v2, %v6832_v43 }
0x2239   :  { %v6829_v37 = vpop.xlane.xlu1 %6828 }
0x223a   :  { %v6833_v44 = vmul.f32 0.03125, %v6829_v37  ;;  %v6840_v17 = vmul.f32 %v6836_v14, %v6836_v14 }
0x223c   :  { %v6837_v18 = vsub.f32 %v6813_v59, %v6833_v44  ;;  %v6848_v46 = vsel %vm152_vm0, %v6840_v17, 0.0 }
0x223d   :  { %6849 = vadd.xlane.f32.xlu1 %v6848_v46 }
0x223e   :  { %v6841_v49 = vmul.f32 %v6837_v18, %v6837_v18 }
0x2240   :  { %v6851_v50 = vsel %vm152_vm0, %v6841_v49, 0.0 }
0x2241   :  { %6852 = vadd.xlane.f32.xlu1 %v6851_v50 }
0x228d   :  { %v6847_v6 = vpop.xlane.xlu0 %6846 }
0x228e   :  { %v6855_v61 = vmul.f32 0.03125, %v6847_v6 }
0x2290   :  { %v6859_v1 = vadd.f32 1e-12, %v6855_v61 }
0x2291   :  { %v6844_v8 = vpop.xlane.xlu0 %6843 }
0x2292   :  { %v6854_v63 = vmul.f32 0.03125, %v6844_v8  ;;  %8148 = vrsqrt.f32 %v6859_v1 }
0x2294   :  { %v6858_v45 = vadd.f32 1e-12, %v6854_v63 }
0x2296   :  { %8150 = vrsqrt.f32 %v6858_v45 }
0x229c   :  { %v8149_v12 = vpop.eup %8148 }
0x229d   :  { %v6867_v56 = vmul.f32 %v8149_v12, %v6835_v32 }
0x229f   :  { %v6877_v21 = vmul.f32 %v7192_v20, %v6867_v56 }
0x22a0   :  { %v8151_v16 = vpop.eup %8150 }
0x22a1   :  { %v6866_v19 = vmul.f32 %v8151_v16, %v6834_v62  ;;  %v6887_v41 = vadd.f32 %v7193_v23, %v6877_v21 }
0x22a3   :  { %v6876_v58 = vmul.f32 %v7192_v20, %v6866_v19  ;;  %v6905_v47 = vrot.slane %v6887_v41, 7 }
0x22a5   :  { %v6886_v31 = vadd.f32 %v7193_v23, %v6876_v58 }
0x22a7   :  { %v6907_v34 = vsel %vm6906_vm6, %v6905_v47, %v6886_v31 }
0x22ca   :  { %v6850_v5 = vpop.xlane.xlu1 %6849 }
0x22cb   :  { %v6856_v7 = vmul.f32 0.03125, %v6850_v5 }
0x22cd   :  { %v6860_v0 = vadd.f32 1e-12, %v6856_v7 }
0x22ce   :  { %v6853_v10 = vpop.xlane.xlu1 %6852 }
0x22cf   :  { %8152 = vrsqrt.f32 %v6860_v0  ;;  %v6857_v11 = vmul.f32 0.03125, %v6853_v10 }
0x22d1   :  { %v6861_v39 = vadd.f32 1e-12, %v6857_v11 }
0x22d3   :  { %8154 = vrsqrt.f32 %v6861_v39 }
0x22d9   :  { %v8153_v48 = vpop.eup %8152 }
0x22da   :  { %v6868_v22 = vmul.f32 %v8153_v48, %v6836_v14  ;;  %v7198_v14 = vld [vmem:[#allocation2] ss:$0 sm:$0xff] }
0x22dc   :  { %v6878_v26 = vmul.f32 %v7192_v20, %v6868_v22 }
0x22dd   :  { %v8155_v27 = vpop.eup %8154 }
0x22de   :  { %v6869_v29 = vmul.f32 %v8155_v27, %v6837_v18  ;;  %v6888_v25 = vadd.f32 %v7193_v23, %v6878_v26 }
0x22e0   :  { %v6879_v9 = vmul.f32 %v7192_v20, %v6869_v29  ;;  %v6908_v33 = vrot.slane %v6888_v25, 6 }
0x22e2   :  { %v6889_v36 = vadd.f32 %v7193_v23, %v6879_v9  ;;  %v6910_v59 = vsel %vm6909_vm7, %v6908_v33, %v6907_v34 }
0x22e4   :  { %v6911_v2 = vrot.slane %v6889_v36, 5 }
0x22e6   :  { %v6913_v30 = vsel %vm6912_vm8, %v6911_v2, %v6910_v59 }
0x22e7   :  { %7861 = vmatmul.mubr.msk.f32.vlgmr.msra.gmra.mrb[82].mxu0 %vm152_vm0, %v6913_v30 }
0x23ba   :  { %v6982_v13 = vpop.f32.mrb[82].mxu0 }
0x23bb   :  { %v6983_v35 = vadd.f32 %v7194_v15, %v6982_v13  ;;  %v7862_v32 = vpop.f32.mrb[83].mxu0 }
0x23bd   :  { %8156 = vtanh.f32 %v6983_v35 }
0x23c7   :  { %v8157_v4 = vpop.eup %8156 }
0x23c8   :  { %v7006_v62 = vmul.f32 %v8157_v4, %v7197_v24  ;;  %v6994_v38 = vmul.f32 %v8157_v4, %v7196_v28 }
0x23ca   :  { %v7008_v40 = vsel %vm7007_vm9, %v7006_v62, 0.0  ;;  %v6996_v3 = vsel %vm6995_vm10, %v6994_v38, 0.0 }
0x23cb   :  { %7009 = vadd.xlane.f32.xlu0 %v7008_v40  ;;  %6997 = vadd.xlane.f32.xlu1 %v6996_v3 }
0x2458   :  { %v7010_v54 = vpop.xlane.xlu0 %7009  ;;  %v6998_v37 = vpop.xlane.xlu1 %6997 }
0x2459   :  { %v7012_v43 = vrot.slane %v7010_v54, 2 }
0x245b   :  { %v7014_v44 = vadd.f32 %v7012_v43, %v6998_v37 }
0x245d   :  { %v7022_v17 = vadd.f32 %v7198_v14, %v7014_v44 }
0x245f   :  { %7024 = vst.msk [vmem:[%s9469_s16] sm:$0x3] %vm7023_vm11, %v7022_v17 }
0x2460   :  { %7029 = vsyncpa [#allocation4], 1 }
0x2461   :  { %7030 = vsyncpa [#allocation6], 1 }
0x2462   :  { %7031 = vsyncpa [#allocation9], 1 }

</bundles_post_ra>
